<compile_context>
chip_gen: v6e
topology: v6e:2x2x1
jax: 0.10.0
libtpu: 0.0.40
codegen_flags: <defaults>
</compile_context>

<pallas_src>
import functools

import jax
import jax.numpy as jnp
from jax.experimental import pallas as pl
from jax.experimental.pallas import tpu as pltpu

EPS = 1e-5


def _round_up(a: int, b: int) -> int:
    return (a + b - 1) // b * b


def _choose_tiling(n: int, tile_n: int):
    """N-tile size and padded N.  A full-N block needs no 128-lane alignment."""
    if n <= tile_n:
        return n, n
    tn = max(128, (tile_n // 128) * 128)
    return tn, _round_up(n, tn)


# ----------------------------------------------------------------------------- kernels


def _chain(x, ws, scs, shs, cin):
    """Pre-BN activation of layer len(ws) from an input tile x: (Cin, TN).

    ws = [w1..wk]; scs/shs = folded BN scale/shift of layers 1..k-1.  Conv biases of
    layers followed by BN are omitted (cancelled by the batch-mean subtraction).
    """
    w0 = ws[0]
    if cin <= 8:
        # K = Cin is tiny: VPU broadcast-FMAs instead of a nearly-empty MXU pass.
        h = w0[:, 0:1] * x[0:1, :]
        for c in range(1, cin):
            h = h + w0[:, c:c + 1] * x[c:c + 1, :]
    else:
        h = jnp.dot(w0, x, preferred_element_type=jnp.float32)
    for j in range(1, len(ws)):
        a = jnp.maximum(h * scs[j - 1] + shs[j - 1], 0.0)
        h = jnp.dot(ws[j], a, preferred_element_type=jnp.float32)
    return h


def _stats_kernel(*refs, cin):
    """Recompute the chain up to layer k; accumulate its pre-BN per-channel stats.

    refs = (x, w1, [sc1, sh1, w2, sc2, sh2, w3, ...], ssum, ssq)
    x block: (1, Cin, TN);  ssum/ssq blocks: (1, Hk, 1) per-batch partial sums.
    """
    x_ref = refs[0]
    ssum_ref, ssq_ref = refs[-2], refs[-1]
    prefs = refs[1:-2]
    ws, scs, shs = [prefs[0][...]], [], []
    for j in range(1, len(prefs), 3):
        scs.append(prefs[j][...])
        shs.append(prefs[j + 1][...])
        ws.append(prefs[j + 2][...])

    h = _chain(x_ref[0], ws, scs, shs, cin)

    @pl.when(pl.program_id(1) == 0)
    def _init():
        ssum_ref[...] = jnp.zeros_like(ssum_ref)
        ssq_ref[...] = jnp.zeros_like(ssq_ref)

    ssum_ref[...] += jnp.sum(h, axis=1, keepdims=True)[None]
    ssq_ref[...] += jnp.sum(h * h, axis=1, keepdims=True)[None]


def _final_kernel(*refs, cin):
    """Recompute the full chain, apply conv4 (+ bias b4) and the channel-wise max.

    refs = (x, w1, sc1, sh1, w2, sc2, sh2, w3, sc3, sh3, w4, b4, y, pool)
    """
    x_ref = refs[0]
    b_ref, y_ref, pool_ref = refs[-3], refs[-2], refs[-1]
    prefs = refs[1:-3]
    ws, scs, shs = [prefs[0][...]], [], []
    for j in range(1, len(prefs), 3):
        scs.append(prefs[j][...])
        shs.append(prefs[j + 1][...])
        ws.append(prefs[j + 2][...])

    y = _chain(x_ref[0], ws, scs, shs, cin) + b_ref[...]
    y_ref[...] = y[None].astype(y_ref.dtype)                      # (1, out_dim, TN)
    pool_ref[...] = jnp.max(y, axis=0, keepdims=True)[None]       # (1, 1, TN)


# ------------------------------------------------------------------------- call wrappers


def _const_spec(arr):
    # Full-array, grid-invariant block (weights / folded BN scale-shift / bias).
    return pl.BlockSpec(arr.shape, lambda b, i: (0, 0))


def _call_stats(x_p, chain_args, h_out, tn):
    B, cin, n_p = x_p.shape
    return pl.pallas_call(
        functools.partial(_stats_kernel, cin=cin),
        out_shape=(jax.ShapeDtypeStruct((B, h_out, 1), jnp.float32),) * 2,
        grid=(B, n_p // tn),
        in_specs=[pl.BlockSpec((1, cin, tn), lambda b, i: (b, 0, i))]
                 + [_const_spec(a) for a in chain_args],
        out_specs=(pl.BlockSpec((1, h_out, 1), lambda b, i: (b, 0, 0)),
                   pl.BlockSpec((1, h_out, 1), lambda b, i: (b, 0, 0))),
        # Per-batch partial stats -> batch axis can shard across TensorCores (v7x);
        # the N-tile axis carries the grid-resident accumulator -> sequential.
        compiler_params=pltpu.CompilerParams(
            dimension_semantics=("parallel", "arbitrary")),
    )(x_p, *chain_args)


def _call_final(x_p, chain_args, b4, out_dim, tn):
    B, cin, n_p = x_p.shape
    return pl.pallas_call(
        functools.partial(_final_kernel, cin=cin),
        out_shape=(jax.ShapeDtypeStruct((B, out_dim, n_p), jnp.float32),
                   jax.ShapeDtypeStruct((B, 1, n_p), jnp.float32)),
        grid=(B, n_p // tn),
        in_specs=[pl.BlockSpec((1, cin, tn), lambda b, i: (b, 0, i))]
                 + [_const_spec(a) for a in chain_args]
                 + [_const_spec(b4)],
        out_specs=(pl.BlockSpec((1, out_dim, tn), lambda b, i: (b, 0, i)),
                   pl.BlockSpec((1, 1, tn), lambda b, i: (b, 0, i))),
        # No cross-tile state: both axes can shard across TensorCores.
        compiler_params=pltpu.CompilerParams(
            dimension_semantics=("parallel", "parallel")),
    )(x_p, *chain_args, b4)


def _bn_fold(ssum, ssq, gamma, beta, m_true, hpad=None, npad=0):
    """Fold training-mode BN (biased variance, eps=1e-5) into per-channel scale/shift.

    ssum/ssq: (B, C, 1) per-batch partial sums of the pre-BN activation.  hpad is the
    constant pre-BN value every padded (all-zero-input) column takes at this layer;
    its contribution over the npad padded columns is removed analytically.
    """
    s = jnp.sum(ssum, axis=0)
    q = jnp.sum(ssq, axis=0)
    if npad:
        s = s - npad * hpad
        q = q - npad * (hpad * hpad)
    mean = s / m_true
    var = jnp.maximum(q / m_true - mean * mean, 0.0)   # clamp single-pass variance
    scale = gamma * jax.lax.rsqrt(var + EPS)
    shift = beta - mean * scale
    return scale, shift


# ----------------------------------------------------------------------------- forward


def pointnet_forward(x, params, *, tile_n=1024):
    """x: (B, in_dim, N) f32  ->  (y: (B, out_dim, N), pooled: (B, N)).

    pooled = max over the channel dim of conv4's output (module's `self.pool(x, dim=1)`).
    """
    B, cin, N = x.shape
    M = B * N
    w1, w2, w3, w4 = params["w1"], params["w2"], params["w3"], params["w4"]
    b4 = params["b4"]
    h1d, h2d, h3d, out_dim = w1.shape[0], w2.shape[0], w3.shape[0], w4.shape[0]

    tn, n_p = _choose_tiling(N, int(tile_n))
    x_p = x if n_p == N else jnp.pad(x, ((0, 0), (0, 0), (0, n_p - N)))
    npad = B * (n_p - N)              # total number of padded (all-zero) columns
    hi = jax.lax.Precision.HIGHEST

    # Layer 1 stats.  Padded columns give h1 = W1 @ 0 = 0 -> contribute nothing.
    s1, q1 = _call_stats(x_p, [w1], h1d, tn)
    sc1, sh1 = _bn_fold(s1, q1, params["g1"], params["be1"], M)

    # Layer 2 stats (each padded col contributes the constant hpad2 = W2 @ relu(sh1)).
    hpad2 = jnp.dot(w2, jnp.maximum(sh1, 0.0), precision=hi) if npad else None
    s2, q2 = _call_stats(x_p, [w1, sc1, sh1, w2], h2d, tn)
    sc2, sh2 = _bn_fold(s2, q2, params["g2"], params["be2"], M, hpad2, npad)

    # Layer 3 stats.
    hpad3 = (jnp.dot(w3, jnp.maximum(sc2 * hpad2 + sh2, 0.0), precision=hi)
             if npad else None)
    s3, q3 = _call_stats(x_p, [w1, sc1, sh1, w2, sc2, sh2, w3], h3d, tn)
    sc3, sh3 = _bn_fold(s3, q3, params["g3"], params["be3"], M, hpad3, npad)

    # Final pass: conv4 + bias and the channel-wise max pool, written in output layout.
    y_p, pool_p = _call_final(
        x_p, [w1, sc1, sh1, w2, sc2, sh2, w3, sc3, sh3, w4], b4, out_dim, tn)

    y = y_p if n_p == N else y_p[:, :, :N]
    pooled = (pool_p if n_p == N else pool_p[:, :, :N])[:, 0, :]
    return y, pooled


# ------------------------------------------------------------------------- params & ref


def init_params(key, in_dim=3, hidden_dim=32, out_dim=3):
    """Deterministic synthetic parameters. Conv1d(k=1) weight (Cout,Cin,1) -> (Cout,Cin)."""
    dims = [
        (in_dim, hidden_dim),
        (hidden_dim, 2 * hidden_dim),
        (2 * hidden_dim, 4 * hidden_dim),
        (4 * hidden_dim, out_dim),
    ]
    params = {}
    for i, (cin, cout) in enumerate(dims, start=1):
        key, kw, kb = jax.random.split(key, 3)
        bound = 1.0 / jnp.sqrt(jnp.float32(cin))
        params[f"w{i}"] = jax.random.uniform(kw, (cout, cin), jnp.float32, -bound, bound)
        # b1..b3 are created (so the reference uses them) but are NOT passed to the
        # kernels: a pre-BN bias is exactly cancelled by the batch-mean subtraction.
        params[f"b{i}"] = jax.random.uniform(kb, (cout, 1), jnp.float32, -bound, bound)
    for i, c in enumerate([hidden_dim, 2 * hidden_dim, 4 * hidden_dim], start=1):
        params[f"g{i}"] = jnp.ones((c, 1), jnp.float32)    # BN gamma
        params[f"be{i}"] = jnp.zeros((c, 1), jnp.float32)  # BN beta
    return params


def pointnet_reference(x, params):
    """Plain-JAX reference with the original channels-first layout and all biases."""
    def conv(h, w, b):
        return jnp.einsum("oc,bcn->bon", w, h,
                          precision=jax.lax.Precision.HIGHEST) + b

    def bn_relu(h, gamma, beta):
        mean = jnp.mean(h, axis=(0, 2), keepdims=True)
        var = jnp.mean((h - mean) ** 2, axis=(0, 2), keepdims=True)
        hn = (h - mean) * jax.lax.rsqrt(var + EPS)
        return jnp.maximum(gamma[None, :, :] * hn + beta[None, :, :], 0.0)

    h = bn_relu(conv(x, params["w1"], params["b1"]), params["g1"], params["be1"])
    h = bn_relu(conv(h, params["w2"], params["b2"]), params["g2"], params["be2"])
    h = bn_relu(conv(h, params["w3"], params["b3"]), params["g3"], params["be3"])
    y = conv(h, params["w4"], params["b4"])
    return y, jnp.max(y, axis=1)


if __name__ == "__main__":
    key = jax.random.PRNGKey(0)
    kx, kp = jax.random.split(key)

    B, in_dim, hidden_dim, out_dim, N = 2, 3, 32, 3, 16
    x = jax.random.normal(kx, (B, in_dim, N), jnp.float32)
    params = init_params(kp, in_dim=in_dim, hidden_dim=hidden_dim, out_dim=out_dim)

    forward = jax.jit(pointnet_forward)
    y, pooled = forward(x, params)
    jax.block_until_ready((y, pooled))

    assert y.shape == (B, out_dim, N)
    assert pooled.shape == (B, N)

    # Correctness vs plain-JAX reference (training-mode BN, biases included).
    y_ref, pool_ref = pointnet_reference(x, params)
    assert bool(jnp.allclose(y, y_ref, atol=1e-4, rtol=1e-4)), \
        float(jnp.max(jnp.abs(y - y_ref)))
    assert bool(jnp.allclose(pooled, pool_ref, atol=1e-4, rtol=1e-4))
    # Self-consistency: pooled equals channel-wise max of y.
    assert bool(jnp.allclose(pooled, jnp.max(y, axis=1), atol=1e-5, rtol=1e-5))

    print("KERNEL_OK")
</pallas_src>

<mosaic_0001>
module attributes {stable_mosaic.version = 11 : i64} {
  func.func @_stats_kernel(%arg0: i32, %arg1: i32, %arg2: memref<1x3x16xf32, #tpu.memory_space<vmem>>, %arg3: memref<32x3xf32, #tpu.memory_space<vmem>>, %arg4: memref<1x32x1xf32, #tpu.memory_space<vmem>>, %arg5: memref<1x32x1xf32, #tpu.memory_space<vmem>>) attributes {dimension_semantics = [#tpu.dimension_semantics<parallel>, #tpu.dimension_semantics<arbitrary>], iteration_bounds = array<i64: 2, 1>, scalar_prefetch = 0 : i64, scratch_operands = 0 : i64, tpu.core_type = #tpu.core_type<tc>, window_params = [{transform_indices = @transform_0, window_bounds = array<i64: 1, 3, 16>}, {pipeline_mode = #tpu.pipeline_mode<synchronous>, transform_indices = @transform_1, window_bounds = array<i64: 32, 3>}, {transform_indices = @transform_2, window_bounds = array<i64: 1, 32, 1>}, {transform_indices = @transform_3, window_bounds = array<i64: 1, 32, 1>}]} {
    %c0 = arith.constant 0 : index
    %c0_0 = arith.constant 0 : index
    %0 = vector.load %arg3[%c0, %c0_0] : memref<32x3xf32, #tpu.memory_space<vmem>>, vector<32x3xf32>
    %c0_1 = arith.constant 0 : index
    %c0_2 = arith.constant 0 : index
    %c0_3 = arith.constant 0 : index
    %1 = vector.load %arg2[%c0_1, %c0_2, %c0_3] : memref<1x3x16xf32, #tpu.memory_space<vmem>>, vector<1x3x16xf32>
    %2 = vector.shape_cast %1 : vector<1x3x16xf32> to vector<3x16xf32>
    %3 = vector.extract_strided_slice %0 {offsets = [0, 0], sizes = [32, 1], strides = [1, 1]} : vector<32x3xf32> to vector<32x1xf32>
    %4 = vector.extract_strided_slice %2 {offsets = [0, 0], sizes = [1, 16], strides = [1, 1]} : vector<3x16xf32> to vector<1x16xf32>
    %5 = vector.broadcast %3 : vector<32x1xf32> to vector<32x16xf32>
    %6 = vector.broadcast %4 : vector<1x16xf32> to vector<32x16xf32>
    %7 = arith.mulf %5, %6 : vector<32x16xf32>
    %8 = vector.extract_strided_slice %0 {offsets = [0, 1], sizes = [32, 1], strides = [1, 1]} : vector<32x3xf32> to vector<32x1xf32>
    %9 = vector.extract_strided_slice %2 {offsets = [1, 0], sizes = [1, 16], strides = [1, 1]} : vector<3x16xf32> to vector<1x16xf32>
    %10 = vector.broadcast %8 : vector<32x1xf32> to vector<32x16xf32>
    %11 = vector.broadcast %9 : vector<1x16xf32> to vector<32x16xf32>
    %12 = arith.mulf %10, %11 : vector<32x16xf32>
    %13 = arith.addf %7, %12 : vector<32x16xf32>
    %14 = vector.extract_strided_slice %0 {offsets = [0, 2], sizes = [32, 1], strides = [1, 1]} : vector<32x3xf32> to vector<32x1xf32>
    %15 = vector.extract_strided_slice %2 {offsets = [2, 0], sizes = [1, 16], strides = [1, 1]} : vector<3x16xf32> to vector<1x16xf32>
    %16 = vector.broadcast %14 : vector<32x1xf32> to vector<32x16xf32>
    %17 = vector.broadcast %15 : vector<1x16xf32> to vector<32x16xf32>
    %18 = arith.mulf %16, %17 : vector<32x16xf32>
    %19 = arith.addf %13, %18 : vector<32x16xf32>
    %c0_i32 = arith.constant 0 : i32
    %20 = arith.cmpi eq, %arg1, %c0_i32 : i32
    %21 = arith.extui %20 : i1 to i32
    %c0_i32_4 = arith.constant 0 : i32
    %22 = arith.cmpi ne, %21, %c0_i32_4 : i32
    scf.if %22 {
      %cst_18 = arith.constant 0.000000e+00 : f32
      %36 = vector.broadcast %cst_18 : f32 to vector<1x32x1xf32>
      %c0_19 = arith.constant 0 : index
      %c0_20 = arith.constant 0 : index
      %c0_21 = arith.constant 0 : index
      %37 = vector.load %arg4[%c0_19, %c0_20, %c0_21] : memref<1x32x1xf32, #tpu.memory_space<vmem>>, vector<1x32x1xf32>
      tpu.vector_store %arg4[%c0_19, %c0_20, %c0_21], %36 {strides = array<i32>} : memref<1x32x1xf32, #tpu.memory_space<vmem>>, vector<1x32x1xf32>,
      %cst_22 = arith.constant 0.000000e+00 : f32
      %38 = vector.broadcast %cst_22 : f32 to vector<1x32x1xf32>
      %c0_23 = arith.constant 0 : index
      %c0_24 = arith.constant 0 : index
      %c0_25 = arith.constant 0 : index
      %39 = vector.load %arg5[%c0_23, %c0_24, %c0_25] : memref<1x32x1xf32, #tpu.memory_space<vmem>>, vector<1x32x1xf32>
      tpu.vector_store %arg5[%c0_23, %c0_24, %c0_25], %38 {strides = array<i32>} : memref<1x32x1xf32, #tpu.memory_space<vmem>>, vector<1x32x1xf32>,
    } else {
    }
    %c0_5 = arith.constant 0 : index
    %c0_6 = arith.constant 0 : index
    %c0_7 = arith.constant 0 : index
    %23 = vector.load %arg4[%c0_5, %c0_6, %c0_7] : memref<1x32x1xf32, #tpu.memory_space<vmem>>, vector<1x32x1xf32>
    %cst = arith.constant dense<0.000000e+00> : vector<32xf32>
    %24 = vector.multi_reduction <add>, %19, %cst [1] : vector<32x16xf32> to vector<32xf32>
    %25 = vector.shape_cast %24 : vector<32xf32> to vector<32x1xf32>
    %26 = vector.shape_cast %25 : vector<32x1xf32> to vector<1x32x1xf32>
    %27 = arith.addf %23, %26 : vector<1x32x1xf32>
    %c0_8 = arith.constant 0 : index
    %c0_9 = arith.constant 0 : index
    %c0_10 = arith.constant 0 : index
    %28 = vector.load %arg4[%c0_8, %c0_9, %c0_10] : memref<1x32x1xf32, #tpu.memory_space<vmem>>, vector<1x32x1xf32>
    tpu.vector_store %arg4[%c0_8, %c0_9, %c0_10], %27 {strides = array<i32>} : memref<1x32x1xf32, #tpu.memory_space<vmem>>, vector<1x32x1xf32>,
    %c0_11 = arith.constant 0 : index
    %c0_12 = arith.constant 0 : index
    %c0_13 = arith.constant 0 : index
    %29 = vector.load %arg5[%c0_11, %c0_12, %c0_13] : memref<1x32x1xf32, #tpu.memory_space<vmem>>, vector<1x32x1xf32>
    %30 = arith.mulf %19, %19 : vector<32x16xf32>
    %cst_14 = arith.constant dense<0.000000e+00> : vector<32xf32>
    %31 = vector.multi_reduction <add>, %30, %cst_14 [1] : vector<32x16xf32> to vector<32xf32>
    %32 = vector.shape_cast %31 : vector<32xf32> to vector<32x1xf32>
    %33 = vector.shape_cast %32 : vector<32x1xf32> to vector<1x32x1xf32>
    %34 = arith.addf %29, %33 : vector<1x32x1xf32>
    %c0_15 = arith.constant 0 : index
    %c0_16 = arith.constant 0 : index
    %c0_17 = arith.constant 0 : index
    %35 = vector.load %arg5[%c0_15, %c0_16, %c0_17] : memref<1x32x1xf32, #tpu.memory_space<vmem>>, vector<1x32x1xf32>
    tpu.vector_store %arg5[%c0_15, %c0_16, %c0_17], %34 {strides = array<i32>} : memref<1x32x1xf32, #tpu.memory_space<vmem>>, vector<1x32x1xf32>,
    return
  }
  func.func @transform_0(%arg0: i32, %arg1: i32) -> (i32, i32, i32) {
    %c0_i32 = arith.constant 0 : i32
    %c0_i32_0 = arith.constant 0 : i32
    return %arg0, %c0_i32, %arg1 : i32, i32, i32
  }
  func.func @transform_1(%arg0: i32, %arg1: i32) -> (i32, i32) {
    %c0_i32 = arith.constant 0 : i32
    %c0_i32_0 = arith.constant 0 : i32
    %c0_i32_1 = arith.constant 0 : i32
    return %c0_i32, %c0_i32_0 : i32, i32
  }
  func.func @transform_2(%arg0: i32, %arg1: i32) -> (i32, i32, i32) {
    %c0_i32 = arith.constant 0 : i32
    %c0_i32_0 = arith.constant 0 : i32
    %c0_i32_1 = arith.constant 0 : i32
    return %arg0, %c0_i32, %c0_i32_0 : i32, i32, i32
  }
  func.func @transform_3(%arg0: i32, %arg1: i32) -> (i32, i32, i32) {
    %c0_i32 = arith.constant 0 : i32
    %c0_i32_0 = arith.constant 0 : i32
    %c0_i32_1 = arith.constant 0 : i32
    return %arg0, %c0_i32, %c0_i32_0 : i32, i32, i32
  }
}

module attributes {stable_mosaic.version = 11 : i64} {
  func.func @_stats_kernel(%arg0: i32, %arg1: i32, %arg2: memref<1x3x16xf32, #tpu.memory_space<vmem>>, %arg3: memref<32x3xf32, #tpu.memory_space<vmem>>, %arg4: memref<32x1xf32, #tpu.memory_space<vmem>>, %arg5: memref<32x1xf32, #tpu.memory_space<vmem>>, %arg6: memref<64x32xf32, #tpu.memory_space<vmem>>, %arg7: memref<1x64x1xf32, #tpu.memory_space<vmem>>, %arg8: memref<1x64x1xf32, #tpu.memory_space<vmem>>) attributes {dimension_semantics = [#tpu.dimension_semantics<parallel>, #tpu.dimension_semantics<arbitrary>], iteration_bounds = array<i64: 2, 1>, scalar_prefetch = 0 : i64, scratch_operands = 0 : i64, tpu.core_type = #tpu.core_type<tc>, window_params = [{transform_indices = @transform_0, window_bounds = array<i64: 1, 3, 16>}, {pipeline_mode = #tpu.pipeline_mode<synchronous>, transform_indices = @transform_1, window_bounds = array<i64: 32, 3>}, {pipeline_mode = #tpu.pipeline_mode<synchronous>, transform_indices = @transform_2, window_bounds = array<i64: 32, 1>}, {pipeline_mode = #tpu.pipeline_mode<synchronous>, transform_indices = @transform_3, window_bounds = array<i64: 32, 1>}, {pipeline_mode = #tpu.pipeline_mode<synchronous>, transform_indices = @transform_4, window_bounds = array<i64: 64, 32>}, {transform_indices = @transform_5, window_bounds = array<i64: 1, 64, 1>}, {transform_indices = @transform_6, window_bounds = array<i64: 1, 64, 1>}]} {
    %c0 = arith.constant 0 : index
    %c0_0 = arith.constant 0 : index
    %0 = vector.load %arg3[%c0, %c0_0] : memref<32x3xf32, #tpu.memory_space<vmem>>, vector<32x3xf32>
    %c0_1 = arith.constant 0 : index
    %c0_2 = arith.constant 0 : index
    %1 = vector.load %arg4[%c0_1, %c0_2] : memref<32x1xf32, #tpu.memory_space<vmem>>, vector<32x1xf32>
    %c0_3 = arith.constant 0 : index
    %c0_4 = arith.constant 0 : index
    %2 = vector.load %arg5[%c0_3, %c0_4] : memref<32x1xf32, #tpu.memory_space<vmem>>, vector<32x1xf32>
    %c0_5 = arith.constant 0 : index
    %c0_6 = arith.constant 0 : index
    %3 = vector.load %arg6[%c0_5, %c0_6] : memref<64x32xf32, #tpu.memory_space<vmem>>, vector<64x32xf32>
    %c0_7 = arith.constant 0 : index
    %c0_8 = arith.constant 0 : index
    %c0_9 = arith.constant 0 : index
    %4 = vector.load %arg2[%c0_7, %c0_8, %c0_9] : memref<1x3x16xf32, #tpu.memory_space<vmem>>, vector<1x3x16xf32>
    %5 = vector.shape_cast %4 : vector<1x3x16xf32> to vector<3x16xf32>
    %6 = vector.extract_strided_slice %0 {offsets = [0, 0], sizes = [32, 1], strides = [1, 1]} : vector<32x3xf32> to vector<32x1xf32>
    %7 = vector.extract_strided_slice %5 {offsets = [0, 0], sizes = [1, 16], strides = [1, 1]} : vector<3x16xf32> to vector<1x16xf32>
    %8 = vector.broadcast %6 : vector<32x1xf32> to vector<32x16xf32>
    %9 = vector.broadcast %7 : vector<1x16xf32> to vector<32x16xf32>
    %10 = arith.mulf %8, %9 : vector<32x16xf32>
    %11 = vector.extract_strided_slice %0 {offsets = [0, 1], sizes = [32, 1], strides = [1, 1]} : vector<32x3xf32> to vector<32x1xf32>
    %12 = vector.extract_strided_slice %5 {offsets = [1, 0], sizes = [1, 16], strides = [1, 1]} : vector<3x16xf32> to vector<1x16xf32>
    %13 = vector.broadcast %11 : vector<32x1xf32> to vector<32x16xf32>
    %14 = vector.broadcast %12 : vector<1x16xf32> to vector<32x16xf32>
    %15 = arith.mulf %13, %14 : vector<32x16xf32>
    %16 = arith.addf %10, %15 : vector<32x16xf32>
    %17 = vector.extract_strided_slice %0 {offsets = [0, 2], sizes = [32, 1], strides = [1, 1]} : vector<32x3xf32> to vector<32x1xf32>
    %18 = vector.extract_strided_slice %5 {offsets = [2, 0], sizes = [1, 16], strides = [1, 1]} : vector<3x16xf32> to vector<1x16xf32>
    %19 = vector.broadcast %17 : vector<32x1xf32> to vector<32x16xf32>
    %20 = vector.broadcast %18 : vector<1x16xf32> to vector<32x16xf32>
    %21 = arith.mulf %19, %20 : vector<32x16xf32>
    %22 = arith.addf %16, %21 : vector<32x16xf32>
    %23 = vector.broadcast %1 : vector<32x1xf32> to vector<32x16xf32>
    %24 = arith.mulf %22, %23 : vector<32x16xf32>
    %25 = vector.broadcast %2 : vector<32x1xf32> to vector<32x16xf32>
    %26 = arith.addf %24, %25 : vector<32x16xf32>
    %cst = arith.constant 0.000000e+00 : f32
    %27 = vector.broadcast %cst : f32 to vector<32x16xf32>
    %28 = arith.maximumf %26, %27 : vector<32x16xf32>
    %cst_10 = arith.constant dense<0.000000e+00> : vector<64x16xf32>
    %29 = tpu.matmul %3, %28, %cst_10 {dimension_numbers = #tpu.dot_dimension_numbers<[1], [0], [0], [1], [0, 0, 1, 1], [], []>} : vector<64x32xf32>, vector<32x16xf32>, vector<64x16xf32> -> vector<64x16xf32>
    %c0_i32 = arith.constant 0 : i32
    %30 = arith.cmpi eq, %arg1, %c0_i32 : i32
    %31 = arith.extui %30 : i1 to i32
    %c0_i32_11 = arith.constant 0 : i32
    %32 = arith.cmpi ne, %31, %c0_i32_11 : i32
    scf.if %32 {
      %cst_26 = arith.constant 0.000000e+00 : f32
      %46 = vector.broadcast %cst_26 : f32 to vector<1x64x1xf32>
      %c0_27 = arith.constant 0 : index
      %c0_28 = arith.constant 0 : index
      %c0_29 = arith.constant 0 : index
      %47 = vector.load %arg7[%c0_27, %c0_28, %c0_29] : memref<1x64x1xf32, #tpu.memory_space<vmem>>, vector<1x64x1xf32>
      tpu.vector_store %arg7[%c0_27, %c0_28, %c0_29], %46 {strides = array<i32>} : memref<1x64x1xf32, #tpu.memory_space<vmem>>, vector<1x64x1xf32>,
      %cst_30 = arith.constant 0.000000e+00 : f32
      %48 = vector.broadcast %cst_30 : f32 to vector<1x64x1xf32>
      %c0_31 = arith.constant 0 : index
      %c0_32 = arith.constant 0 : index
      %c0_33 = arith.constant 0 : index
      %49 = vector.load %arg8[%c0_31, %c0_32, %c0_33] : memref<1x64x1xf32, #tpu.memory_space<vmem>>, vector<1x64x1xf32>
      tpu.vector_store %arg8[%c0_31, %c0_32, %c0_33], %48 {strides = array<i32>} : memref<1x64x1xf32, #tpu.memory_space<vmem>>, vector<1x64x1xf32>,
    } else {
    }
    %c0_12 = arith.constant 0 : index
    %c0_13 = arith.constant 0 : index
    %c0_14 = arith.constant 0 : index
    %33 = vector.load %arg7[%c0_12, %c0_13, %c0_14] : memref<1x64x1xf32, #tpu.memory_space<vmem>>, vector<1x64x1xf32>
    %cst_15 = arith.constant dense<0.000000e+00> : vector<64xf32>
    %34 = vector.multi_reduction <add>, %29, %cst_15 [1] : vector<64x16xf32> to vector<64xf32>
    %35 = vector.shape_cast %34 : vector<64xf32> to vector<64x1xf32>
    %36 = vector.shape_cast %35 : vector<64x1xf32> to vector<1x64x1xf32>
    %37 = arith.addf %33, %36 : vector<1x64x1xf32>
    %c0_16 = arith.constant 0 : index
    %c0_17 = arith.constant 0 : index
    %c0_18 = arith.constant 0 : index
    %38 = vector.load %arg7[%c0_16, %c0_17, %c0_18] : memref<1x64x1xf32, #tpu.memory_space<vmem>>, vector<1x64x1xf32>
    tpu.vector_store %arg7[%c0_16, %c0_17, %c0_18], %37 {strides = array<i32>} : memref<1x64x1xf32, #tpu.memory_space<vmem>>, vector<1x64x1xf32>,
    %c0_19 = arith.constant 0 : index
    %c0_20 = arith.constant 0 : index
    %c0_21 = arith.constant 0 : index
    %39 = vector.load %arg8[%c0_19, %c0_20, %c0_21] : memref<1x64x1xf32, #tpu.memory_space<vmem>>, vector<1x64x1xf32>
    %40 = arith.mulf %29, %29 : vector<64x16xf32>
    %cst_22 = arith.constant dense<0.000000e+00> : vector<64xf32>
    %41 = vector.multi_reduction <add>, %40, %cst_22 [1] : vector<64x16xf32> to vector<64xf32>
    %42 = vector.shape_cast %41 : vector<64xf32> to vector<64x1xf32>
    %43 = vector.shape_cast %42 : vector<64x1xf32> to vector<1x64x1xf32>
    %44 = arith.addf %39, %43 : vector<1x64x1xf32>
    %c0_23 = arith.constant 0 : index
    %c0_24 = arith.constant 0 : index
    %c0_25 = arith.constant 0 : index
    %45 = vector.load %arg8[%c0_23, %c0_24, %c0_25] : memref<1x64x1xf32, #tpu.memory_space<vmem>>, vector<1x64x1xf32>
    tpu.vector_store %arg8[%c0_23, %c0_24, %c0_25], %44 {strides = array<i32>} : memref<1x64x1xf32, #tpu.memory_space<vmem>>, vector<1x64x1xf32>,
    return
  }
  func.func @transform_0(%arg0: i32, %arg1: i32) -> (i32, i32, i32) {
    %c0_i32 = arith.constant 0 : i32
    %c0_i32_0 = arith.constant 0 : i32
    return %arg0, %c0_i32, %arg1 : i32, i32, i32
  }
  func.func @transform_1(%arg0: i32, %arg1: i32) -> (i32, i32) {
    %c0_i32 = arith.constant 0 : i32
    %c0_i32_0 = arith.constant 0 : i32
    %c0_i32_1 = arith.constant 0 : i32
    return %c0_i32, %c0_i32_0 : i32, i32
  }
  func.func @transform_2(%arg0: i32, %arg1: i32) -> (i32, i32) {
    %c0_i32 = arith.constant 0 : i32
    %c0_i32_0 = arith.constant 0 : i32
    %c0_i32_1 = arith.constant 0 : i32
    return %c0_i32, %c0_i32_0 : i32, i32
  }
  func.func @transform_3(%arg0: i32, %arg1: i32) -> (i32, i32) {
    %c0_i32 = arith.constant 0 : i32
    %c0_i32_0 = arith.constant 0 : i32
    %c0_i32_1 = arith.constant 0 : i32
    return %c0_i32, %c0_i32_0 : i32, i32
  }
  func.func @transform_4(%arg0: i32, %arg1: i32) -> (i32, i32) {
    %c0_i32 = arith.constant 0 : i32
    %c0_i32_0 = arith.constant 0 : i32
    %c0_i32_1 = arith.constant 0 : i32
    return %c0_i32, %c0_i32_0 : i32, i32
  }
  func.func @transform_5(%arg0: i32, %arg1: i32) -> (i32, i32, i32) {
    %c0_i32 = arith.constant 0 : i32
    %c0_i32_0 = arith.constant 0 : i32
    %c0_i32_1 = arith.constant 0 : i32
    return %arg0, %c0_i32, %c0_i32_0 : i32, i32, i32
  }
  func.func @transform_6(%arg0: i32, %arg1: i32) -> (i32, i32, i32) {
    %c0_i32 = arith.constant 0 : i32
    %c0_i32_0 = arith.constant 0 : i32
    %c0_i32_1 = arith.constant 0 : i32
    return %arg0, %c0_i32, %c0_i32_0 : i32, i32, i32
  }
}

module attributes {stable_mosaic.version = 11 : i64} {
  func.func @_stats_kernel(%arg0: i32, %arg1: i32, %arg2: memref<1x3x16xf32, #tpu.memory_space<vmem>>, %arg3: memref<32x3xf32, #tpu.memory_space<vmem>>, %arg4: memref<32x1xf32, #tpu.memory_space<vmem>>, %arg5: memref<32x1xf32, #tpu.memory_space<vmem>>, %arg6: memref<64x32xf32, #tpu.memory_space<vmem>>, %arg7: memref<64x1xf32, #tpu.memory_space<vmem>>, %arg8: memref<64x1xf32, #tpu.memory_space<vmem>>, %arg9: memref<128x64xf32, #tpu.memory_space<vmem>>, %arg10: memref<1x128x1xf32, #tpu.memory_space<vmem>>, %arg11: memref<1x128x1xf32, #tpu.memory_space<vmem>>) attributes {dimension_semantics = [#tpu.dimension_semantics<parallel>, #tpu.dimension_semantics<arbitrary>], iteration_bounds = array<i64: 2, 1>, scalar_prefetch = 0 : i64, scratch_operands = 0 : i64, tpu.core_type = #tpu.core_type<tc>, window_params = [{transform_indices = @transform_0, window_bounds = array<i64: 1, 3, 16>}, {pipeline_mode = #tpu.pipeline_mode<synchronous>, transform_indices = @transform_1, window_bounds = array<i64: 32, 3>}, {pipeline_mode = #tpu.pipeline_mode<synchronous>, transform_indices = @transform_2, window_bounds = array<i64: 32, 1>}, {pipeline_mode = #tpu.pipeline_mode<synchronous>, transform_indices = @transform_3, window_bounds = array<i64: 32, 1>}, {pipeline_mode = #tpu.pipeline_mode<synchronous>, transform_indices = @transform_4, window_bounds = array<i64: 64, 32>}, {pipeline_mode = #tpu.pipeline_mode<synchronous>, transform_indices = @transform_5, window_bounds = array<i64: 64, 1>}, {pipeline_mode = #tpu.pipeline_mode<synchronous>, transform_indices = @transform_6, window_bounds = array<i64: 64, 1>}, {pipeline_mode = #tpu.pipeline_mode<synchronous>, transform_indices = @transform_7, window_bounds = array<i64: 128, 64>}, {transform_indices = @transform_8, window_bounds = array<i64: 1, 128, 1>}, {transform_indices = @transform_9, window_bounds = array<i64: 1, 128, 1>}]} {
    %c0 = arith.constant 0 : index
    %c0_0 = arith.constant 0 : index
    %0 = vector.load %arg3[%c0, %c0_0] : memref<32x3xf32, #tpu.memory_space<vmem>>, vector<32x3xf32>
    %c0_1 = arith.constant 0 : index
    %c0_2 = arith.constant 0 : index
    %1 = vector.load %arg4[%c0_1, %c0_2] : memref<32x1xf32, #tpu.memory_space<vmem>>, vector<32x1xf32>
    %c0_3 = arith.constant 0 : index
    %c0_4 = arith.constant 0 : index
    %2 = vector.load %arg5[%c0_3, %c0_4] : memref<32x1xf32, #tpu.memory_space<vmem>>, vector<32x1xf32>
    %c0_5 = arith.constant 0 : index
    %c0_6 = arith.constant 0 : index
    %3 = vector.load %arg6[%c0_5, %c0_6] : memref<64x32xf32, #tpu.memory_space<vmem>>, vector<64x32xf32>
    %c0_7 = arith.constant 0 : index
    %c0_8 = arith.constant 0 : index
    %4 = vector.load %arg7[%c0_7, %c0_8] : memref<64x1xf32, #tpu.memory_space<vmem>>, vector<64x1xf32>
    %c0_9 = arith.constant 0 : index
    %c0_10 = arith.constant 0 : index
    %5 = vector.load %arg8[%c0_9, %c0_10] : memref<64x1xf32, #tpu.memory_space<vmem>>, vector<64x1xf32>
    %c0_11 = arith.constant 0 : index
    %c0_12 = arith.constant 0 : index
    %6 = vector.load %arg9[%c0_11, %c0_12] : memref<128x64xf32, #tpu.memory_space<vmem>>, vector<128x64xf32>
    %c0_13 = arith.constant 0 : index
    %c0_14 = arith.constant 0 : index
    %c0_15 = arith.constant 0 : index
    %7 = vector.load %arg2[%c0_13, %c0_14, %c0_15] : memref<1x3x16xf32, #tpu.memory_space<vmem>>, vector<1x3x16xf32>
    %8 = vector.shape_cast %7 : vector<1x3x16xf32> to vector<3x16xf32>
    %9 = vector.extract_strided_slice %0 {offsets = [0, 0], sizes = [32, 1], strides = [1, 1]} : vector<32x3xf32> to vector<32x1xf32>
    %10 = vector.extract_strided_slice %8 {offsets = [0, 0], sizes = [1, 16], strides = [1, 1]} : vector<3x16xf32> to vector<1x16xf32>
    %11 = vector.broadcast %9 : vector<32x1xf32> to vector<32x16xf32>
    %12 = vector.broadcast %10 : vector<1x16xf32> to vector<32x16xf32>
    %13 = arith.mulf %11, %12 : vector<32x16xf32>
    %14 = vector.extract_strided_slice %0 {offsets = [0, 1], sizes = [32, 1], strides = [1, 1]} : vector<32x3xf32> to vector<32x1xf32>
    %15 = vector.extract_strided_slice %8 {offsets = [1, 0], sizes = [1, 16], strides = [1, 1]} : vector<3x16xf32> to vector<1x16xf32>
    %16 = vector.broadcast %14 : vector<32x1xf32> to vector<32x16xf32>
    %17 = vector.broadcast %15 : vector<1x16xf32> to vector<32x16xf32>
    %18 = arith.mulf %16, %17 : vector<32x16xf32>
    %19 = arith.addf %13, %18 : vector<32x16xf32>
    %20 = vector.extract_strided_slice %0 {offsets = [0, 2], sizes = [32, 1], strides = [1, 1]} : vector<32x3xf32> to vector<32x1xf32>
    %21 = vector.extract_strided_slice %8 {offsets = [2, 0], sizes = [1, 16], strides = [1, 1]} : vector<3x16xf32> to vector<1x16xf32>
    %22 = vector.broadcast %20 : vector<32x1xf32> to vector<32x16xf32>
    %23 = vector.broadcast %21 : vector<1x16xf32> to vector<32x16xf32>
    %24 = arith.mulf %22, %23 : vector<32x16xf32>
    %25 = arith.addf %19, %24 : vector<32x16xf32>
    %26 = vector.broadcast %1 : vector<32x1xf32> to vector<32x16xf32>
    %27 = arith.mulf %25, %26 : vector<32x16xf32>
    %28 = vector.broadcast %2 : vector<32x1xf32> to vector<32x16xf32>
    %29 = arith.addf %27, %28 : vector<32x16xf32>
    %cst = arith.constant 0.000000e+00 : f32
    %30 = vector.broadcast %cst : f32 to vector<32x16xf32>
    %31 = arith.maximumf %29, %30 : vector<32x16xf32>
    %cst_16 = arith.constant dense<0.000000e+00> : vector<64x16xf32>
    %32 = tpu.matmul %3, %31, %cst_16 {dimension_numbers = #tpu.dot_dimension_numbers<[1], [0], [0], [1], [0, 0, 1, 1], [], []>} : vector<64x32xf32>, vector<32x16xf32>, vector<64x16xf32> -> vector<64x16xf32>
    %33 = vector.broadcast %4 : vector<64x1xf32> to vector<64x16xf32>
    %34 = arith.mulf %32, %33 : vector<64x16xf32>
    %35 = vector.broadcast %5 : vector<64x1xf32> to vector<64x16xf32>
    %36 = arith.addf %34, %35 : vector<64x16xf32>
    %cst_17 = arith.constant 0.000000e+00 : f32
    %37 = vector.broadcast %cst_17 : f32 to vector<64x16xf32>
    %38 = arith.maximumf %36, %37 : vector<64x16xf32>
    %cst_18 = arith.constant dense<0.000000e+00> : vector<128x16xf32>
    %39 = tpu.matmul %6, %38, %cst_18 {dimension_numbers = #tpu.dot_dimension_numbers<[1], [0], [0], [1], [0, 0, 1, 1], [], []>} : vector<128x64xf32>, vector<64x16xf32>, vector<128x16xf32> -> vector<128x16xf32>
    %c0_i32 = arith.constant 0 : i32
    %40 = arith.cmpi eq, %arg1, %c0_i32 : i32
    %41 = arith.extui %40 : i1 to i32
    %c0_i32_19 = arith.constant 0 : i32
    %42 = arith.cmpi ne, %41, %c0_i32_19 : i32
    scf.if %42 {
      %cst_34 = arith.constant 0.000000e+00 : f32
      %56 = vector.broadcast %cst_34 : f32 to vector<1x128x1xf32>
      %c0_35 = arith.constant 0 : index
      %c0_36 = arith.constant 0 : index
      %c0_37 = arith.constant 0 : index
      %57 = vector.load %arg10[%c0_35, %c0_36, %c0_37] : memref<1x128x1xf32, #tpu.memory_space<vmem>>, vector<1x128x1xf32>
      tpu.vector_store %arg10[%c0_35, %c0_36, %c0_37], %56 {strides = array<i32>} : memref<1x128x1xf32, #tpu.memory_space<vmem>>, vector<1x128x1xf32>,
      %cst_38 = arith.constant 0.000000e+00 : f32
      %58 = vector.broadcast %cst_38 : f32 to vector<1x128x1xf32>
      %c0_39 = arith.constant 0 : index
      %c0_40 = arith.constant 0 : index
      %c0_41 = arith.constant 0 : index
      %59 = vector.load %arg11[%c0_39, %c0_40, %c0_41] : memref<1x128x1xf32, #tpu.memory_space<vmem>>, vector<1x128x1xf32>
      tpu.vector_store %arg11[%c0_39, %c0_40, %c0_41], %58 {strides = array<i32>} : memref<1x128x1xf32, #tpu.memory_space<vmem>>, vector<1x128x1xf32>,
    } else {
    }
    %c0_20 = arith.constant 0 : index
    %c0_21 = arith.constant 0 : index
    %c0_22 = arith.constant 0 : index
    %43 = vector.load %arg10[%c0_20, %c0_21, %c0_22] : memref<1x128x1xf32, #tpu.memory_space<vmem>>, vector<1x128x1xf32>
    %cst_23 = arith.constant dense<0.000000e+00> : vector<128xf32>
    %44 = vector.multi_reduction <add>, %39, %cst_23 [1] : vector<128x16xf32> to vector<128xf32>
    %45 = vector.shape_cast %44 : vector<128xf32> to vector<128x1xf32>
    %46 = vector.shape_cast %45 : vector<128x1xf32> to vector<1x128x1xf32>
    %47 = arith.addf %43, %46 : vector<1x128x1xf32>
    %c0_24 = arith.constant 0 : index
    %c0_25 = arith.constant 0 : index
    %c0_26 = arith.constant 0 : index
    %48 = vector.load %arg10[%c0_24, %c0_25, %c0_26] : memref<1x128x1xf32, #tpu.memory_space<vmem>>, vector<1x128x1xf32>
    tpu.vector_store %arg10[%c0_24, %c0_25, %c0_26], %47 {strides = array<i32>} : memref<1x128x1xf32, #tpu.memory_space<vmem>>, vector<1x128x1xf32>,
    %c0_27 = arith.constant 0 : index
    %c0_28 = arith.constant 0 : index
    %c0_29 = arith.constant 0 : index
    %49 = vector.load %arg11[%c0_27, %c0_28, %c0_29] : memref<1x128x1xf32, #tpu.memory_space<vmem>>, vector<1x128x1xf32>
    %50 = arith.mulf %39, %39 : vector<128x16xf32>
    %cst_30 = arith.constant dense<0.000000e+00> : vector<128xf32>
    %51 = vector.multi_reduction <add>, %50, %cst_30 [1] : vector<128x16xf32> to vector<128xf32>
    %52 = vector.shape_cast %51 : vector<128xf32> to vector<128x1xf32>
    %53 = vector.shape_cast %52 : vector<128x1xf32> to vector<1x128x1xf32>
    %54 = arith.addf %49, %53 : vector<1x128x1xf32>
    %c0_31 = arith.constant 0 : index
    %c0_32 = arith.constant 0 : index
    %c0_33 = arith.constant 0 : index
    %55 = vector.load %arg11[%c0_31, %c0_32, %c0_33] : memref<1x128x1xf32, #tpu.memory_space<vmem>>, vector<1x128x1xf32>
    tpu.vector_store %arg11[%c0_31, %c0_32, %c0_33], %54 {strides = array<i32>} : memref<1x128x1xf32, #tpu.memory_space<vmem>>, vector<1x128x1xf32>,
    return
  }
  func.func @transform_0(%arg0: i32, %arg1: i32) -> (i32, i32, i32) {
    %c0_i32 = arith.constant 0 : i32
    %c0_i32_0 = arith.constant 0 : i32
    return %arg0, %c0_i32, %arg1 : i32, i32, i32
  }
  func.func @transform_1(%arg0: i32, %arg1: i32) -> (i32, i32) {
    %c0_i32 = arith.constant 0 : i32
    %c0_i32_0 = arith.constant 0 : i32
    %c0_i32_1 = arith.constant 0 : i32
    return %c0_i32, %c0_i32_0 : i32, i32
  }
  func.func @transform_2(%arg0: i32, %arg1: i32) -> (i32, i32) {
    %c0_i32 = arith.constant 0 : i32
    %c0_i32_0 = arith.constant 0 : i32
    %c0_i32_1 = arith.constant 0 : i32
    return %c0_i32, %c0_i32_0 : i32, i32
  }
  func.func @transform_3(%arg0: i32, %arg1: i32) -> (i32, i32) {
    %c0_i32 = arith.constant 0 : i32
    %c0_i32_0 = arith.constant 0 : i32
    %c0_i32_1 = arith.constant 0 : i32
    return %c0_i32, %c0_i32_0 : i32, i32
  }
  func.func @transform_4(%arg0: i32, %arg1: i32) -> (i32, i32) {
    %c0_i32 = arith.constant 0 : i32
    %c0_i32_0 = arith.constant 0 : i32
    %c0_i32_1 = arith.constant 0 : i32
    return %c0_i32, %c0_i32_0 : i32, i32
  }
  func.func @transform_5(%arg0: i32, %arg1: i32) -> (i32, i32) {
    %c0_i32 = arith.constant 0 : i32
    %c0_i32_0 = arith.constant 0 : i32
    %c0_i32_1 = arith.constant 0 : i32
    return %c0_i32, %c0_i32_0 : i32, i32
  }
  func.func @transform_6(%arg0: i32, %arg1: i32) -> (i32, i32) {
    %c0_i32 = arith.constant 0 : i32
    %c0_i32_0 = arith.constant 0 : i32
    %c0_i32_1 = arith.constant 0 : i32
    return %c0_i32, %c0_i32_0 : i32, i32
  }
  func.func @transform_7(%arg0: i32, %arg1: i32) -> (i32, i32) {
    %c0_i32 = arith.constant 0 : i32
    %c0_i32_0 = arith.constant 0 : i32
    %c0_i32_1 = arith.constant 0 : i32
    return %c0_i32, %c0_i32_0 : i32, i32
  }
  func.func @transform_8(%arg0: i32, %arg1: i32) -> (i32, i32, i32) {
    %c0_i32 = arith.constant 0 : i32
    %c0_i32_0 = arith.constant 0 : i32
    %c0_i32_1 = arith.constant 0 : i32
    return %arg0, %c0_i32, %c0_i32_0 : i32, i32, i32
  }
  func.func @transform_9(%arg0: i32, %arg1: i32) -> (i32, i32, i32) {
    %c0_i32 = arith.constant 0 : i32
    %c0_i32_0 = arith.constant 0 : i32
    %c0_i32_1 = arith.constant 0 : i32
    return %arg0, %c0_i32, %c0_i32_0 : i32, i32, i32
  }
}

module attributes {stable_mosaic.version = 11 : i64} {
  func.func @_final_kernel(%arg0: i32, %arg1: i32, %arg2: memref<1x3x16xf32, #tpu.memory_space<vmem>>, %arg3: memref<32x3xf32, #tpu.memory_space<vmem>>, %arg4: memref<32x1xf32, #tpu.memory_space<vmem>>, %arg5: memref<32x1xf32, #tpu.memory_space<vmem>>, %arg6: memref<64x32xf32, #tpu.memory_space<vmem>>, %arg7: memref<64x1xf32, #tpu.memory_space<vmem>>, %arg8: memref<64x1xf32, #tpu.memory_space<vmem>>, %arg9: memref<128x64xf32, #tpu.memory_space<vmem>>, %arg10: memref<128x1xf32, #tpu.memory_space<vmem>>, %arg11: memref<128x1xf32, #tpu.memory_space<vmem>>, %arg12: memref<3x128xf32, #tpu.memory_space<vmem>>, %arg13: memref<3x1xf32, #tpu.memory_space<vmem>>, %arg14: memref<1x3x16xf32, #tpu.memory_space<vmem>>, %arg15: memref<1x1x16xf32, #tpu.memory_space<vmem>>) attributes {dimension_semantics = [#tpu.dimension_semantics<parallel>, #tpu.dimension_semantics<parallel>], iteration_bounds = array<i64: 2, 1>, scalar_prefetch = 0 : i64, scratch_operands = 0 : i64, tpu.core_type = #tpu.core_type<tc>, window_params = [{transform_indices = @transform_0, window_bounds = array<i64: 1, 3, 16>}, {pipeline_mode = #tpu.pipeline_mode<synchronous>, transform_indices = @transform_1, window_bounds = array<i64: 32, 3>}, {pipeline_mode = #tpu.pipeline_mode<synchronous>, transform_indices = @transform_2, window_bounds = array<i64: 32, 1>}, {pipeline_mode = #tpu.pipeline_mode<synchronous>, transform_indices = @transform_3, window_bounds = array<i64: 32, 1>}, {pipeline_mode = #tpu.pipeline_mode<synchronous>, transform_indices = @transform_4, window_bounds = array<i64: 64, 32>}, {pipeline_mode = #tpu.pipeline_mode<synchronous>, transform_indices = @transform_5, window_bounds = array<i64: 64, 1>}, {pipeline_mode = #tpu.pipeline_mode<synchronous>, transform_indices = @transform_6, window_bounds = array<i64: 64, 1>}, {pipeline_mode = #tpu.pipeline_mode<synchronous>, transform_indices = @transform_7, window_bounds = array<i64: 128, 64>}, {pipeline_mode = #tpu.pipeline_mode<synchronous>, transform_indices = @transform_8, window_bounds = array<i64: 128, 1>}, {pipeline_mode = #tpu.pipeline_mode<synchronous>, transform_indices = @transform_9, window_bounds = array<i64: 128, 1>}, {pipeline_mode = #tpu.pipeline_mode<synchronous>, transform_indices = @transform_10, window_bounds = array<i64: 3, 128>}, {pipeline_mode = #tpu.pipeline_mode<synchronous>, transform_indices = @transform_11, window_bounds = array<i64: 3, 1>}, {transform_indices = @transform_12, window_bounds = array<i64: 1, 3, 16>}, {transform_indices = @transform_13, window_bounds = array<i64: 1, 1, 16>}]} {
    %c0 = arith.constant 0 : index
    %c0_0 = arith.constant 0 : index
    %0 = vector.load %arg3[%c0, %c0_0] : memref<32x3xf32, #tpu.memory_space<vmem>>, vector<32x3xf32>
    %c0_1 = arith.constant 0 : index
    %c0_2 = arith.constant 0 : index
    %1 = vector.load %arg4[%c0_1, %c0_2] : memref<32x1xf32, #tpu.memory_space<vmem>>, vector<32x1xf32>
    %c0_3 = arith.constant 0 : index
    %c0_4 = arith.constant 0 : index
    %2 = vector.load %arg5[%c0_3, %c0_4] : memref<32x1xf32, #tpu.memory_space<vmem>>, vector<32x1xf32>
    %c0_5 = arith.constant 0 : index
    %c0_6 = arith.constant 0 : index
    %3 = vector.load %arg6[%c0_5, %c0_6] : memref<64x32xf32, #tpu.memory_space<vmem>>, vector<64x32xf32>
    %c0_7 = arith.constant 0 : index
    %c0_8 = arith.constant 0 : index
    %4 = vector.load %arg7[%c0_7, %c0_8] : memref<64x1xf32, #tpu.memory_space<vmem>>, vector<64x1xf32>
    %c0_9 = arith.constant 0 : index
    %c0_10 = arith.constant 0 : index
    %5 = vector.load %arg8[%c0_9, %c0_10] : memref<64x1xf32, #tpu.memory_space<vmem>>, vector<64x1xf32>
    %c0_11 = arith.constant 0 : index
    %c0_12 = arith.constant 0 : index
    %6 = vector.load %arg9[%c0_11, %c0_12] : memref<128x64xf32, #tpu.memory_space<vmem>>, vector<128x64xf32>
    %c0_13 = arith.constant 0 : index
    %c0_14 = arith.constant 0 : index
    %7 = vector.load %arg10[%c0_13, %c0_14] : memref<128x1xf32, #tpu.memory_space<vmem>>, vector<128x1xf32>
    %c0_15 = arith.constant 0 : index
    %c0_16 = arith.constant 0 : index
    %8 = vector.load %arg11[%c0_15, %c0_16] : memref<128x1xf32, #tpu.memory_space<vmem>>, vector<128x1xf32>
    %c0_17 = arith.constant 0 : index
    %c0_18 = arith.constant 0 : index
    %9 = vector.load %arg12[%c0_17, %c0_18] : memref<3x128xf32, #tpu.memory_space<vmem>>, vector<3x128xf32>
    %c0_19 = arith.constant 0 : index
    %c0_20 = arith.constant 0 : index
    %c0_21 = arith.constant 0 : index
    %10 = vector.load %arg2[%c0_19, %c0_20, %c0_21] : memref<1x3x16xf32, #tpu.memory_space<vmem>>, vector<1x3x16xf32>
    %11 = vector.shape_cast %10 : vector<1x3x16xf32> to vector<3x16xf32>
    %12 = vector.extract_strided_slice %0 {offsets = [0, 0], sizes = [32, 1], strides = [1, 1]} : vector<32x3xf32> to vector<32x1xf32>
    %13 = vector.extract_strided_slice %11 {offsets = [0, 0], sizes = [1, 16], strides = [1, 1]} : vector<3x16xf32> to vector<1x16xf32>
    %14 = vector.broadcast %12 : vector<32x1xf32> to vector<32x16xf32>
    %15 = vector.broadcast %13 : vector<1x16xf32> to vector<32x16xf32>
    %16 = arith.mulf %14, %15 : vector<32x16xf32>
    %17 = vector.extract_strided_slice %0 {offsets = [0, 1], sizes = [32, 1], strides = [1, 1]} : vector<32x3xf32> to vector<32x1xf32>
    %18 = vector.extract_strided_slice %11 {offsets = [1, 0], sizes = [1, 16], strides = [1, 1]} : vector<3x16xf32> to vector<1x16xf32>
    %19 = vector.broadcast %17 : vector<32x1xf32> to vector<32x16xf32>
    %20 = vector.broadcast %18 : vector<1x16xf32> to vector<32x16xf32>
    %21 = arith.mulf %19, %20 : vector<32x16xf32>
    %22 = arith.addf %16, %21 : vector<32x16xf32>
    %23 = vector.extract_strided_slice %0 {offsets = [0, 2], sizes = [32, 1], strides = [1, 1]} : vector<32x3xf32> to vector<32x1xf32>
    %24 = vector.extract_strided_slice %11 {offsets = [2, 0], sizes = [1, 16], strides = [1, 1]} : vector<3x16xf32> to vector<1x16xf32>
    %25 = vector.broadcast %23 : vector<32x1xf32> to vector<32x16xf32>
    %26 = vector.broadcast %24 : vector<1x16xf32> to vector<32x16xf32>
    %27 = arith.mulf %25, %26 : vector<32x16xf32>
    %28 = arith.addf %22, %27 : vector<32x16xf32>
    %29 = vector.broadcast %1 : vector<32x1xf32> to vector<32x16xf32>
    %30 = arith.mulf %28, %29 : vector<32x16xf32>
    %31 = vector.broadcast %2 : vector<32x1xf32> to vector<32x16xf32>
    %32 = arith.addf %30, %31 : vector<32x16xf32>
    %cst = arith.constant 0.000000e+00 : f32
    %33 = vector.broadcast %cst : f32 to vector<32x16xf32>
    %34 = arith.maximumf %32, %33 : vector<32x16xf32>
    %cst_22 = arith.constant dense<0.000000e+00> : vector<64x16xf32>
    %35 = tpu.matmul %3, %34, %cst_22 {dimension_numbers = #tpu.dot_dimension_numbers<[1], [0], [0], [1], [0, 0, 1, 1], [], []>} : vector<64x32xf32>, vector<32x16xf32>, vector<64x16xf32> -> vector<64x16xf32>
    %36 = vector.broadcast %4 : vector<64x1xf32> to vector<64x16xf32>
    %37 = arith.mulf %35, %36 : vector<64x16xf32>
    %38 = vector.broadcast %5 : vector<64x1xf32> to vector<64x16xf32>
    %39 = arith.addf %37, %38 : vector<64x16xf32>
    %cst_23 = arith.constant 0.000000e+00 : f32
    %40 = vector.broadcast %cst_23 : f32 to vector<64x16xf32>
    %41 = arith.maximumf %39, %40 : vector<64x16xf32>
    %cst_24 = arith.constant dense<0.000000e+00> : vector<128x16xf32>
    %42 = tpu.matmul %6, %41, %cst_24 {dimension_numbers = #tpu.dot_dimension_numbers<[1], [0], [0], [1], [0, 0, 1, 1], [], []>} : vector<128x64xf32>, vector<64x16xf32>, vector<128x16xf32> -> vector<128x16xf32>
    %43 = vector.broadcast %7 : vector<128x1xf32> to vector<128x16xf32>
    %44 = arith.mulf %42, %43 : vector<128x16xf32>
    %45 = vector.broadcast %8 : vector<128x1xf32> to vector<128x16xf32>
    %46 = arith.addf %44, %45 : vector<128x16xf32>
    %cst_25 = arith.constant 0.000000e+00 : f32
    %47 = vector.broadcast %cst_25 : f32 to vector<128x16xf32>
    %48 = arith.maximumf %46, %47 : vector<128x16xf32>
    %cst_26 = arith.constant dense<0.000000e+00> : vector<3x16xf32>
    %49 = tpu.matmul %9, %48, %cst_26 {dimension_numbers = #tpu.dot_dimension_numbers<[1], [0], [0], [1], [0, 0, 1, 1], [], []>} : vector<3x128xf32>, vector<128x16xf32>, vector<3x16xf32> -> vector<3x16xf32>
    %c0_27 = arith.constant 0 : index
    %c0_28 = arith.constant 0 : index
    %50 = vector.load %arg13[%c0_27, %c0_28] : memref<3x1xf32, #tpu.memory_space<vmem>>, vector<3x1xf32>
    %51 = vector.broadcast %50 : vector<3x1xf32> to vector<3x16xf32>
    %52 = arith.addf %49, %51 : vector<3x16xf32>
    %53 = vector.shape_cast %52 : vector<3x16xf32> to vector<1x3x16xf32>
    %c0_29 = arith.constant 0 : index
    %c0_30 = arith.constant 0 : index
    %c0_31 = arith.constant 0 : index
    %54 = vector.load %arg14[%c0_29, %c0_30, %c0_31] : memref<1x3x16xf32, #tpu.memory_space<vmem>>, vector<1x3x16xf32>
    tpu.vector_store %arg14[%c0_29, %c0_30, %c0_31], %53 {strides = array<i32>} : memref<1x3x16xf32, #tpu.memory_space<vmem>>, vector<1x3x16xf32>,
    %cst_32 = arith.constant dense<0xFF800000> : vector<16xf32>
    %55 = vector.multi_reduction <maximumf>, %52, %cst_32 [0] : vector<3x16xf32> to vector<16xf32>
    %56 = vector.shape_cast %55 : vector<16xf32> to vector<1x16xf32>
    %57 = vector.shape_cast %56 : vector<1x16xf32> to vector<1x1x16xf32>
    %c0_33 = arith.constant 0 : index
    %c0_34 = arith.constant 0 : index
    %c0_35 = arith.constant 0 : index
    %58 = vector.load %arg15[%c0_33, %c0_34, %c0_35] : memref<1x1x16xf32, #tpu.memory_space<vmem>>, vector<1x1x16xf32>
    tpu.vector_store %arg15[%c0_33, %c0_34, %c0_35], %57 {strides = array<i32>} : memref<1x1x16xf32, #tpu.memory_space<vmem>>, vector<1x1x16xf32>,
    return
  }
  func.func @transform_0(%arg0: i32, %arg1: i32) -> (i32, i32, i32) {
    %c0_i32 = arith.constant 0 : i32
    %c0_i32_0 = arith.constant 0 : i32
    return %arg0, %c0_i32, %arg1 : i32, i32, i32
  }
  func.func @transform_1(%arg0: i32, %arg1: i32) -> (i32, i32) {
    %c0_i32 = arith.constant 0 : i32
    %c0_i32_0 = arith.constant 0 : i32
    %c0_i32_1 = arith.constant 0 : i32
    return %c0_i32, %c0_i32_0 : i32, i32
  }
  func.func @transform_2(%arg0: i32, %arg1: i32) -> (i32, i32) {
    %c0_i32 = arith.constant 0 : i32
    %c0_i32_0 = arith.constant 0 : i32
    %c0_i32_1 = arith.constant 0 : i32
    return %c0_i32, %c0_i32_0 : i32, i32
  }
  func.func @transform_3(%arg0: i32, %arg1: i32) -> (i32, i32) {
    %c0_i32 = arith.constant 0 : i32
    %c0_i32_0 = arith.constant 0 : i32
    %c0_i32_1 = arith.constant 0 : i32
    return %c0_i32, %c0_i32_0 : i32, i32
  }
  func.func @transform_4(%arg0: i32, %arg1: i32) -> (i32, i32) {
    %c0_i32 = arith.constant 0 : i32
    %c0_i32_0 = arith.constant 0 : i32
    %c0_i32_1 = arith.constant 0 : i32
    return %c0_i32, %c0_i32_0 : i32, i32
  }
  func.func @transform_5(%arg0: i32, %arg1: i32) -> (i32, i32) {
    %c0_i32 = arith.constant 0 : i32
    %c0_i32_0 = arith.constant 0 : i32
    %c0_i32_1 = arith.constant 0 : i32
    return %c0_i32, %c0_i32_0 : i32, i32
  }
  func.func @transform_6(%arg0: i32, %arg1: i32) -> (i32, i32) {
    %c0_i32 = arith.constant 0 : i32
    %c0_i32_0 = arith.constant 0 : i32
    %c0_i32_1 = arith.constant 0 : i32
    return %c0_i32, %c0_i32_0 : i32, i32
  }
  func.func @transform_7(%arg0: i32, %arg1: i32) -> (i32, i32) {
    %c0_i32 = arith.constant 0 : i32
    %c0_i32_0 = arith.constant 0 : i32
    %c0_i32_1 = arith.constant 0 : i32
    return %c0_i32, %c0_i32_0 : i32, i32
  }
  func.func @transform_8(%arg0: i32, %arg1: i32) -> (i32, i32) {
    %c0_i32 = arith.constant 0 : i32
    %c0_i32_0 = arith.constant 0 : i32
    %c0_i32_1 = arith.constant 0 : i32
    return %c0_i32, %c0_i32_0 : i32, i32
  }
  func.func @transform_9(%arg0: i32, %arg1: i32) -> (i32, i32) {
    %c0_i32 = arith.constant 0 : i32
    %c0_i32_0 = arith.constant 0 : i32
    %c0_i32_1 = arith.constant 0 : i32
    return %c0_i32, %c0_i32_0 : i32, i32
  }
  func.func @transform_10(%arg0: i32, %arg1: i32) -> (i32, i32) {
    %c0_i32 = arith.constant 0 : i32
    %c0_i32_0 = arith.constant 0 : i32
    %c0_i32_1 = arith.constant 0 : i32
    return %c0_i32, %c0_i32_0 : i32, i32
  }
  func.func @transform_11(%arg0: i32, %arg1: i32) -> (i32, i32) {
    %c0_i32 = arith.constant 0 : i32
    %c0_i32_0 = arith.constant 0 : i32
    %c0_i32_1 = arith.constant 0 : i32
    return %c0_i32, %c0_i32_0 : i32, i32
  }
  func.func @transform_12(%arg0: i32, %arg1: i32) -> (i32, i32, i32) {
    %c0_i32 = arith.constant 0 : i32
    %c0_i32_0 = arith.constant 0 : i32
    return %arg0, %c0_i32, %arg1 : i32, i32, i32
  }
  func.func @transform_13(%arg0: i32, %arg1: i32) -> (i32, i32, i32) {
    %c0_i32 = arith.constant 0 : i32
    %c0_i32_0 = arith.constant 0 : i32
    return %arg0, %c0_i32, %arg1 : i32, i32, i32
  }
}

</mosaic_0001>

<bundles_post_ra>
// kernel: pointnet_forward.4
= control target key start
LH: loop header
LB: loop body
LE: loop exit
PB: predicated region body
PF: predicated region fallthrough
CT: control target
= control target key end

     0   :  { %s555_s12 = smov 0   ;;  %s557_s13 = smov 0   ;;  %s659_s0 = inlined_call_operand.vmem [shape: f32[2,3,16], index: 0, kind: input, shape index: {}]   ;;  %s660_s1 = inlined_call_operand.vmem [shape: f32[32,3], index: 1, kind: input, shape index: {}]   ;;  %s661_s2 = inlined_call_operand.vmem [shape: f32[2,32,1], index: 2, kind: output, shape index: {0}]   ;;  %s662_s3 = inlined_call_operand.vmem [shape: f32[2,32,1], index: 3, kind: output, shape index: {1}]  }
   0x1   :  { %s559_s14 = smov 0  }
   0x2 LB: > { %s26_s15 = sadd.s32 1, %s525_s13  ;;  %p463_p0 = scmp.ge.s32.totalorder %s529_s14, 1  ;;  %s529_s14 = sphi %s559_s14, %s14_s14   ;;  %s525_s13 = sphi %s557_s13, %s664_s13   ;;  %s521_s12 = sphi %s555_s12, %s663_s12  }
   0x3   : > { %p28_p1 = scmp.ge.s32.totalorder %s26_s15, 2  ;;  %p156_p2 = scmp.lt.s32.totalorder %s529_s14, 3 }
   0x5   : > { %s666_s15 = smov (%p28_p1, %s26_s15), 0  ;;  %p157_p3 = pnand %p463_p0, %p156_p2 }
   0x6   : > { %p187_p4 = scmp.lt.s32.totalorder (!%p157_p3), %s521_s12, 1 }
   0x7   : > { %160 = sbr.rel (%p157_p3) target bundleno = 318 (0x13e), region = 28 }
   0xc   : > { %v206_v0 = vld [vmem:[%s660_s1 + $0x10] sm:$0xff]  ;;  %v204_v1 = vld [vmem:[%s660_s1] sm:$0xff]  ;;  %v531_v2 = vmov 0   ;;  %v207_v3 = vld [vmem:[%s660_s1 + $0x18] sm:$0xff]  ;;  %v532_v5 = vmov 1   ;;  %v533_v6 = vmov 2   ;;  %v229_v10 = vlaneseq }
   0xd   : > { %502 = vset.pattern.permute.xlu1 %v531_v2  ;;  %501 = vset.pattern.permute.xlu0 %v531_v2  ;;  %v205_v4 = vld [vmem:[%s660_s1 + $0x8] sm:$0xff]  ;;  %s668_s12 = smov (!%p187_p4, %s521_s12), 1  ;;  %vm297_vm0 = vcmask 7168   ;;  %v534_v7 = vmov 0.0   ;;  %vm310_vm1 = vcmask 130048  }
   0xe   : > { %221 = vperm.xlu1 %502, %v206_v0   ;;  %211 = vperm.xlu0 %501, %v204_v1   ;;  %s471_s24 = sshll.u32 %s668_s12, 5  ;;  %s464_s4 = sshll.u32 %s668_s12, 2  ;;  %v230_v13 = vshrl.u32 %v229_v10, 7 }
   0xf   : > { %s592_s27 = scalar_lea.vmem %s661_s2, %s471_s24  ;;  %s597_s30 = scalar_lea.vmem %s662_s3, %s471_s24 }
  0x10   : > { %299 = vst.msk [vmem:[%s592_s27 + $0x8] sm:$0xff] %vm297_vm0, %v534_v7  ;;  %298 = vst.msk [vmem:[%s592_s27] sm:$0xff] %vm297_vm0, %v534_v7  ;;  %s193_s7 = scalar_lea.vmem %s659_s0, %s464_s4  ;;  %v255_v14 = vsub.s32 1, %v230_v13  ;;  %v231_v18 = vsub.s32 0, %v230_v13  ;;  %v283_v20 = vsub.s32 2, %v230_v13 }
  0x11   : > { %300 = vst.msk [vmem:[%s592_s27 + $0x10] sm:$0xff] %vm297_vm0, %v534_v7  ;;  %301 = vst.msk [vmem:[%s592_s27 + $0x18] sm:$0xff] %vm297_vm0, %v534_v7  ;;  %v208_v17 = vld [vmem:[%s193_s7] sm:$0x7] }
  0x12   : > { %226 = vperm.xlu1 %502, %v207_v3   ;;  %216 = vperm.xlu0 %501, %v205_v4   ;;  %302 = vst.msk [vmem:[%s597_s30] sm:$0xff] %vm297_vm0, %v534_v7  ;;  %303 = vst.msk [vmem:[%s597_s30 + $0x8] sm:$0xff] %vm297_vm0, %v534_v7  ;;  %v256_v19 = vrot.slane %v208_v17, %v255_v14  ;;  %v232_v23 = vrot.slane %v208_v17, %v231_v18 }
  0x13   : > { %304 = vst.msk [vmem:[%s597_s30 + $0x10] sm:$0xff] %vm297_vm0, %v534_v7  ;;  %305 = vst.msk [vmem:[%s597_s30 + $0x18] sm:$0xff] %vm297_vm0, %v534_v7  ;;  %v284_v26 = vrot.slane %v208_v17, %v283_v20 }
  0x16   : > { %504 = vset.pattern.permute.xlu1 %v532_v5  ;;  %503 = vset.pattern.permute.xlu0 %v532_v5 }
  0x17   : > { %242 = vperm.xlu1 %504, %v205_v4   ;;  %238 = vperm.xlu0 %503, %v204_v1   ;;  %v307_v61 = vld [vmem:[%s592_s27 + $0x8] sm:$0xff]  ;;  %v306_v62 = vld [vmem:[%s592_s27] sm:$0xff] }
  0x18   : > { %v309_v10 = vld [vmem:[%s592_s27 + $0x18] sm:$0xff] }
  0x1a   : > { %v335_v18 = vld [vmem:[%s597_s30 + $0x18] sm:$0xff] }
  0x1b   : > { %246 = vperm.xlu1 %504, %v206_v0   ;;  %250 = vperm.xlu0 %503, %v207_v3  }
  0x1f   : > { %505 = vset.pattern.permute.xlu1 %v533_v6  ;;  %506 = vset.pattern.permute.xlu0 %v533_v6 }
  0x20   : > { %266 = vperm.xlu1 %505, %v204_v1   ;;  %270 = vperm.xlu0 %506, %v205_v4   ;;  %v308_v4 = vld [vmem:[%s592_s27 + $0x10] sm:$0xff] }
  0x24   : > { %274 = vperm.xlu1 %505, %v206_v0  }
  0x28   : > { %278 = vperm.xlu1 %505, %v207_v3   ;;  %v332_v3 = vld [vmem:[%s597_s30] sm:$0xff] }
  0x89   : > { %v222_v8 = vpop.permute.xlu1 %221  ;;  %v212_v9 = vpop.permute.xlu0 %211 }
  0x8a   : > { %v233_v27 = vmul.f32 %v232_v23, %v212_v9  ;;  %v235_v36 = vmul.f32 %v232_v23, %v222_v8  ;;  %v334_v9 = vld [vmem:[%s597_s30 + $0x10] sm:$0xff] }
  0x8d   : > { %v227_v11 = vpop.permute.xlu1 %226  ;;  %v217_v12 = vpop.permute.xlu0 %216 }
  0x8e   : > { %v234_v28 = vmul.f32 %v232_v23, %v217_v12  ;;  %v236_v46 = vmul.f32 %v232_v23, %v227_v11 }
  0x92   : > { %v243_v15 = vpop.permute.xlu1 %242  ;;  %v239_v16 = vpop.permute.xlu0 %238 }
  0x93   : > { %v258_v24 = vmul.f32 %v256_v19, %v243_v15  ;;  %v257_v25 = vmul.f32 %v256_v19, %v239_v16  ;;  %v333_v15 = vld [vmem:[%s597_s30 + $0x8] sm:$0xff] }
  0x95   : > { %v262_v32 = vadd.f32 %v258_v24, %v234_v28  ;;  %v261_v33 = vadd.f32 %v257_v25, %v233_v27 }
  0x96   : > { %v247_v21 = vpop.permute.xlu1 %246  ;;  %v251_v22 = vpop.permute.xlu0 %250 }
  0x97   : > { %v259_v29 = vmul.f32 %v256_v19, %v247_v21  ;;  %v260_v40 = vmul.f32 %v256_v19, %v251_v22 }
  0x99   : > { %v263_v39 = vadd.f32 %v259_v29, %v235_v36  ;;  %v264_v48 = vadd.f32 %v260_v40, %v236_v46 }
  0x9b   : > { %v267_v30 = vpop.permute.xlu1 %266  ;;  %v271_v31 = vpop.permute.xlu0 %270 }
  0x9c   : > { %v285_v34 = vmul.f32 %v284_v26, %v267_v30  ;;  %v286_v35 = vmul.f32 %v284_v26, %v271_v31 }
  0x9e   : > { %v290_v37 = vadd.f32 %v286_v35, %v262_v32  ;;  %v289_v38 = vadd.f32 %v285_v34, %v261_v33 }
  0x9f   : > { %v275_v41 = vpop.permute.xlu1 %274 }
  0xa0   : > { %v287_v42 = vmul.f32 %v284_v26, %v275_v41  ;;  %v314_v43 = vsel %vm310_vm1, %v290_v37, 0.0  ;;  %v311_v44 = vsel %vm310_vm1, %v289_v38, 0.0  ;;  %v336_v45 = vmul.f32 %v289_v38, %v289_v38 }
  0xa1   : > { %315 = vadd.xlane.f32.xlu1 %v314_v43  ;;  %312 = vadd.xlane.f32.xlu0 %v311_v44  ;;  %v337_v57 = vmul.f32 %v290_v37, %v290_v37 }
  0xa2   : > { %v291_v47 = vadd.f32 %v287_v42, %v263_v39  ;;  %v340_v51 = vsel %vm310_vm1, %v336_v45, 0.0 }
  0xa3   : > { %v279_v49 = vpop.permute.xlu1 %278  ;;  %v343_v58 = vsel %vm310_vm1, %v337_v57, 0.0 }
  0xa4   : > { %v288_v50 = vmul.f32 %v284_v26, %v279_v49  ;;  %v317_v52 = vsel %vm310_vm1, %v291_v47, 0.0  ;;  %v338_v53 = vmul.f32 %v291_v47, %v291_v47 }
  0xa5   : > { %341 = vadd.xlane.f32.xlu1 %v340_v51  ;;  %318 = vadd.xlane.f32.xlu0 %v317_v52 }
  0xa6   : > { %v292_v54 = vadd.f32 %v288_v50, %v264_v48  ;;  %v346_v55 = vsel %vm310_vm1, %v338_v53, 0.0 }
  0xa8   : > { %v320_v56 = vsel %vm310_vm1, %v292_v54, 0.0  ;;  %v339_v59 = vmul.f32 %v292_v54, %v292_v54 }
  0xa9   : > { %347 = vadd.xlane.f32.xlu1 %v346_v55  ;;  %321 = vadd.xlane.f32.xlu0 %v320_v56 }
  0xaa   : > { %v349_v60 = vsel %vm310_vm1, %v339_v59, 0.0 }
  0xad   : > { %344 = vadd.xlane.f32.xlu0 %v343_v58 }
  0xb1   : > { %350 = vadd.xlane.f32.xlu0 %v349_v60 }
 0x12a   : > { %v316_v63 = vpop.xlane.xlu1 %315  ;;  %v313_v0 = vpop.xlane.xlu0 %312 }
 0x12b   : > { %v324_v1 = vadd.f32 %v316_v63, %v307_v61  ;;  %v323_v2 = vadd.f32 %v313_v0, %v306_v62 }
 0x12d   : > { %329 = vst.msk [vmem:[%s592_s27 + $0x8] sm:$0xff] %vm297_vm0, %v324_v1  ;;  %328 = vst.msk [vmem:[%s592_s27] sm:$0xff] %vm297_vm0, %v323_v2 }
 0x12e   : > { %v342_v5 = vpop.xlane.xlu1 %341  ;;  %v319_v6 = vpop.xlane.xlu0 %318 }
 0x12f   : > { %v352_v7 = vadd.f32 %v342_v5, %v332_v3  ;;  %v325_v8 = vadd.f32 %v319_v6, %v308_v4 }
 0x131   : > { %356 = vst.msk [vmem:[%s597_s30] sm:$0xff] %vm297_vm0, %v352_v7  ;;  %330 = vst.msk [vmem:[%s592_s27 + $0x10] sm:$0xff] %vm297_vm0, %v325_v8 }
 0x132   : > { %v348_v11 = vpop.xlane.xlu1 %347  ;;  %v322_v12 = vpop.xlane.xlu0 %321 }
 0x133   : > { %v354_v13 = vadd.f32 %v348_v11, %v334_v9  ;;  %v326_v14 = vadd.f32 %v322_v12, %v309_v10 }
 0x135   : > { %358 = vst.msk [vmem:[%s597_s30 + $0x10] sm:$0xff] %vm297_vm0, %v354_v13  ;;  %331 = vst.msk [vmem:[%s592_s27 + $0x18] sm:$0xff] %vm297_vm0, %v326_v14 }
 0x136   : > { %v345_v16 = vpop.xlane.xlu0 %344 }
 0x137   : > { %v353_v17 = vadd.f32 %v345_v16, %v333_v15 }
 0x139   : > { %357 = vst.msk [vmem:[%s597_s30 + $0x8] sm:$0xff] %vm297_vm0, %v353_v17 }
 0x13a   : > { %v351_v19 = vpop.xlane.xlu0 %350 }
 0x13b   : > { %v355_v20 = vadd.f32 %v351_v19, %v335_v18 }
 0x13d   : > { %359 = vst.msk [vmem:[%s597_s30 + $0x18] sm:$0xff] %vm297_vm0, %v355_v20 }
 0x13e PF: > { %s14_s14 = sadd.s32 1, %s529_s14   ;;  %s663_s12 = smov %s525_s13 }
 0x13f   : > { %p11_p5 = scmp.ge.s32.totalorder %s14_s14, 4   ;;  %s664_s13 = smov %s666_s15 }
 0x141   :  { %13 = sbr.rel (!%p11_p5) target bundleno = 2 (0x2), region = 74 }

// kernel: pointnet_forward.5
= control target key start
LH: loop header
LB: loop body
LE: loop exit
PB: predicated region body
PF: predicated region fallthrough
CT: control target
= control target key end

     0   :  { %s963_s21 = smov 0   ;;  %s965_s22 = smov 0   ;;  %s1175_s0 = inlined_call_operand.vmem [shape: f32[2,3,16], index: 0, kind: input, shape index: {}]   ;;  %s1176_s1 = inlined_call_operand.vmem [shape: f32[32,3], index: 1, kind: input, shape index: {}]   ;;  %s1177_s2 = inlined_call_operand.vmem [shape: f32[32,1], index: 2, kind: input, shape index: {}]   ;;  %s1178_s3 = inlined_call_operand.vmem [shape: f32[32,1], index: 3, kind: input, shape index: {}]   ;;  %s1179_s4 = inlined_call_operand.vmem [shape: f32[64,32], index: 4, kind: input, shape index: {}]   ;;  %s1180_s5 = inlined_call_operand.vmem [shape: f32[2,64,1], index: 5, kind: output, shape index: {0}]   ;;  %s1181_s6 = inlined_call_operand.vmem [shape: f32[2,64,1], index: 6, kind: output, shape index: {1}]  }
   0x1   :  { %s967_s23 = smov 0  }
   0x2 LB: > { %s29_s24 = sadd.s32 1, %s918_s22  ;;  %p802_p0 = scmp.ge.s32.totalorder %s922_s23, 1  ;;  %s922_s23 = sphi %s967_s23, %s17_s23   ;;  %s918_s22 = sphi %s965_s22, %s1183_s22   ;;  %s914_s21 = sphi %s963_s21, %s1182_s21  }
   0x3   : > { %p31_p1 = scmp.ge.s32.totalorder %s29_s24, 2  ;;  %p231_p2 = scmp.lt.s32.totalorder %s922_s23, 3 }
   0x5   : > { %s1185_s24 = smov (%p31_p1, %s29_s24), 0  ;;  %p232_p3 = pnand %p802_p0, %p231_p2 }
   0x6   : > { %p268_p4 = scmp.lt.s32.totalorder (!%p232_p3), %s914_s21, 1 }
   0x7   : > { %235 = sbr.rel (%p232_p3) target bundleno = 563 (0x233), region = 40 }
   0xc   : > { %v288_v0 = vld [vmem:[%s1176_s1 + $0x18] sm:$0xff]  ;;  %v287_v1 = vld [vmem:[%s1176_s1 + $0x10] sm:$0xff]  ;;  %v924_v2 = vmov 1   ;;  %v925_v3 = vmov 0   ;;  %v286_v4 = vld [vmem:[%s1176_s1 + $0x8] sm:$0xff]  ;;  %v926_v5 = vmov 2   ;;  %v326_v22 = vlaneseq }
   0xd   : > { %888 = vset.pattern.permute.xlu0 %v924_v2  ;;  %889 = vset.pattern.permute.xlu1 %v925_v3  ;;  %v285_v6 = vld [vmem:[%s1176_s1] sm:$0xff]  ;;  %v291_v7 = vld [vmem:[%s1177_s2 + $0x10] sm:$0xff]  ;;  %v294_v9 = vld [vmem:[%s1178_s3 + $0x8] sm:$0xff]  ;;  %vm442_vm0 = vcmask 261120   ;;  %s1187_s21 = smov (!%p268_p4, %s914_s21), 1  ;;  %vm576_vm1 = vcmask 7168  }
   0xe   : > { %347 = vperm.xlu0 %888, %v288_v0   ;;  %318 = vperm.xlu1 %889, %v287_v1   ;;  %v295_v8 = vld [vmem:[%s1178_s3 + $0x10] sm:$0xff]  ;;  %v292_v10 = vld [vmem:[%s1177_s2 + $0x18] sm:$0xff]  ;;  %v290_v12 = vld [vmem:[%s1177_s2 + $0x8] sm:$0xff]  ;;  %s803_s9 = sshll.u32 %s1187_s21, 2  ;;  %v327_v25 = vshrl.u32 %v326_v22, 7  ;;  %s818_s29 = sshll.u32 %s1187_s21, 6 }
   0xf   : > { %v296_v11 = vld [vmem:[%s1178_s3 + $0x18] sm:$0xff]  ;;  %v289_v13 = vld [vmem:[%s1177_s2] sm:$0xff]  ;;  %s274_s12 = scalar_lea.vmem %s1175_s0, %s803_s9  ;;  %s1063_s8 = scalar_lea.vmem %s1180_s5, %s818_s29  ;;  %vm601_vm2 = vcmask 130048  }
  0x10   : > { %v293_v14 = vld [vmem:[%s1178_s3] sm:$0xff]  ;;  %v352_v26 = vsub.s32 1, %v327_v25  ;;  %v328_v29 = vsub.s32 0, %v327_v25  ;;  %v380_v32 = vsub.s32 2, %v327_v25  ;;  %s1068_s11 = scalar_lea.vmem %s1181_s6, %s818_s29 }
  0x11   : > { %v297_v15 = vld [vmem:[%s1179_s4] sm:$0xff] }
  0x12   : > { %895 = vset.pattern.permute.xlu0 %v926_v5  ;;  %890 = vset.pattern.permute.xlu1 %v924_v2  ;;  %v301_v16 = vld [vmem:[%s1179_s4 + $0x20] sm:$0xff] }
  0x13   : > { %343 = vperm.xlu1 %890, %v287_v1   ;;  %367 = vperm.xlu0 %895, %v286_v4   ;;  %v305_v30 = vld [vmem:[%s274_s12] sm:$0x7] }
  0x14   : > { %840 = vmatprep.mubr.msk.f32.mxu0 %vm442_vm0, %v297_v15  ;;  %846 = vmatprep.mubr.msk.f32.mxu1 %vm442_vm0, %v301_v16  ;;  %v353_v31 = vrot.slane %v305_v30, %v352_v26  ;;  %v329_v33 = vrot.slane %v305_v30, %v328_v29  ;;  %v381_v37 = vrot.slane %v305_v30, %v380_v32  ;;  %v302_v15 = vld [vmem:[%s1179_s4 + $0x28] sm:$0xff]  ;;  %v299_v16 = vld [vmem:[%s1179_s4 + $0x10] sm:$0xff] }
  0x17   : > { %891 = vset.pattern.permute.xlu1 %v926_v5  ;;  %896 = vset.pattern.permute.xlu0 %v925_v3 }
  0x18   : > { %375 = vperm.xlu1 %891, %v288_v0   ;;  %323 = vperm.xlu0 %896, %v288_v0  }
  0x1c   : > { %892 = vset.pattern.permute.xlu1 %v924_v2  ;;  %313 = vperm.xlu0 %896, %v286_v4  }
  0x1d   : > { %339 = vperm.xlu1 %892, %v286_v4  }
  0x20   : > { %308 = vperm.xlu0 %896, %v285_v6  }
  0x21   : > { %893 = vset.pattern.permute.xlu1 %v926_v5 }
  0x22   : > { %371 = vperm.xlu1 %893, %v287_v1  }
  0x24   : > { %402 = vperm.xlu0 %896, %v291_v7  }
  0x26   : > { %894 = vset.pattern.permute.xlu1 %v924_v2 }
  0x27   : > { %335 = vperm.xlu1 %894, %v285_v6  }
  0x28   : > { %426 = vperm.xlu0 %896, %v295_v8  }
  0x2b   : > { %897 = vset.pattern.permute.xlu1 %v925_v3 }
  0x2c   : > { %421 = vperm.xlu0 %896, %v294_v9   ;;  %407 = vperm.xlu1 %897, %v292_v10  }
  0x30   : > { %898 = vset.pattern.permute.xlu1 %v926_v5 }
  0x31   : > { %363 = vperm.xlu1 %898, %v285_v6  }
  0x35   : > { %899 = vset.pattern.permute.xlu1 %v925_v3 }
  0x36   : > { %431 = vperm.xlu1 %899, %v296_v11  }
  0x3a   : > { %397 = vperm.xlu1 %899, %v290_v12  }
  0x3e   : > { %392 = vperm.xlu1 %899, %v289_v13  }
  0x42   : > { %416 = vperm.xlu1 %899, %v293_v14   ;;  %v298_v14 = vld [vmem:[%s1179_s4 + $0x8] sm:$0xff] }
  0x89   : > { %v319_v17 = vpop.permute.xlu1 %318  ;;  %v348_v18 = vpop.permute.xlu0 %347 }
  0x8a   : > { %v332_v38 = vmul.f32 %v329_v33, %v319_v17  ;;  %v357_v39 = vmul.f32 %v353_v31, %v348_v18  ;;  %v303_v17 = vld [vmem:[%s1179_s4 + $0x30] sm:$0xff]  ;;  %v300_v18 = vld [vmem:[%s1179_s4 + $0x18] sm:$0xff] }
  0x8e   : > { %v344_v19 = vpop.permute.xlu1 %343  ;;  %v368_v20 = vpop.permute.xlu0 %367 }
  0x8f   : > { %v356_v36 = vmul.f32 %v353_v31, %v344_v19  ;;  %v383_v54 = vmul.f32 %v381_v37, %v368_v20  ;;  %v304_v19 = vld [vmem:[%s1179_s4 + $0x38] sm:$0xff]  ;;  %v927_v20 = vmov 0.0  }
  0x90   : > { %582 = vst.msk [vmem:[%s1063_s8 + $0x28] sm:$0xff] %vm576_vm1, %v927_v20  ;;  %577 = vst.msk [vmem:[%s1063_s8] sm:$0xff] %vm576_vm1, %v927_v20 }
  0x91   : > { %v360_v43 = vadd.f32 %v356_v36, %v332_v38  ;;  %578 = vst.msk [vmem:[%s1063_s8 + $0x8] sm:$0xff] %vm576_vm1, %v927_v20  ;;  %579 = vst.msk [vmem:[%s1063_s8 + $0x10] sm:$0xff] %vm576_vm1, %v927_v20 }
  0x92   : > { %580 = vst.msk [vmem:[%s1063_s8 + $0x18] sm:$0xff] %vm576_vm1, %v927_v20  ;;  %581 = vst.msk [vmem:[%s1063_s8 + $0x20] sm:$0xff] %vm576_vm1, %v927_v20 }
  0x93   : > { %v376_v21 = vpop.permute.xlu1 %375  ;;  %v324_v23 = vpop.permute.xlu0 %323  ;;  %583 = vst.msk [vmem:[%s1063_s8 + $0x30] sm:$0xff] %vm576_vm1, %v927_v20  ;;  %584 = vst.msk [vmem:[%s1063_s8 + $0x38] sm:$0xff] %vm576_vm1, %v927_v20 }
  0x94   : > { %v333_v40 = vmul.f32 %v329_v33, %v324_v23  ;;  %v385_v47 = vmul.f32 %v381_v37, %v376_v21  ;;  %585 = vst.msk [vmem:[%s1068_s11] sm:$0xff] %vm576_vm1, %v927_v20  ;;  %586 = vst.msk [vmem:[%s1068_s11 + $0x8] sm:$0xff] %vm576_vm1, %v927_v20 }
  0x95   : > { %587 = vst.msk [vmem:[%s1068_s11 + $0x10] sm:$0xff] %vm576_vm1, %v927_v20  ;;  %588 = vst.msk [vmem:[%s1068_s11 + $0x18] sm:$0xff] %vm576_vm1, %v927_v20 }
  0x96   : > { %v361_v45 = vadd.f32 %v357_v39, %v333_v40  ;;  %589 = vst.msk [vmem:[%s1068_s11 + $0x20] sm:$0xff] %vm576_vm1, %v927_v20  ;;  %590 = vst.msk [vmem:[%s1068_s11 + $0x28] sm:$0xff] %vm576_vm1, %v927_v20 }
  0x97   : > { %v314_v27 = vpop.permute.xlu0 %313  ;;  %591 = vst.msk [vmem:[%s1068_s11 + $0x30] sm:$0xff] %vm576_vm1, %v927_v20  ;;  %592 = vst.msk [vmem:[%s1068_s11 + $0x38] sm:$0xff] %vm576_vm1, %v927_v20 }
  0x98   : > { %v340_v24 = vpop.permute.xlu1 %339  ;;  %v331_v48 = vmul.f32 %v329_v33, %v314_v27  ;;  %v389_v52 = vadd.f32 %v385_v47, %v361_v45 }
  0x99   : > { %v355_v49 = vmul.f32 %v353_v31, %v340_v24 }
  0x9b   : > { %v309_v35 = vpop.permute.xlu0 %308  ;;  %v359_v55 = vadd.f32 %v355_v49, %v331_v48 }
  0x9c   : > { %v330_v60 = vmul.f32 %v329_v33, %v309_v35  ;;  %v645_v20 = vld [vmem:[%s1068_s11 + $0x10] sm:$0xff] }
  0x9d   : > { %v372_v28 = vpop.permute.xlu1 %371  ;;  %v387_v63 = vadd.f32 %v383_v54, %v359_v55  ;;  %v594_v54 = vld [vmem:[%s1063_s8 + $0x8] sm:$0xff] }
  0x9e   : > { %v384_v41 = vmul.f32 %v381_v37, %v372_v28 }
  0x9f   : > { %v403_v44 = vpop.permute.xlu0 %402 }
  0xa0   : > { %v388_v46 = vadd.f32 %v384_v41, %v360_v43 }
  0xa2   : > { %v336_v34 = vpop.permute.xlu1 %335  ;;  %v412_v51 = vmul.f32 %v403_v44, %v388_v46 }
  0xa3   : > { %v427_v53 = vpop.permute.xlu0 %426  ;;  %v354_v61 = vmul.f32 %v353_v31, %v336_v34 }
  0xa4   : > { %v436_v58 = vadd.f32 %v427_v53, %v412_v51  ;;  %v598_v53 = vld [vmem:[%s1063_s8 + $0x28] sm:$0xff] }
  0xa5   : > { %v358_v5 = vadd.f32 %v354_v61, %v330_v60  ;;  %v593_v60 = vld [vmem:[%s1063_s8] sm:$0xff] }
  0xa6   : > { %v440_v1 = vmax.f32 %v436_v58, 0.0 }
  0xa7   : > { %v408_v42 = vpop.permute.xlu1 %407  ;;  %v422_v4 = vpop.permute.xlu0 %421 }
  0xa8   : > { %v413_v56 = vmul.f32 %v408_v42, %v389_v52 }
  0xac   : > { %v364_v50 = vpop.permute.xlu1 %363 }
  0xad   : > { %v382_v2 = vmul.f32 %v381_v37, %v364_v50 }
  0xaf   : > { %v386_v9 = vadd.f32 %v382_v2, %v358_v5  ;;  %v644_v2 = vld [vmem:[%s1068_s11 + $0x8] sm:$0xff] }
  0xb1   : > { %v432_v57 = vpop.permute.xlu1 %431 }
  0xb2   : > { %v437_v59 = vadd.f32 %v432_v57, %v413_v56 }
  0xb4   : > { %v441_v62 = vmax.f32 %v437_v59, 0.0  ;;  %v597_v59 = vld [vmem:[%s1063_s8 + $0x20] sm:$0xff] }
  0xb5   : > { %v398_v0 = vpop.permute.xlu1 %397 }
  0xb6   : > { %v411_v3 = vmul.f32 %v398_v0, %v387_v63  ;;  %832 = vmatprep.subr.mxu0 %v441_v62  ;;  %852 = vmatprep.subr.mxu1 %v441_v62 }
  0xb7   : > { %833 = vmatpush3.msra.mxu0 %v441_v62  ;;  %856 = vmatpush3.msra.mxu1 %v441_v62 }
  0xb8   : > { %v435_v6 = vadd.f32 %v422_v4, %v411_v3  ;;  %834 = vmatprep.subr.mxu0 %v440_v1  ;;  %853 = vmatprep.subr.mxu1 %v440_v1 }
  0xb9   : > { %v393_v7 = vpop.permute.xlu1 %392  ;;  %835 = vmatpush3.msra.mxu0 %v440_v1  ;;  %857 = vmatpush3.msra.mxu1 %v440_v1  ;;  %v643_v1 = vld [vmem:[%s1068_s11] sm:$0xff] }
  0xba   : > { %v439_v8 = vmax.f32 %v435_v6, 0.0  ;;  %v410_v10 = vmul.f32 %v393_v7, %v386_v9  ;;  %v647_v7 = vld [vmem:[%s1068_s11 + $0x20] sm:$0xff] }
  0xbc   : > { %836 = vmatprep.subr.mxu0 %v439_v8  ;;  %854 = vmatprep.subr.mxu1 %v439_v8 }
  0xbd   : > { %v417_v11 = vpop.permute.xlu1 %416  ;;  %837 = vmatpush3.msra.mxu0 %v439_v8  ;;  %858 = vmatpush3.msra.mxu1 %v439_v8  ;;  %v648_v8 = vld [vmem:[%s1068_s11 + $0x28] sm:$0xff] }
  0xbe   : > { %v434_v12 = vadd.f32 %v417_v11, %v410_v10 }
  0xc0   : > { %v438_v13 = vmax.f32 %v434_v12, 0.0 }
  0xc2   : > { %838 = vmatprep.subr.mxu0 %v438_v13  ;;  %855 = vmatprep.subr.mxu1 %v438_v13 }
  0xc3   : > { %839 = vmatpush3.msra.mxu0 %v438_v13  ;;  %859 = vmatpush3.msra.mxu1 %v438_v13  ;;  %v599_v13 = vld [vmem:[%s1063_s8 + $0x30] sm:$0xff] }
  0xc4   : > { %841 = vmatmul.mubr.msk.f32.vlgmr.msra.gmra.mxu0 %vm442_vm0, %v298_v14  ;;  %847 = vmatmul.mubr.msk.f32.vlgmr.msra.gmra.mxu1 %vm442_vm0, %v302_v15  ;;  %v596_v14 = vld [vmem:[%s1063_s8 + $0x18] sm:$0xff] }
  0xc5   : > { %843 = vmatprep.mubr.msk.f32.mxu0 %vm442_vm0, %v299_v16  ;;  %849 = vmatprep.mubr.msk.f32.mxu1 %vm442_vm0, %v303_v17 }
  0xc8   : > { %844 = vmatmul.mubr.msk.f32.gmra.mxu0 %vm442_vm0, %v300_v18  ;;  %850 = vmatmul.mubr.msk.f32.gmra.mxu1 %vm442_vm0, %v304_v19  ;;  %v600_v19 = vld [vmem:[%s1063_s8 + $0x38] sm:$0xff] }
 0x184   : > { %v842_v21 = vpop.f32.mrf.mxu0  ;;  %v848_v22 = vpop.f32.mrf.mxu1 }
 0x185   : > { %v617_v23 = vsel %vm601_vm2, %v848_v22, 0.0  ;;  %v605_v24 = vsel %vm601_vm2, %v842_v21, 0.0  ;;  %v652_v27 = vmul.f32 %v842_v21, %v842_v21  ;;  %v656_v32 = vmul.f32 %v848_v22, %v848_v22 }
 0x186   : > { %618 = vadd.xlane.f32.xlu0 %v617_v23  ;;  %v553_v25 = vpop.f32.mrf.mxu1  ;;  %606 = vadd.xlane.f32.xlu1 %v605_v24  ;;  %v533_v26 = vpop.f32.mrf.mxu0 }
 0x187   : > { %v651_v28 = vmul.f32 %v533_v26, %v533_v26  ;;  %v614_v29 = vsel %vm601_vm2, %v553_v25, 0.0  ;;  %v602_v30 = vsel %vm601_vm2, %v533_v26, 0.0  ;;  %v655_v33 = vmul.f32 %v553_v25, %v553_v25  ;;  %v649_v25 = vld [vmem:[%s1068_s11 + $0x30] sm:$0xff] }
 0x188   : > { %v851_v31 = vpop.f32.mrf.mxu1  ;;  %v662_v35 = vsel %vm601_vm2, %v652_v27, 0.0  ;;  %v845_v36 = vpop.f32.mrf.mxu0  ;;  %v674_v39 = vsel %vm601_vm2, %v656_v32, 0.0  ;;  %v595_v26 = vld [vmem:[%s1063_s8 + $0x10] sm:$0xff] }
 0x189   : > { %v659_v34 = vsel %vm601_vm2, %v651_v28, 0.0  ;;  %v671_v38 = vsel %vm601_vm2, %v655_v33, 0.0  ;;  %v611_v42 = vsel %vm601_vm2, %v845_v36, 0.0  ;;  %v623_v44 = vsel %vm601_vm2, %v851_v31, 0.0 }
 0x18a   : > { %615 = vadd.xlane.f32.xlu1 %v614_v29  ;;  %603 = vadd.xlane.f32.xlu0 %v602_v30  ;;  %v563_v37 = vpop.f32.mrf.mxu1  ;;  %v543_v40 = vpop.f32.mrf.mxu0  ;;  %v654_v47 = vmul.f32 %v845_v36, %v845_v36  ;;  %v658_v50 = vmul.f32 %v851_v31, %v851_v31  ;;  %v646_v31 = vld [vmem:[%s1068_s11 + $0x18] sm:$0xff] }
 0x18b   : > { %v620_v41 = vsel %vm601_vm2, %v563_v37, 0.0  ;;  %v653_v43 = vmul.f32 %v543_v40, %v543_v40  ;;  %v657_v45 = vmul.f32 %v563_v37, %v563_v37  ;;  %v608_v49 = vsel %vm601_vm2, %v543_v40, 0.0 }
 0x18c   : > { %v668_v51 = vsel %vm601_vm2, %v654_v47, 0.0  ;;  %v680_v52 = vsel %vm601_vm2, %v658_v50, 0.0 }
 0x18d   : > { %v665_v46 = vsel %vm601_vm2, %v653_v43, 0.0  ;;  %v677_v48 = vsel %vm601_vm2, %v657_v45, 0.0 }
 0x18e   : > { %660 = vadd.xlane.f32.xlu1 %v659_v34  ;;  %663 = vadd.xlane.f32.xlu0 %v662_v35  ;;  %v650_v34 = vld [vmem:[%s1068_s11 + $0x38] sm:$0xff] }
 0x192   : > { %672 = vadd.xlane.f32.xlu1 %v671_v38  ;;  %675 = vadd.xlane.f32.xlu0 %v674_v39 }
 0x196   : > { %621 = vadd.xlane.f32.xlu1 %v620_v41  ;;  %612 = vadd.xlane.f32.xlu0 %v611_v42 }
 0x19a   : > { %624 = vadd.xlane.f32.xlu0 %v623_v44  ;;  %666 = vadd.xlane.f32.xlu1 %v665_v46 }
 0x19e   : > { %678 = vadd.xlane.f32.xlu1 %v677_v48  ;;  %609 = vadd.xlane.f32.xlu0 %v608_v49 }
 0x1a2   : > { %669 = vadd.xlane.f32.xlu0 %v668_v51 }
 0x1a6   : > { %681 = vadd.xlane.f32.xlu0 %v680_v52 }
 0x20f   : > { %v619_v55 = vpop.xlane.xlu0 %618  ;;  %v607_v56 = vpop.xlane.xlu1 %606 }
 0x210   : > { %v631_v57 = vadd.f32 %v619_v55, %v598_v53  ;;  %v627_v58 = vadd.f32 %v607_v56, %v594_v54 }
 0x212   : > { %640 = vst.msk [vmem:[%s1063_s8 + $0x28] sm:$0xff] %vm576_vm1, %v631_v57  ;;  %636 = vst.msk [vmem:[%s1063_s8 + $0x8] sm:$0xff] %vm576_vm1, %v627_v58 }
 0x213   : > { %v616_v61 = vpop.xlane.xlu1 %615  ;;  %v604_v62 = vpop.xlane.xlu0 %603 }
 0x214   : > { %v630_v63 = vadd.f32 %v616_v61, %v597_v59  ;;  %v626_v0 = vadd.f32 %v604_v62, %v593_v60 }
 0x216   : > { %639 = vst.msk [vmem:[%s1063_s8 + $0x20] sm:$0xff] %vm576_vm1, %v630_v63  ;;  %635 = vst.msk [vmem:[%s1063_s8] sm:$0xff] %vm576_vm1, %v626_v0 }
 0x217   : > { %v661_v3 = vpop.xlane.xlu1 %660  ;;  %v664_v4 = vpop.xlane.xlu0 %663 }
 0x218   : > { %v683_v5 = vadd.f32 %v661_v3, %v643_v1  ;;  %v684_v6 = vadd.f32 %v664_v4, %v644_v2 }
 0x21a   : > { %691 = vst.msk [vmem:[%s1068_s11] sm:$0xff] %vm576_vm1, %v683_v5  ;;  %692 = vst.msk [vmem:[%s1068_s11 + $0x8] sm:$0xff] %vm576_vm1, %v684_v6 }
 0x21b   : > { %v673_v9 = vpop.xlane.xlu1 %672  ;;  %v676_v10 = vpop.xlane.xlu0 %675 }
 0x21c   : > { %v687_v11 = vadd.f32 %v673_v9, %v647_v7  ;;  %v688_v12 = vadd.f32 %v676_v10, %v648_v8 }
 0x21e   : > { %695 = vst.msk [vmem:[%s1068_s11 + $0x20] sm:$0xff] %vm576_vm1, %v687_v11  ;;  %696 = vst.msk [vmem:[%s1068_s11 + $0x28] sm:$0xff] %vm576_vm1, %v688_v12 }
 0x21f   : > { %v622_v15 = vpop.xlane.xlu1 %621  ;;  %v613_v16 = vpop.xlane.xlu0 %612 }
 0x220   : > { %v632_v17 = vadd.f32 %v622_v15, %v599_v13  ;;  %v629_v18 = vadd.f32 %v613_v16, %v596_v14 }
 0x222   : > { %641 = vst.msk [vmem:[%s1063_s8 + $0x30] sm:$0xff] %vm576_vm1, %v632_v17  ;;  %638 = vst.msk [vmem:[%s1063_s8 + $0x18] sm:$0xff] %vm576_vm1, %v629_v18 }
 0x223   : > { %v625_v21 = vpop.xlane.xlu0 %624  ;;  %v667_v22 = vpop.xlane.xlu1 %666 }
 0x224   : > { %v633_v23 = vadd.f32 %v625_v21, %v600_v19  ;;  %v685_v24 = vadd.f32 %v667_v22, %v645_v20 }
 0x226   : > { %642 = vst.msk [vmem:[%s1063_s8 + $0x38] sm:$0xff] %vm576_vm1, %v633_v23  ;;  %693 = vst.msk [vmem:[%s1068_s11 + $0x10] sm:$0xff] %vm576_vm1, %v685_v24 }
 0x227   : > { %v679_v27 = vpop.xlane.xlu1 %678  ;;  %v610_v28 = vpop.xlane.xlu0 %609 }
 0x228   : > { %v689_v29 = vadd.f32 %v679_v27, %v649_v25  ;;  %v628_v30 = vadd.f32 %v610_v28, %v595_v26 }
 0x22a   : > { %697 = vst.msk [vmem:[%s1068_s11 + $0x30] sm:$0xff] %vm576_vm1, %v689_v29  ;;  %637 = vst.msk [vmem:[%s1063_s8 + $0x10] sm:$0xff] %vm576_vm1, %v628_v30 }
 0x22b   : > { %v670_v32 = vpop.xlane.xlu0 %669 }
 0x22c   : > { %v686_v33 = vadd.f32 %v670_v32, %v646_v31 }
 0x22e   : > { %694 = vst.msk [vmem:[%s1068_s11 + $0x18] sm:$0xff] %vm576_vm1, %v686_v33 }
 0x22f   : > { %v682_v35 = vpop.xlane.xlu0 %681 }
 0x230   : > { %v690_v36 = vadd.f32 %v682_v35, %v650_v34 }
 0x232   : > { %698 = vst.msk [vmem:[%s1068_s11 + $0x38] sm:$0xff] %vm576_vm1, %v690_v36 }
 0x233 PF: > { %s17_s23 = sadd.s32 1, %s922_s23   ;;  %s1182_s21 = smov %s918_s22 }
 0x234   : > { %p14_p5 = scmp.ge.s32.totalorder %s17_s23, 4   ;;  %s1183_s22 = smov %s1185_s24 }
 0x236   :  { %16 = sbr.rel (!%p14_p5) target bundleno = 2 (0x2), region = 86 }

// kernel: pointnet_forward.6
= control target key start
LH: loop header
LB: loop body
LE: loop exit
PB: predicated region body
PF: predicated region fallthrough
CT: control target
= control target key end

     0   :  { %s1597_s30 = smov 0   ;;  %s1599_s10 = smov 0   ;;  %s2017_s0 = inlined_call_operand.vmem [shape: f32[2,3,16], index: 0, kind: input, shape index: {}]   ;;  %s2018_s1 = inlined_call_operand.vmem [shape: f32[32,3], index: 1, kind: input, shape index: {}]   ;;  %s2019_s2 = inlined_call_operand.vmem [shape: f32[32,1], index: 2, kind: input, shape index: {}]   ;;  %s2020_s3 = inlined_call_operand.vmem [shape: f32[32,1], index: 3, kind: input, shape index: {}]   ;;  %s2021_s4 = inlined_call_operand.vmem [shape: f32[64,32], index: 4, kind: input, shape index: {}]   ;;  %s2022_s5 = inlined_call_operand.vmem [shape: f32[64,1], index: 5, kind: input, shape index: {}]   ;;  %s2023_s6 = inlined_call_operand.vmem [shape: f32[64,1], index: 6, kind: input, shape index: {}]   ;;  %s2024_s7 = inlined_call_operand.vmem [shape: f32[128,64], index: 7, kind: input, shape index: {}]   ;;  %s2025_s8 = inlined_call_operand.vmem [shape: f32[2,128,1], index: 8, kind: output, shape index: {0}]   ;;  %s2026_s9 = inlined_call_operand.vmem [shape: f32[2,128,1], index: 9, kind: output, shape index: {1}]  }
   0x1   :  { %s1601_s11 = smov 0  }
   0x2 LB: > { %s32_s12 = sadd.s32 1, %s1537_s10  ;;  %p1333_p0 = scmp.ge.s32.totalorder %s1541_s11, 1  ;;  %s1541_s11 = sphi %s1601_s11, %s20_s11   ;;  %s1537_s10 = sphi %s1599_s10, %s2028_s10   ;;  %s1533_s30 = sphi %s1597_s30, %s2027_s30  }
   0x3   : > { %p34_p1 = scmp.ge.s32.totalorder %s32_s12, 2  ;;  %p306_p2 = scmp.lt.s32.totalorder %s1541_s11, 3 }
   0x5   : > { %s2030_s12 = smov (%p34_p1, %s32_s12), 0  ;;  %p307_p3 = pnand %p1333_p0, %p306_p2 }
   0x6   : > { %p349_p4 = scmp.lt.s32.totalorder (!%p307_p3), %s1533_s30, 1 }
   0x7   : > { %310 = sbr.rel (%p307_p3) target bundleno = 822 (0x336), region = 52 }
   0xc   : > { %v369_v0 = vld [vmem:[%s2018_s1 + $0x18] sm:$0xff]  ;;  %v368_v1 = vld [vmem:[%s2018_s1 + $0x10] sm:$0xff]  ;;  %v1543_v2 = vmov 1   ;;  %v1544_v3 = vmov 0   ;;  %v367_v4 = vld [vmem:[%s2018_s1 + $0x8] sm:$0xff]  ;;  %v1545_v5 = vmov 2   ;;  %v439_v37 = vlaneseq }
   0xd   : > { %1507 = vset.pattern.permute.xlu0 %v1543_v2  ;;  %1508 = vset.pattern.permute.xlu1 %v1544_v3  ;;  %v366_v6 = vld [vmem:[%s2018_s1] sm:$0xff]  ;;  %v372_v7 = vld [vmem:[%s2019_s2 + $0x10] sm:$0xff]  ;;  %v375_v9 = vld [vmem:[%s2020_s3 + $0x8] sm:$0xff]  ;;  %vm555_vm0 = vcmask 261120   ;;  %s2032_s30 = smov (!%p349_p4, %s1533_s30), 1  ;;  %vm789_vm1 = vcmask 523264  }
   0xe   : > { %460 = vperm.xlu0 %1507, %v369_v0   ;;  %431 = vperm.xlu1 %1508, %v368_v1   ;;  %v376_v8 = vld [vmem:[%s2020_s3 + $0x10] sm:$0xff]  ;;  %v373_v10 = vld [vmem:[%s2019_s2 + $0x18] sm:$0xff]  ;;  %v371_v15 = vld [vmem:[%s2019_s2 + $0x8] sm:$0xff]  ;;  %s1334_s20 = sshll.u32 %s2032_s30, 2  ;;  %v440_v40 = vshrl.u32 %v439_v37, 7  ;;  %s1365_s19 = sshll.u32 %s2032_s30, 7 }
   0xf   : > { %v393_v11 = vld [vmem:[%s2022_s5 + $0x38] sm:$0xff]  ;;  %v400_v14 = vld [vmem:[%s2023_s6 + $0x30] sm:$0xff]  ;;  %v399_v16 = vld [vmem:[%s2023_s6 + $0x28] sm:$0xff]  ;;  %s355_s23 = scalar_lea.vmem %s2017_s0, %s1334_s20  ;;  %s1809_s22 = scalar_lea.vmem %s2025_s8, %s1365_s19  ;;  %vm987_vm2 = vcmask 7168   ;;  %vm1036_vm3 = vcmask 130048  }
  0x10   : > { %v401_v12 = vld [vmem:[%s2023_s6 + $0x38] sm:$0xff]  ;;  %v370_v17 = vld [vmem:[%s2019_s2] sm:$0xff]  ;;  %v392_v22 = vld [vmem:[%s2022_s5 + $0x30] sm:$0xff]  ;;  %v465_v41 = vsub.s32 1, %v440_v40  ;;  %v441_v44 = vsub.s32 0, %v440_v40  ;;  %v493_v47 = vsub.s32 2, %v440_v40  ;;  %s1814_s30 = scalar_lea.vmem %s2026_s9, %s1365_s19 }
  0x11   : > { %v377_v13 = vld [vmem:[%s2020_s3 + $0x18] sm:$0xff]  ;;  %v398_v18 = vld [vmem:[%s2023_s6 + $0x20] sm:$0xff]  ;;  %v396_v23 = vld [vmem:[%s2023_s6 + $0x10] sm:$0xff] }
  0x12   : > { %1514 = vset.pattern.permute.xlu0 %v1545_v5  ;;  %1509 = vset.pattern.permute.xlu1 %v1543_v2  ;;  %v374_v19 = vld [vmem:[%s2020_s3] sm:$0xff]  ;;  %v397_v20 = vld [vmem:[%s2023_s6 + $0x18] sm:$0xff]  ;;  %v391_v24 = vld [vmem:[%s2022_s5 + $0x28] sm:$0xff] }
  0x13   : > { %456 = vperm.xlu1 %1509, %v368_v1   ;;  %480 = vperm.xlu0 %1514, %v367_v4   ;;  %v378_v21 = vld [vmem:[%s2021_s4] sm:$0xff]  ;;  %v395_v25 = vld [vmem:[%s2023_s6 + $0x8] sm:$0xff]  ;;  %v389_v27 = vld [vmem:[%s2022_s5 + $0x18] sm:$0xff] }
  0x14   : > { %1411 = vmatprep.mubr.msk.f32.mxu0 %vm555_vm0, %v378_v21  ;;  %v390_v26 = vld [vmem:[%s2022_s5 + $0x20] sm:$0xff]  ;;  %v388_v28 = vld [vmem:[%s2022_s5 + $0x10] sm:$0xff]  ;;  %v387_v29 = vld [vmem:[%s2022_s5 + $0x8] sm:$0xff] }
  0x15   : > { %v386_v30 = vld [vmem:[%s2022_s5] sm:$0xff]  ;;  %v408_v37 = vld [vmem:[%s2024_s7 + $0x30] sm:$0xff] }
  0x16   : > { %v394_v31 = vld [vmem:[%s2023_s6] sm:$0xff]  ;;  %1448 = vmatprep.mubr.msk.f32.mxu1 %vm789_vm1, %v408_v37 }
  0x17   : > { %1510 = vset.pattern.permute.xlu1 %v1545_v5  ;;  %1515 = vset.pattern.permute.xlu0 %v1544_v3  ;;  %v418_v45 = vld [vmem:[%s355_s23] sm:$0x7] }
  0x18   : > { %488 = vperm.xlu1 %1510, %v369_v0   ;;  %436 = vperm.xlu0 %1515, %v369_v0   ;;  %v466_v46 = vrot.slane %v418_v45, %v465_v41  ;;  %v442_v48 = vrot.slane %v418_v45, %v441_v44  ;;  %v494_v52 = vrot.slane %v418_v45, %v493_v47 }
  0x1c   : > { %1511 = vset.pattern.permute.xlu1 %v1543_v2  ;;  %426 = vperm.xlu0 %1515, %v367_v4  }
  0x1d   : > { %452 = vperm.xlu1 %1511, %v367_v4  }
  0x20   : > { %421 = vperm.xlu0 %1515, %v366_v6  }
  0x21   : > { %1512 = vset.pattern.permute.xlu1 %v1545_v5 }
  0x22   : > { %484 = vperm.xlu1 %1512, %v368_v1  }
  0x24   : > { %515 = vperm.xlu0 %1515, %v372_v7  }
  0x26   : > { %1513 = vset.pattern.permute.xlu1 %v1543_v2 }
  0x27   : > { %448 = vperm.xlu1 %1513, %v366_v6  }
  0x28   : > { %539 = vperm.xlu0 %1515, %v376_v8  }
  0x2b   : > { %1516 = vset.pattern.permute.xlu1 %v1544_v3 }
  0x2c   : > { %534 = vperm.xlu0 %1515, %v375_v9   ;;  %520 = vperm.xlu1 %1516, %v373_v10  }
  0x30   : > { %722 = vperm.xlu0 %1515, %v393_v11   ;;  %1517 = vset.pattern.permute.xlu1 %v1545_v5 }
  0x31   : > { %476 = vperm.xlu1 %1517, %v366_v6  }
  0x34   : > { %770 = vperm.xlu0 %1515, %v401_v12  }
  0x35   : > { %1518 = vset.pattern.permute.xlu1 %v1544_v3 }
  0x36   : > { %544 = vperm.xlu1 %1518, %v377_v13  }
  0x38   : > { %765 = vperm.xlu0 %1515, %v400_v14  }
  0x3a   : > { %510 = vperm.xlu1 %1518, %v371_v15  }
  0x3c   : > { %760 = vperm.xlu0 %1515, %v399_v16  }
  0x3e   : > { %505 = vperm.xlu1 %1518, %v370_v17  }
  0x40   : > { %755 = vperm.xlu0 %1515, %v398_v18  }
  0x42   : > { %529 = vperm.xlu1 %1518, %v374_v19  }
  0x44   : > { %750 = vperm.xlu0 %1515, %v397_v20  }
  0x46   : > { %717 = vperm.xlu1 %1518, %v392_v22  }
  0x48   : > { %745 = vperm.xlu0 %1515, %v396_v23  }
  0x4a   : > { %712 = vperm.xlu1 %1518, %v391_v24  }
  0x4c   : > { %740 = vperm.xlu0 %1515, %v395_v25  }
  0x4e   : > { %707 = vperm.xlu1 %1518, %v390_v26  }
  0x52   : > { %702 = vperm.xlu1 %1518, %v389_v27  }
  0x56   : > { %697 = vperm.xlu1 %1518, %v388_v28  }
  0x5a   : > { %692 = vperm.xlu1 %1518, %v387_v29   ;;  %v379_v29 = vld [vmem:[%s2021_s4 + $0x8] sm:$0xff] }
  0x5e   : > { %687 = vperm.xlu1 %1518, %v386_v30   ;;  %v380_v30 = vld [vmem:[%s2021_s4 + $0x10] sm:$0xff] }
  0x62   : > { %735 = vperm.xlu1 %1518, %v394_v31   ;;  %v381_v31 = vld [vmem:[%s2021_s4 + $0x18] sm:$0xff] }
  0x89   : > { %v432_v32 = vpop.permute.xlu1 %431  ;;  %v461_v33 = vpop.permute.xlu0 %460 }
  0x8a   : > { %v445_v53 = vmul.f32 %v442_v48, %v432_v32  ;;  %v470_v54 = vmul.f32 %v466_v46, %v461_v33  ;;  %v382_v32 = vld [vmem:[%s2021_s4 + $0x20] sm:$0xff]  ;;  %v383_v33 = vld [vmem:[%s2021_s4 + $0x28] sm:$0xff] }
  0x8e   : > { %v457_v34 = vpop.permute.xlu1 %456  ;;  %v481_v35 = vpop.permute.xlu0 %480 }
  0x8f   : > { %v469_v51 = vmul.f32 %v466_v46, %v457_v34  ;;  %v496_v5 = vmul.f32 %v494_v52, %v481_v35  ;;  %v384_v34 = vld [vmem:[%s2021_s4 + $0x30] sm:$0xff]  ;;  %v385_v35 = vld [vmem:[%s2021_s4 + $0x38] sm:$0xff] }
  0x91   : > { %v473_v58 = vadd.f32 %v469_v51, %v445_v53 }
  0x93   : > { %v489_v36 = vpop.permute.xlu1 %488  ;;  %v437_v38 = vpop.permute.xlu0 %436 }
  0x94   : > { %v446_v55 = vmul.f32 %v442_v48, %v437_v38  ;;  %v498_v62 = vmul.f32 %v494_v52, %v489_v36  ;;  %v402_v36 = vld [vmem:[%s2024_s7] sm:$0xff] }
  0x96   : > { %v474_v60 = vadd.f32 %v470_v54, %v446_v55 }
  0x97   : > { %v427_v42 = vpop.permute.xlu0 %426 }
  0x98   : > { %v453_v39 = vpop.permute.xlu1 %452  ;;  %v444_v63 = vmul.f32 %v442_v48, %v427_v42  ;;  %v502_v3 = vadd.f32 %v498_v62, %v474_v60 }
  0x99   : > { %v468_v0 = vmul.f32 %v466_v46, %v453_v39 }
  0x9b   : > { %v422_v50 = vpop.permute.xlu0 %421  ;;  %v472_v6 = vadd.f32 %v468_v0, %v444_v63 }
  0x9c   : > { %v443_v11 = vmul.f32 %v442_v48, %v422_v50 }
  0x9d   : > { %v485_v43 = vpop.permute.xlu1 %484  ;;  %v500_v14 = vadd.f32 %v496_v5, %v472_v6 }
  0x9e   : > { %v497_v56 = vmul.f32 %v494_v52, %v485_v43 }
  0x9f   : > { %v516_v59 = vpop.permute.xlu0 %515 }
  0xa0   : > { %v501_v61 = vadd.f32 %v497_v56, %v473_v58 }
  0xa2   : > { %v449_v49 = vpop.permute.xlu1 %448  ;;  %v525_v2 = vmul.f32 %v516_v59, %v501_v61 }
  0xa3   : > { %v540_v4 = vpop.permute.xlu0 %539  ;;  %v467_v12 = vmul.f32 %v466_v46, %v449_v49 }
  0xa4   : > { %v549_v9 = vadd.f32 %v540_v4, %v525_v2 }
  0xa5   : > { %v471_v20 = vadd.f32 %v467_v12, %v443_v11 }
  0xa6   : > { %v553_v16 = vmax.f32 %v549_v9, 0.0 }
  0xa7   : > { %v521_v57 = vpop.permute.xlu1 %520  ;;  %v535_v19 = vpop.permute.xlu0 %534 }
  0xa8   : > { %v526_v7 = vmul.f32 %v521_v57, %v502_v3 }
  0xab   : > { %v723_v38 = vpop.permute.xlu0 %722 }
  0xac   : > { %v477_v1 = vpop.permute.xlu1 %476 }
  0xad   : > { %v495_v17 = vmul.f32 %v494_v52, %v477_v1 }
  0xaf   : > { %v499_v24 = vadd.f32 %v495_v17, %v471_v20  ;;  %v771_v40 = vpop.permute.xlu0 %770 }
  0xb1   : > { %v545_v8 = vpop.permute.xlu1 %544 }
  0xb2   : > { %v550_v10 = vadd.f32 %v545_v8, %v526_v7 }
  0xb3   : > { %v766_v42 = vpop.permute.xlu0 %765 }
  0xb4   : > { %v554_v13 = vmax.f32 %v550_v10, 0.0 }
  0xb5   : > { %v511_v15 = vpop.permute.xlu1 %510 }
  0xb6   : > { %v524_v18 = vmul.f32 %v511_v15, %v500_v14  ;;  %1403 = vmatprep.subr.mxu0 %v554_v13 }
  0xb7   : > { %1404 = vmatpush3.msra.mxu0 %v554_v13  ;;  %v761_v44 = vpop.permute.xlu0 %760 }
  0xb8   : > { %v548_v21 = vadd.f32 %v535_v19, %v524_v18  ;;  %1405 = vmatprep.subr.mxu0 %v553_v16 }
  0xb9   : > { %v506_v22 = vpop.permute.xlu1 %505  ;;  %1406 = vmatpush3.msra.mxu0 %v553_v16 }
  0xba   : > { %v552_v23 = vmax.f32 %v548_v21, 0.0  ;;  %v523_v25 = vmul.f32 %v506_v22, %v499_v24  ;;  %v403_v22 = vld [vmem:[%s2024_s7 + $0x8] sm:$0xff]  ;;  %v404_v24 = vld [vmem:[%s2024_s7 + $0x10] sm:$0xff] }
  0xbb   : > { %v756_v49 = vpop.permute.xlu0 %755 }
  0xbc   : > { %1407 = vmatprep.subr.mxu0 %v552_v23 }
  0xbd   : > { %v530_v26 = vpop.permute.xlu1 %529  ;;  %1408 = vmatpush3.msra.mxu0 %v552_v23  ;;  %v409_v23 = vld [vmem:[%s2024_s7 + $0x38] sm:$0xff] }
  0xbe   : > { %v547_v27 = vadd.f32 %v530_v26, %v523_v25  ;;  %v410_v25 = vld [vmem:[%s2024_s7 + $0x40] sm:$0xff]  ;;  %v405_v26 = vld [vmem:[%s2024_s7 + $0x18] sm:$0xff] }
  0xbf   : > { %v751_v54 = vpop.permute.xlu0 %750 }
  0xc0   : > { %v551_v28 = vmax.f32 %v547_v27, 0.0  ;;  %v411_v27 = vld [vmem:[%s2024_s7 + $0x48] sm:$0xff] }
  0xc1   : > { %v718_v39 = vpop.permute.xlu1 %717 }
  0xc2   : > { %1409 = vmatprep.subr.mxu0 %v551_v28 }
  0xc3   : > { %1410 = vmatpush3.msra.mxu0 %v551_v28  ;;  %v746_v3 = vpop.permute.xlu0 %745  ;;  %v406_v28 = vld [vmem:[%s2024_s7 + $0x20] sm:$0xff] }
  0xc4   : > { %1412 = vmatmul.mubr.msk.f32.vlgmr.msra.gmra.mxu0 %vm555_vm0, %v379_v29  ;;  %v412_v29 = vld [vmem:[%s2024_s7 + $0x50] sm:$0xff] }
  0xc5   : > { %1414 = vmatprep.mubr.msk.f32.mxu0 %vm555_vm0, %v380_v30  ;;  %v713_v41 = vpop.permute.xlu1 %712  ;;  %v407_v30 = vld [vmem:[%s2024_s7 + $0x28] sm:$0xff] }
  0xc7   : > { %v741_v14 = vpop.permute.xlu0 %740 }
  0xc8   : > { %1415 = vmatmul.mubr.msk.f32.gmra.mxu0 %vm555_vm0, %v381_v31  ;;  %v413_v31 = vld [vmem:[%s2024_s7 + $0x58] sm:$0xff] }
  0xc9   : > { %1417 = vmatprep.mubr.msk.f32.mxu0 %vm555_vm0, %v382_v32  ;;  %v708_v43 = vpop.permute.xlu1 %707  ;;  %v414_v32 = vld [vmem:[%s2024_s7 + $0x60] sm:$0xff] }
  0xcc   : > { %1418 = vmatmul.mubr.msk.f32.gmra.mxu0 %vm555_vm0, %v383_v33  ;;  %v415_v33 = vld [vmem:[%s2024_s7 + $0x68] sm:$0xff] }
  0xcd   : > { %1420 = vmatprep.mubr.msk.f32.mxu0 %vm555_vm0, %v384_v34  ;;  %v703_v46 = vpop.permute.xlu1 %702  ;;  %v416_v34 = vld [vmem:[%s2024_s7 + $0x70] sm:$0xff] }
  0xd0   : > { %1421 = vmatmul.mubr.msk.f32.gmra.mxu0 %vm555_vm0, %v385_v35  ;;  %v417_v35 = vld [vmem:[%s2024_s7 + $0x78] sm:$0xff] }
  0xd1   : > { %1439 = vmatprep.mubr.msk.f32.mxu0 %vm789_vm1, %v402_v36  ;;  %v698_v51 = vpop.permute.xlu1 %697  ;;  %v1546_v36 = vmov 0.0  }
  0xd2   : > { %995 = vst.msk [vmem:[%s1809_s22 + $0x38] sm:$0xff] %vm987_vm2, %v1546_v36  ;;  %988 = vst.msk [vmem:[%s1809_s22] sm:$0xff] %vm987_vm2, %v1546_v36 }
  0xd3   : > { %989 = vst.msk [vmem:[%s1809_s22 + $0x8] sm:$0xff] %vm987_vm2, %v1546_v36  ;;  %990 = vst.msk [vmem:[%s1809_s22 + $0x10] sm:$0xff] %vm987_vm2, %v1546_v36 }
  0xd4   : > { %991 = vst.msk [vmem:[%s1809_s22 + $0x18] sm:$0xff] %vm987_vm2, %v1546_v36  ;;  %992 = vst.msk [vmem:[%s1809_s22 + $0x20] sm:$0xff] %vm987_vm2, %v1546_v36 }
  0xd5   : > { %v693_v58 = vpop.permute.xlu1 %692  ;;  %993 = vst.msk [vmem:[%s1809_s22 + $0x28] sm:$0xff] %vm987_vm2, %v1546_v36  ;;  %994 = vst.msk [vmem:[%s1809_s22 + $0x30] sm:$0xff] %vm987_vm2, %v1546_v36 }
  0xd6   : > { %996 = vst.msk [vmem:[%s1809_s22 + $0x40] sm:$0xff] %vm987_vm2, %v1546_v36  ;;  %997 = vst.msk [vmem:[%s1809_s22 + $0x48] sm:$0xff] %vm987_vm2, %v1546_v36 }
  0xd7   : > { %998 = vst.msk [vmem:[%s1809_s22 + $0x50] sm:$0xff] %vm987_vm2, %v1546_v36  ;;  %999 = vst.msk [vmem:[%s1809_s22 + $0x58] sm:$0xff] %vm987_vm2, %v1546_v36 }
  0xd8   : > { %1000 = vst.msk [vmem:[%s1809_s22 + $0x60] sm:$0xff] %vm987_vm2, %v1546_v36  ;;  %1001 = vst.msk [vmem:[%s1809_s22 + $0x68] sm:$0xff] %vm987_vm2, %v1546_v36 }
  0xd9   : > { %v688_v7 = vpop.permute.xlu1 %687  ;;  %1002 = vst.msk [vmem:[%s1809_s22 + $0x70] sm:$0xff] %vm987_vm2, %v1546_v36  ;;  %1003 = vst.msk [vmem:[%s1809_s22 + $0x78] sm:$0xff] %vm987_vm2, %v1546_v36 }
  0xda   : > { %1004 = vst.msk [vmem:[%s1814_s30] sm:$0xff] %vm987_vm2, %v1546_v36  ;;  %1005 = vst.msk [vmem:[%s1814_s30 + $0x8] sm:$0xff] %vm987_vm2, %v1546_v36 }
  0xdb   : > { %1006 = vst.msk [vmem:[%s1814_s30 + $0x10] sm:$0xff] %vm987_vm2, %v1546_v36  ;;  %1007 = vst.msk [vmem:[%s1814_s30 + $0x18] sm:$0xff] %vm987_vm2, %v1546_v36 }
  0xdc   : > { %1008 = vst.msk [vmem:[%s1814_s30 + $0x20] sm:$0xff] %vm987_vm2, %v1546_v36  ;;  %1009 = vst.msk [vmem:[%s1814_s30 + $0x28] sm:$0xff] %vm987_vm2, %v1546_v36 }
  0xdd   : > { %v736_v17 = vpop.permute.xlu1 %735  ;;  %1010 = vst.msk [vmem:[%s1814_s30 + $0x30] sm:$0xff] %vm987_vm2, %v1546_v36  ;;  %1011 = vst.msk [vmem:[%s1814_s30 + $0x38] sm:$0xff] %vm987_vm2, %v1546_v36 }
  0xde   : > { %1012 = vst.msk [vmem:[%s1814_s30 + $0x40] sm:$0xff] %vm987_vm2, %v1546_v36  ;;  %1013 = vst.msk [vmem:[%s1814_s30 + $0x48] sm:$0xff] %vm987_vm2, %v1546_v36 }
  0xdf   : > { %1014 = vst.msk [vmem:[%s1814_s30 + $0x50] sm:$0xff] %vm987_vm2, %v1546_v36  ;;  %1015 = vst.msk [vmem:[%s1814_s30 + $0x58] sm:$0xff] %vm987_vm2, %v1546_v36 }
  0xe0   : > { %1016 = vst.msk [vmem:[%s1814_s30 + $0x60] sm:$0xff] %vm987_vm2, %v1546_v36  ;;  %1017 = vst.msk [vmem:[%s1814_s30 + $0x68] sm:$0xff] %vm987_vm2, %v1546_v36 }
  0xe1   : > { %1018 = vst.msk [vmem:[%s1814_s30 + $0x70] sm:$0xff] %vm987_vm2, %v1546_v36  ;;  %1019 = vst.msk [vmem:[%s1814_s30 + $0x78] sm:$0xff] %vm987_vm2, %v1546_v36 }
 0x184   : > { %v1413_v45 = vpop.f32.mrf.mxu0 }
 0x185   : > { %v726_v8 = vmul.f32 %v1413_v45, %v693_v58 }
 0x186   : > { %v646_v47 = vpop.f32.mrf.mxu0 }
 0x187   : > { %v725_v11 = vmul.f32 %v688_v7, %v646_v47  ;;  %v774_v15 = vadd.f32 %v741_v14, %v726_v8 }
 0x188   : > { %v1416_v48 = vpop.f32.mrf.mxu0 }
 0x189   : > { %v728_v63 = vmul.f32 %v1416_v48, %v703_v46  ;;  %v773_v18 = vadd.f32 %v736_v17, %v725_v11  ;;  %v782_v20 = vmax.f32 %v774_v15, 0.0 }
 0x18a   : > { %v656_v50 = vpop.f32.mrf.mxu0 }
 0x18b   : > { %v727_v4 = vmul.f32 %v698_v51, %v656_v50  ;;  %v776_v9 = vadd.f32 %v751_v54, %v728_v63  ;;  %v781_v21 = vmax.f32 %v773_v18, 0.0 }
 0x18c   : > { %v1419_v52 = vpop.f32.mrf.mxu0 }
 0x18d   : > { %v730_v56 = vmul.f32 %v1419_v52, %v713_v41  ;;  %v775_v12 = vadd.f32 %v746_v3, %v727_v4  ;;  %v784_v16 = vmax.f32 %v776_v9, 0.0 }
 0x18e   : > { %v666_v53 = vpop.f32.mrf.mxu0 }
 0x18f   : > { %v729_v60 = vmul.f32 %v708_v43, %v666_v53  ;;  %v778_v0 = vadd.f32 %v761_v44, %v730_v56  ;;  %v783_v19 = vmax.f32 %v775_v12, 0.0 }
 0x190   : > { %v1422_v55 = vpop.f32.mrf.mxu0 }
 0x191   : > { %v732_v57 = vmul.f32 %v1422_v55, %v723_v38  ;;  %v777_v5 = vadd.f32 %v756_v49, %v729_v60  ;;  %v786_v10 = vmax.f32 %v778_v0, 0.0 }
 0x192   : > { %v676_v59 = vpop.f32.mrf.mxu0 }
 0x193   : > { %v780_v61 = vadd.f32 %v771_v40, %v732_v57  ;;  %v731_v62 = vmul.f32 %v718_v39, %v676_v59  ;;  %v785_v13 = vmax.f32 %v777_v5, 0.0 }
 0x195   : > { %v788_v1 = vmax.f32 %v780_v61, 0.0  ;;  %v779_v2 = vadd.f32 %v766_v42, %v731_v62 }
 0x197   : > { %v787_v6 = vmax.f32 %v779_v2, 0.0  ;;  %1423 = vmatprep.subr.mxu0 %v788_v1  ;;  %1463 = vmatprep.subr.mxu1 %v788_v1 }
 0x198   : > { %1424 = vmatpush3.msra.mxu0 %v788_v1  ;;  %1471 = vmatpush3.msra.mxu1 %v788_v1 }
 0x199   : > { %1425 = vmatprep.subr.mxu0 %v787_v6  ;;  %1464 = vmatprep.subr.mxu1 %v787_v6 }
 0x19a   : > { %1426 = vmatpush3.msra.mxu0 %v787_v6  ;;  %1472 = vmatpush3.msra.mxu1 %v787_v6 }
 0x19b   : > { %1427 = vmatprep.subr.mxu0 %v786_v10  ;;  %1465 = vmatprep.subr.mxu1 %v786_v10 }
 0x19c   : > { %1428 = vmatpush3.msra.mxu0 %v786_v10  ;;  %1473 = vmatpush3.msra.mxu1 %v786_v10 }
 0x19d   : > { %1429 = vmatprep.subr.mxu0 %v785_v13  ;;  %1466 = vmatprep.subr.mxu1 %v785_v13 }
 0x19e   : > { %1430 = vmatpush3.msra.mxu0 %v785_v13  ;;  %1474 = vmatpush3.msra.mxu1 %v785_v13 }
 0x19f   : > { %1431 = vmatprep.subr.mxu0 %v784_v16  ;;  %1467 = vmatprep.subr.mxu1 %v784_v16 }
 0x1a0   : > { %1432 = vmatpush3.msra.mxu0 %v784_v16  ;;  %1475 = vmatpush3.msra.mxu1 %v784_v16 }
 0x1a1   : > { %1433 = vmatprep.subr.mxu0 %v783_v19  ;;  %1468 = vmatprep.subr.mxu1 %v783_v19 }
 0x1a2   : > { %1434 = vmatpush3.msra.mxu0 %v783_v19  ;;  %1476 = vmatpush3.msra.mxu1 %v783_v19 }
 0x1a3   : > { %1435 = vmatprep.subr.mxu0 %v782_v20  ;;  %1469 = vmatprep.subr.mxu1 %v782_v20 }
 0x1a4   : > { %1436 = vmatpush3.msra.mxu0 %v782_v20  ;;  %1477 = vmatpush3.msra.mxu1 %v782_v20 }
 0x1a5   : > { %1437 = vmatprep.subr.mxu0 %v781_v21  ;;  %1470 = vmatprep.subr.mxu1 %v781_v21 }
 0x1a6   : > { %1438 = vmatpush3.msra.mxu0 %v781_v21  ;;  %1478 = vmatpush3.msra.mxu1 %v781_v21 }
 0x1a7   : > { %1440 = vmatmul.mubr.msk.f32.vlgmr.msra.gmra.mxu0 %vm789_vm1, %v403_v22  ;;  %1449 = vmatmul.mubr.msk.f32.vlgmr.msra.gmra.mxu1 %vm789_vm1, %v409_v23 }
 0x1a8   : > { %1442 = vmatprep.mubr.msk.f32.mxu0 %vm789_vm1, %v404_v24  ;;  %1451 = vmatprep.mubr.msk.f32.mxu1 %vm789_vm1, %v410_v25 }
 0x1ab   : > { %1443 = vmatmul.mubr.msk.f32.gmra.mxu0 %vm789_vm1, %v405_v26  ;;  %1452 = vmatmul.mubr.msk.f32.gmra.mxu1 %vm789_vm1, %v411_v27 }
 0x1ac   : > { %1445 = vmatprep.mubr.msk.f32.mxu0 %vm789_vm1, %v406_v28  ;;  %1454 = vmatprep.mubr.msk.f32.mxu1 %vm789_vm1, %v412_v29 }
 0x1af   : > { %1446 = vmatmul.mubr.msk.f32.gmra.mxu0 %vm789_vm1, %v407_v30  ;;  %1455 = vmatmul.mubr.msk.f32.gmra.mxu1 %vm789_vm1, %v413_v31 }
 0x1b0   : > { %1457 = vmatprep.mubr.msk.f32.mxu1 %vm789_vm1, %v414_v32 }
 0x1b3   : > { %1458 = vmatmul.mubr.msk.f32.gmra.mxu1 %vm789_vm1, %v415_v33 }
 0x1b4   : > { %1460 = vmatprep.mubr.msk.f32.mxu1 %vm789_vm1, %v416_v34 }
 0x1b7   : > { %1461 = vmatmul.mubr.msk.f32.gmra.mxu1 %vm789_vm1, %v417_v35 }
 0x267   : > { %v1441_v37 = vpop.f32.mrf.mxu0  ;;  %v1450_v38 = vpop.f32.mrf.mxu1 }
 0x268   : > { %v1058_v39 = vsel %vm1036_vm3, %v1450_v38, 0.0  ;;  %v1040_v40 = vsel %vm1036_vm3, %v1441_v37, 0.0  ;;  %v1135_v43 = vmul.f32 %v1441_v37, %v1441_v37  ;;  %v1141_v48 = vmul.f32 %v1450_v38, %v1450_v38  ;;  %v1027_v37 = vld [vmem:[%s1809_s22 + $0x38] sm:$0xff]  ;;  %v1021_v38 = vld [vmem:[%s1809_s22 + $0x8] sm:$0xff] }
 0x269   : > { %1059 = vadd.xlane.f32.xlu0 %v1058_v39  ;;  %v934_v41 = vpop.f32.mrf.mxu1  ;;  %1041 = vadd.xlane.f32.xlu1 %v1040_v40  ;;  %v904_v42 = vpop.f32.mrf.mxu0 }
 0x26a   : > { %v1134_v44 = vmul.f32 %v904_v42, %v904_v42  ;;  %v1055_v45 = vsel %vm1036_vm3, %v934_v41, 0.0  ;;  %v1037_v46 = vsel %vm1036_vm3, %v904_v42, 0.0  ;;  %v1140_v49 = vmul.f32 %v934_v41, %v934_v41 }
 0x26b   : > { %v1453_v47 = vpop.f32.mrf.mxu1  ;;  %v1153_v51 = vsel %vm1036_vm3, %v1135_v43, 0.0  ;;  %v1444_v52 = vpop.f32.mrf.mxu0  ;;  %v1171_v55 = vsel %vm1036_vm3, %v1141_v48, 0.0  ;;  %v1026_v43 = vld [vmem:[%s1809_s22 + $0x30] sm:$0xff] }
 0x26c   : > { %v1150_v50 = vsel %vm1036_vm3, %v1134_v44, 0.0  ;;  %v1168_v54 = vsel %vm1036_vm3, %v1140_v49, 0.0  ;;  %v1046_v58 = vsel %vm1036_vm3, %v1444_v52, 0.0  ;;  %v1064_v60 = vsel %vm1036_vm3, %v1453_v47, 0.0  ;;  %v1020_v44 = vld [vmem:[%s1809_s22] sm:$0xff] }
 0x26d   : > { %1056 = vadd.xlane.f32.xlu1 %v1055_v45  ;;  %1038 = vadd.xlane.f32.xlu0 %v1037_v46  ;;  %v944_v53 = vpop.f32.mrf.mxu1  ;;  %v914_v56 = vpop.f32.mrf.mxu0  ;;  %v1137_v2 = vmul.f32 %v1444_v52, %v1444_v52  ;;  %v1143_v7 = vmul.f32 %v1453_v47, %v1453_v47  ;;  %v1118_v49 = vld [vmem:[%s1814_s30] sm:$0xff] }
 0x26e   : > { %v1061_v57 = vsel %vm1036_vm3, %v944_v53, 0.0  ;;  %v1136_v59 = vmul.f32 %v914_v56, %v914_v56  ;;  %v1142_v62 = vmul.f32 %v944_v53, %v944_v53  ;;  %v1043_v4 = vsel %vm1036_vm3, %v914_v56, 0.0  ;;  %v1125_v56 = vld [vmem:[%s1814_s30 + $0x38] sm:$0xff] }
 0x26f   : > { %v1447_v61 = vpop.f32.mrf.mxu0  ;;  %v1456_v1 = vpop.f32.mrf.mxu1  ;;  %v1159_v8 = vsel %vm1036_vm3, %v1137_v2, 0.0  ;;  %v1177_v11 = vsel %vm1036_vm3, %v1143_v7, 0.0 }
 0x270   : > { %v1156_v63 = vsel %vm1036_vm3, %v1136_v59, 0.0  ;;  %v1174_v3 = vsel %vm1036_vm3, %v1142_v62, 0.0  ;;  %v1052_v15 = vsel %vm1036_vm3, %v1447_v61, 0.0  ;;  %v1139_v18 = vmul.f32 %v1447_v61, %v1447_v61  ;;  %v1028_v61 = vld [vmem:[%s1809_s22 + $0x40] sm:$0xff]  ;;  %v1023_v62 = vld [vmem:[%s1809_s22 + $0x18] sm:$0xff] }
 0x271   : > { %1151 = vadd.xlane.f32.xlu1 %v1150_v50  ;;  %1154 = vadd.xlane.f32.xlu0 %v1153_v51  ;;  %v924_v0 = vpop.f32.mrf.mxu0  ;;  %v954_v6 = vpop.f32.mrf.mxu1  ;;  %v1070_v19 = vsel %vm1036_vm3, %v1456_v1, 0.0  ;;  %v1145_v23 = vmul.f32 %v1456_v1, %v1456_v1  ;;  %v1119_v50 = vld [vmem:[%s1814_s30 + $0x8] sm:$0xff] }
 0x272   : > { %v1049_v5 = vsel %vm1036_vm3, %v924_v0, 0.0  ;;  %v1138_v9 = vmul.f32 %v924_v0, %v924_v0  ;;  %v1067_v10 = vsel %vm1036_vm3, %v954_v6, 0.0  ;;  %v1144_v12 = vmul.f32 %v954_v6, %v954_v6 }
 0x273   : > { %v1459_v14 = vpop.f32.mrf.mxu1  ;;  %v1165_v24 = vsel %vm1036_vm3, %v1139_v18, 0.0  ;;  %v1183_v27 = vsel %vm1036_vm3, %v1145_v23, 0.0 }
 0x274   : > { %v1162_v13 = vsel %vm1036_vm3, %v1138_v9, 0.0  ;;  %v1180_v16 = vsel %vm1036_vm3, %v1144_v12, 0.0  ;;  %v1147_v30 = vmul.f32 %v1459_v14, %v1459_v14  ;;  %v1076_v31 = vsel %vm1036_vm3, %v1459_v14, 0.0  ;;  %v1126_v9 = vld [vmem:[%s1814_s30 + $0x40] sm:$0xff] }
 0x275   : > { %1169 = vadd.xlane.f32.xlu1 %v1168_v54  ;;  %1172 = vadd.xlane.f32.xlu0 %v1171_v55  ;;  %v964_v17 = vpop.f32.mrf.mxu1  ;;  %v1124_v55 = vld [vmem:[%s1814_s30 + $0x30] sm:$0xff] }
 0x276   : > { %v1146_v20 = vmul.f32 %v964_v17, %v964_v17  ;;  %v1073_v21 = vsel %vm1036_vm3, %v964_v17, 0.0  ;;  %v1189_v33 = vsel %vm1036_vm3, %v1147_v30, 0.0 }
 0x277   : > { %v1462_v22 = vpop.f32.mrf.mxu1 }
 0x278   : > { %v1186_v25 = vsel %vm1036_vm3, %v1146_v20, 0.0  ;;  %v1149_v34 = vmul.f32 %v1462_v22, %v1462_v22  ;;  %v1082_v35 = vsel %vm1036_vm3, %v1462_v22, 0.0  ;;  %v1030_v22 = vld [vmem:[%s1809_s22 + $0x50] sm:$0xff] }
 0x279   : > { %1062 = vadd.xlane.f32.xlu1 %v1061_v57  ;;  %1047 = vadd.xlane.f32.xlu0 %v1046_v58  ;;  %v974_v26 = vpop.f32.mrf.mxu1 }
 0x27a   : > { %v1148_v28 = vmul.f32 %v974_v26, %v974_v26  ;;  %v1079_v29 = vsel %vm1036_vm3, %v974_v26, 0.0  ;;  %v1195_v36 = vsel %vm1036_vm3, %v1149_v34, 0.0  ;;  %v1128_v34 = vld [vmem:[%s1814_s30 + $0x50] sm:$0xff] }
 0x27c   : > { %v1192_v32 = vsel %vm1036_vm3, %v1148_v28, 0.0  ;;  %v1122_v28 = vld [vmem:[%s1814_s30 + $0x20] sm:$0xff] }
 0x27d   : > { %1065 = vadd.xlane.f32.xlu0 %v1064_v60  ;;  %1157 = vadd.xlane.f32.xlu1 %v1156_v63 }
 0x281   : > { %1175 = vadd.xlane.f32.xlu1 %v1174_v3  ;;  %1044 = vadd.xlane.f32.xlu0 %v1043_v4  ;;  %v1029_v3 = vld [vmem:[%s1809_s22 + $0x48] sm:$0xff]  ;;  %v1120_v4 = vld [vmem:[%s1814_s30 + $0x10] sm:$0xff] }
 0x285   : > { %1160 = vadd.xlane.f32.xlu0 %v1159_v8  ;;  %1050 = vadd.xlane.f32.xlu1 %v1049_v5 }
 0x289   : > { %1178 = vadd.xlane.f32.xlu0 %v1177_v11  ;;  %1068 = vadd.xlane.f32.xlu1 %v1067_v10  ;;  %v1022_v10 = vld [vmem:[%s1809_s22 + $0x10] sm:$0xff] }
 0x28d   : > { %1053 = vadd.xlane.f32.xlu0 %v1052_v15  ;;  %1163 = vadd.xlane.f32.xlu1 %v1162_v13  ;;  %v1121_v15 = vld [vmem:[%s1814_s30 + $0x18] sm:$0xff] }
 0x291   : > { %1071 = vadd.xlane.f32.xlu0 %v1070_v19  ;;  %1181 = vadd.xlane.f32.xlu1 %v1180_v16  ;;  %v1024_v16 = vld [vmem:[%s1809_s22 + $0x20] sm:$0xff] }
 0x295   : > { %1166 = vadd.xlane.f32.xlu0 %v1165_v24  ;;  %1074 = vadd.xlane.f32.xlu1 %v1073_v21  ;;  %v1127_v21 = vld [vmem:[%s1814_s30 + $0x48] sm:$0xff] }
 0x299   : > { %1184 = vadd.xlane.f32.xlu0 %v1183_v27  ;;  %1187 = vadd.xlane.f32.xlu1 %v1186_v25  ;;  %v1025_v27 = vld [vmem:[%s1809_s22 + $0x28] sm:$0xff] }
 0x29d   : > { %1077 = vadd.xlane.f32.xlu0 %v1076_v31  ;;  %1080 = vadd.xlane.f32.xlu1 %v1079_v29 }
 0x2a1   : > { %1190 = vadd.xlane.f32.xlu0 %v1189_v33  ;;  %1193 = vadd.xlane.f32.xlu1 %v1192_v32  ;;  %v1031_v33 = vld [vmem:[%s1809_s22 + $0x58] sm:$0xff] }
 0x2a5   : > { %1083 = vadd.xlane.f32.xlu0 %v1082_v35 }
 0x2a9   : > { %1196 = vadd.xlane.f32.xlu0 %v1195_v36 }
 0x2f2   : > { %v1060_v39 = vpop.xlane.xlu0 %1059  ;;  %v1042_v40 = vpop.xlane.xlu1 %1041 }
 0x2f3   : > { %v1092_v41 = vadd.f32 %v1060_v39, %v1027_v37  ;;  %v1086_v42 = vadd.f32 %v1042_v40, %v1021_v38  ;;  %v1123_v39 = vld [vmem:[%s1814_s30 + $0x28] sm:$0xff]  ;;  %v1032_v40 = vld [vmem:[%s1809_s22 + $0x60] sm:$0xff] }
 0x2f5   : > { %1109 = vst.msk [vmem:[%s1809_s22 + $0x38] sm:$0xff] %vm987_vm2, %v1092_v41  ;;  %1103 = vst.msk [vmem:[%s1809_s22 + $0x8] sm:$0xff] %vm987_vm2, %v1086_v42 }
 0x2f6   : > { %v1057_v45 = vpop.xlane.xlu1 %1056  ;;  %v1039_v46 = vpop.xlane.xlu0 %1038 }
 0x2f7   : > { %v1091_v47 = vadd.f32 %v1057_v45, %v1026_v43  ;;  %v1085_v48 = vadd.f32 %v1039_v46, %v1020_v44  ;;  %v1129_v45 = vld [vmem:[%s1814_s30 + $0x58] sm:$0xff]  ;;  %v1130_v46 = vld [vmem:[%s1814_s30 + $0x60] sm:$0xff] }
 0x2f9   : > { %1108 = vst.msk [vmem:[%s1809_s22 + $0x30] sm:$0xff] %vm987_vm2, %v1091_v47  ;;  %1102 = vst.msk [vmem:[%s1809_s22] sm:$0xff] %vm987_vm2, %v1085_v48 }
 0x2fa   : > { %v1152_v51 = vpop.xlane.xlu1 %1151  ;;  %v1155_v52 = vpop.xlane.xlu0 %1154 }
 0x2fb   : > { %v1198_v53 = vadd.f32 %v1152_v51, %v1118_v49  ;;  %v1199_v54 = vadd.f32 %v1155_v52, %v1119_v50  ;;  %v1033_v51 = vld [vmem:[%s1809_s22 + $0x68] sm:$0xff]  ;;  %v1034_v52 = vld [vmem:[%s1809_s22 + $0x70] sm:$0xff] }
 0x2fd   : > { %1214 = vst.msk [vmem:[%s1814_s30] sm:$0xff] %vm987_vm2, %v1198_v53  ;;  %1215 = vst.msk [vmem:[%s1814_s30 + $0x8] sm:$0xff] %vm987_vm2, %v1199_v54 }
 0x2fe   : > { %v1170_v57 = vpop.xlane.xlu1 %1169  ;;  %v1173_v58 = vpop.xlane.xlu0 %1172 }
 0x2ff   : > { %v1204_v59 = vadd.f32 %v1170_v57, %v1124_v55  ;;  %v1205_v60 = vadd.f32 %v1173_v58, %v1125_v56  ;;  %v1131_v57 = vld [vmem:[%s1814_s30 + $0x68] sm:$0xff]  ;;  %v1132_v58 = vld [vmem:[%s1814_s30 + $0x70] sm:$0xff] }
 0x301   : > { %1220 = vst.msk [vmem:[%s1814_s30 + $0x30] sm:$0xff] %vm987_vm2, %v1204_v59  ;;  %1221 = vst.msk [vmem:[%s1814_s30 + $0x38] sm:$0xff] %vm987_vm2, %v1205_v60 }
 0x302   : > { %v1063_v63 = vpop.xlane.xlu1 %1062  ;;  %v1048_v0 = vpop.xlane.xlu0 %1047 }
 0x303   : > { %v1093_v1 = vadd.f32 %v1063_v63, %v1028_v61  ;;  %v1088_v2 = vadd.f32 %v1048_v0, %v1023_v62  ;;  %v1035_v63 = vld [vmem:[%s1809_s22 + $0x78] sm:$0xff] }
 0x305   : > { %1110 = vst.msk [vmem:[%s1809_s22 + $0x40] sm:$0xff] %vm987_vm2, %v1093_v1  ;;  %1105 = vst.msk [vmem:[%s1809_s22 + $0x18] sm:$0xff] %vm987_vm2, %v1088_v2  ;;  %v1133_v2 = vld [vmem:[%s1814_s30 + $0x78] sm:$0xff] }
 0x306   : > { %v1066_v5 = vpop.xlane.xlu0 %1065  ;;  %v1158_v6 = vpop.xlane.xlu1 %1157 }
 0x307   : > { %v1094_v7 = vadd.f32 %v1066_v5, %v1029_v3  ;;  %v1200_v8 = vadd.f32 %v1158_v6, %v1120_v4 }
 0x309   : > { %1111 = vst.msk [vmem:[%s1809_s22 + $0x48] sm:$0xff] %vm987_vm2, %v1094_v7  ;;  %1216 = vst.msk [vmem:[%s1814_s30 + $0x10] sm:$0xff] %vm987_vm2, %v1200_v8 }
 0x30a   : > { %v1176_v11 = vpop.xlane.xlu1 %1175  ;;  %v1045_v12 = vpop.xlane.xlu0 %1044 }
 0x30b   : > { %v1206_v13 = vadd.f32 %v1176_v11, %v1126_v9  ;;  %v1087_v14 = vadd.f32 %v1045_v12, %v1022_v10 }
 0x30d   : > { %1222 = vst.msk [vmem:[%s1814_s30 + $0x40] sm:$0xff] %vm987_vm2, %v1206_v13  ;;  %1104 = vst.msk [vmem:[%s1809_s22 + $0x10] sm:$0xff] %vm987_vm2, %v1087_v14 }
 0x30e   : > { %v1161_v17 = vpop.xlane.xlu0 %1160  ;;  %v1051_v18 = vpop.xlane.xlu1 %1050 }
 0x30f   : > { %v1201_v19 = vadd.f32 %v1161_v17, %v1121_v15  ;;  %v1089_v20 = vadd.f32 %v1051_v18, %v1024_v16 }
 0x311   : > { %1217 = vst.msk [vmem:[%s1814_s30 + $0x18] sm:$0xff] %vm987_vm2, %v1201_v19  ;;  %1106 = vst.msk [vmem:[%s1809_s22 + $0x20] sm:$0xff] %vm987_vm2, %v1089_v20 }
 0x312   : > { %v1179_v23 = vpop.xlane.xlu0 %1178  ;;  %v1069_v24 = vpop.xlane.xlu1 %1068 }
 0x313   : > { %v1207_v25 = vadd.f32 %v1179_v23, %v1127_v21  ;;  %v1095_v26 = vadd.f32 %v1069_v24, %v1030_v22 }
 0x315   : > { %1223 = vst.msk [vmem:[%s1814_s30 + $0x48] sm:$0xff] %vm987_vm2, %v1207_v25  ;;  %1112 = vst.msk [vmem:[%s1809_s22 + $0x50] sm:$0xff] %vm987_vm2, %v1095_v26 }
 0x316   : > { %v1054_v29 = vpop.xlane.xlu0 %1053  ;;  %v1164_v30 = vpop.xlane.xlu1 %1163 }
 0x317   : > { %v1090_v31 = vadd.f32 %v1054_v29, %v1025_v27  ;;  %v1202_v32 = vadd.f32 %v1164_v30, %v1122_v28 }
 0x319   : > { %1107 = vst.msk [vmem:[%s1809_s22 + $0x28] sm:$0xff] %vm987_vm2, %v1090_v31  ;;  %1218 = vst.msk [vmem:[%s1814_s30 + $0x20] sm:$0xff] %vm987_vm2, %v1202_v32 }
 0x31a   : > { %v1072_v35 = vpop.xlane.xlu0 %1071  ;;  %v1182_v36 = vpop.xlane.xlu1 %1181 }
 0x31b   : > { %v1096_v37 = vadd.f32 %v1072_v35, %v1031_v33  ;;  %v1208_v38 = vadd.f32 %v1182_v36, %v1128_v34 }
 0x31d   : > { %1113 = vst.msk [vmem:[%s1809_s22 + $0x58] sm:$0xff] %vm987_vm2, %v1096_v37  ;;  %1224 = vst.msk [vmem:[%s1814_s30 + $0x50] sm:$0xff] %vm987_vm2, %v1208_v38 }
 0x31e   : > { %v1167_v41 = vpop.xlane.xlu0 %1166  ;;  %v1075_v42 = vpop.xlane.xlu1 %1074 }
 0x31f   : > { %v1203_v43 = vadd.f32 %v1167_v41, %v1123_v39  ;;  %v1097_v44 = vadd.f32 %v1075_v42, %v1032_v40 }
 0x321   : > { %1219 = vst.msk [vmem:[%s1814_s30 + $0x28] sm:$0xff] %vm987_vm2, %v1203_v43  ;;  %1114 = vst.msk [vmem:[%s1809_s22 + $0x60] sm:$0xff] %vm987_vm2, %v1097_v44 }
 0x322   : > { %v1185_v47 = vpop.xlane.xlu0 %1184  ;;  %v1188_v48 = vpop.xlane.xlu1 %1187 }
 0x323   : > { %v1209_v49 = vadd.f32 %v1185_v47, %v1129_v45  ;;  %v1210_v50 = vadd.f32 %v1188_v48, %v1130_v46 }
 0x325   : > { %1225 = vst.msk [vmem:[%s1814_s30 + $0x58] sm:$0xff] %vm987_vm2, %v1209_v49  ;;  %1226 = vst.msk [vmem:[%s1814_s30 + $0x60] sm:$0xff] %vm987_vm2, %v1210_v50 }
 0x326   : > { %v1078_v53 = vpop.xlane.xlu0 %1077  ;;  %v1081_v54 = vpop.xlane.xlu1 %1080 }
 0x327   : > { %v1098_v55 = vadd.f32 %v1078_v53, %v1033_v51  ;;  %v1099_v56 = vadd.f32 %v1081_v54, %v1034_v52 }
 0x329   : > { %1115 = vst.msk [vmem:[%s1809_s22 + $0x68] sm:$0xff] %vm987_vm2, %v1098_v55  ;;  %1116 = vst.msk [vmem:[%s1809_s22 + $0x70] sm:$0xff] %vm987_vm2, %v1099_v56 }
 0x32a   : > { %v1191_v59 = vpop.xlane.xlu0 %1190  ;;  %v1194_v60 = vpop.xlane.xlu1 %1193 }
 0x32b   : > { %v1211_v61 = vadd.f32 %v1191_v59, %v1131_v57  ;;  %v1212_v62 = vadd.f32 %v1194_v60, %v1132_v58 }
 0x32d   : > { %1227 = vst.msk [vmem:[%s1814_s30 + $0x68] sm:$0xff] %vm987_vm2, %v1211_v61  ;;  %1228 = vst.msk [vmem:[%s1814_s30 + $0x70] sm:$0xff] %vm987_vm2, %v1212_v62 }
 0x32e   : > { %v1084_v0 = vpop.xlane.xlu0 %1083 }
 0x32f   : > { %v1100_v1 = vadd.f32 %v1084_v0, %v1035_v63 }
 0x331   : > { %1117 = vst.msk [vmem:[%s1809_s22 + $0x78] sm:$0xff] %vm987_vm2, %v1100_v1 }
 0x332   : > { %v1197_v3 = vpop.xlane.xlu0 %1196 }
 0x333   : > { %v1213_v4 = vadd.f32 %v1197_v3, %v1133_v2 }
 0x335   : > { %1229 = vst.msk [vmem:[%s1814_s30 + $0x78] sm:$0xff] %vm987_vm2, %v1213_v4 }
 0x336 PF: > { %s20_s11 = sadd.s32 1, %s1541_s11   ;;  %s2027_s30 = smov %s1537_s10 }
 0x337   : > { %p17_p5 = scmp.ge.s32.totalorder %s20_s11, 4   ;;  %s2028_s10 = smov %s2030_s12 }
 0x339   :  { %19 = sbr.rel (!%p17_p5) target bundleno = 2 (0x2), region = 98 }

// kernel: pointnet_forward.7
= control target key start
LH: loop header
LB: loop body
LE: loop exit
PB: predicated region body
PF: predicated region fallthrough
CT: control target
= control target key end

     0   :  { %s2374_s0 = inlined_call_operand.vmem [shape: f32[2,3,16], index: 0, kind: input, shape index: {}]   ;;  %s2375_s1 = inlined_call_operand.vmem [shape: f32[32,3], index: 1, kind: input, shape index: {}]   ;;  %s2376_s2 = inlined_call_operand.vmem [shape: f32[32,1], index: 2, kind: input, shape index: {}]   ;;  %s2377_s3 = inlined_call_operand.vmem [shape: f32[32,1], index: 3, kind: input, shape index: {}]   ;;  %s2378_s4 = inlined_call_operand.vmem [shape: f32[64,32], index: 4, kind: input, shape index: {}]   ;;  %s2379_s5 = inlined_call_operand.vmem [shape: f32[64,1], index: 5, kind: input, shape index: {}]   ;;  %s2380_s6 = inlined_call_operand.vmem [shape: f32[64,1], index: 6, kind: input, shape index: {}]   ;;  %s2381_s7 = inlined_call_operand.vmem [shape: f32[128,64], index: 7, kind: input, shape index: {}]   ;;  %s2382_s8 = inlined_call_operand.vmem [shape: f32[128,1], index: 8, kind: input, shape index: {}]   ;;  %s2383_s9 = inlined_call_operand.vmem [shape: f32[128,1], index: 9, kind: input, shape index: {}]   ;;  %s2384_s10 = inlined_call_operand.vmem [shape: f32[3,128], index: 10, kind: input, shape index: {}]   ;;  %s2385_s11 = inlined_call_operand.vmem [shape: f32[3,1], index: 11, kind: input, shape index: {}]   ;;  %s2386_s12 = inlined_call_operand.vmem [shape: f32[2,3,16], index: 12, kind: output, shape index: {0}]   ;;  %s2387_s13 = inlined_call_operand.hbm [shape: f32[2,1,16], index: 13, kind: output, shape index: {1}]  }
   0x1   :  { %2390 = sst [smem:[#allocation7_spill]] %s2374_s0 }
   0x2   :  { %2391 = sst [smem:[#allocation8_spill]] %s2375_s1 }
   0x3   :  { %2392 = sst [smem:[#allocation9_spill]] %s2376_s2 }
   0x4   :  { %19 = vsyncpa [#allocation3], 0 }
   0x5   :  { %21 = vsyncpa [#allocation3 + $0x1], 0  ;;  %s1954_s25 = smov 0   ;;  %s1956_s26 = smov 0  }
   0x6   :  { %s1958_s27 = smov 0   ;;  %s1960_s28 = smov 0  }
   0x7   :  { %s1962_s29 = smov 0   ;;  %s1964_s30 = smov 0  }
   0x8 LB: > { %2393 = sst [smem:[#allocation5_spill]] %s1872_s29  ;;  %s1546_s14 = sadd.s32 4294967295, %s1876_s30   ;;  %s1876_s30 = sphi %s1964_s30, %s27_s30   ;;  %s1872_s29 = sphi %s1962_s29, %s2401_s29   ;;  %s1868_s28 = sphi %s1960_s28, %s2400_s28   ;;  %s1864_s27 = sphi %s1958_s27, %s2404_s27   ;;  %s1860_s26 = sphi %s1956_s26, %s2403_s26   ;;  %s1856_s25 = sphi %s1954_s25, %s2402_s25  }
   0x9   : > { %s1547_s15 = sadd.s32 4294967294, %s1876_s30   ;;  %s39_s16 = sadd.s32 1, %s1872_s29 }
   0xa   : > { %s335_s17 = sadd.s32 1, %s1864_s27  ;;  %p41_p0 = scmp.ge.s32.totalorder %s39_s16, 2 }
   0xb   : > { %p345_p1 = scmp.ne.s32.totalorder %s1864_s27, %s1860_s26  ;;  %p346_p2 = scmp.eq.s32.totalorder %s1546_s14, 1 }
   0xc   : > { %p351_p3 = scmp.ne.s32.totalorder %s1860_s26, %s1856_s25  ;;  %s2406_s16 = smov (%p41_p0, %s39_s16), 0 }
   0xd   : > { %2394 = sst [smem:[#allocation6_spill]] %s2406_s16  ;;  %p1994_p4 = por %p346_p2, %p345_p1 }
   0xe   : > { %p352_p5 = scmp.eq.s32.totalorder %s1547_s15, 1  ;;  %s330_s19 = ssub.s32 %s1872_s29, %s2406_s16 }
   0xf   : > { %p1550_p6 = scmp.ge.s32.totalorder %s1876_s30, 1  ;;  %p333_p7 = scmp.eq.s32.totalorder %s330_s19, 0 }
  0x10   : > { %p2001_p8 = por %p352_p5, %p351_p3  ;;  %p413_p9 = scmp.lt.s32.totalorder %s1876_s30, 3 }
  0x11   : > { %s2007_s21 = scalar_select %p333_p7, %s1864_s27, %s335_s17  }
  0x12   : > { %p414_p10 = pnand %p1550_p6, %p413_p9 }
  0x13   : > { %s2397_s1 = sld [smem:[#allocation8_spill]] (!%p414_p10)  ;;  %p465_p11 = scmp.lt.s32.totalorder (!%p414_p10), %s1868_s28, 1 }
  0x14   : > { %417 = sbr.rel (%p414_p10) target bundleno = 915 (0x393), region = 68  ;;  %s2398_s2 = sld [smem:[#allocation9_spill]] (!%p414_p10) }
  0x15   : > { %s2399_s0 = sld [smem:[#allocation7_spill]] (!%p414_p10)  ;;  %s463_s23 = sand.u32 (!%p414_p10), 1, %s1860_s26  }
  0x16   : > { %s1577_s24 = sshll.u32 (!%p414_p10), %s1868_s28, 4  ;;  %s1432_s16 = scalar_lea.sflag (!%p414_p10), [#allocation3], %s463_s23 }
  0x17   : > { %s1446_s15 = scalar_lea.hbm (!%p414_p10), %s2387_s13, %s1577_s24 }
  0x19   : > { %v482_v0 = vld [vmem:[%s2397_s1 + $0x18] sm:$0xff]  ;;  %v481_v1 = vld [vmem:[%s2397_s1 + $0x10] sm:$0xff]  ;;  %v1878_v2 = vmov 1   ;;  %v1879_v3 = vmov 0   ;;  %v480_v4 = vld [vmem:[%s2397_s1 + $0x8] sm:$0xff]  ;;  %v1880_v5 = vmov 2  }
  0x1a   : > { %1788 = vset.pattern.permute.xlu0 %v1878_v2  ;;  %1789 = vset.pattern.permute.xlu1 %v1879_v3  ;;  %v479_v6 = vld [vmem:[%s2397_s1] sm:$0xff]  ;;  %v485_v7 = vld [vmem:[%s2398_s2 + $0x10] sm:$0xff]  ;;  %v488_v9 = vld [vmem:[%s2377_s3 + $0x8] sm:$0xff]  ;;  %vm701_vm0 = vcmask 261120   ;;  %s2189_s14 = scalar_select %p465_p11, %s1868_s28, 1  ;;  %vm935_vm1 = vcmask 523264  }
  0x1b   : > { %606 = vperm.xlu0 %1788, %v482_v0   ;;  %577 = vperm.xlu1 %1789, %v481_v1   ;;  %v489_v8 = vld [vmem:[%s2377_s3 + $0x10] sm:$0xff]  ;;  %v486_v10 = vld [vmem:[%s2398_s2 + $0x18] sm:$0xff]  ;;  %v484_v15 = vld [vmem:[%s2398_s2 + $0x8] sm:$0xff]  ;;  %vm1882_vm2 = vmmov 0   ;;  %vm1413_vm3 = vcmask 124928   ;;  %vm1422_vm4 = vcmask 122880  }
  0x1c   : > { %v506_v11 = vld [vmem:[%s2379_s5 + $0x38] sm:$0xff]  ;;  %v513_v14 = vld [vmem:[%s2380_s6 + $0x30] sm:$0xff]  ;;  %v512_v16 = vld [vmem:[%s2380_s6 + $0x28] sm:$0xff]  ;;  %s1551_s19 = sshll.u32 %s2189_s14, 2 }
  0x1d   : > { %v514_v12 = vld [vmem:[%s2380_s6 + $0x38] sm:$0xff]  ;;  %v483_v17 = vld [vmem:[%s2398_s2] sm:$0xff]  ;;  %v505_v22 = vld [vmem:[%s2379_s5 + $0x30] sm:$0xff]  ;;  %s471_s1 = scalar_lea.vmem %s2399_s0, %s1551_s19  ;;  %s478_s22 = scalar_lea.vmem %s2386_s12, %s1551_s19 }
  0x1e   : > { %v490_v13 = vld [vmem:[%s2377_s3 + $0x18] sm:$0xff]  ;;  %v511_v18 = vld [vmem:[%s2380_s6 + $0x20] sm:$0xff]  ;;  %v509_v23 = vld [vmem:[%s2380_s6 + $0x10] sm:$0xff] }
  0x1f   : > { %1795 = vset.pattern.permute.xlu0 %v1880_v5  ;;  %1790 = vset.pattern.permute.xlu1 %v1878_v2  ;;  %v487_v19 = vld [vmem:[%s2377_s3] sm:$0xff]  ;;  %v510_v20 = vld [vmem:[%s2380_s6 + $0x18] sm:$0xff]  ;;  %v504_v24 = vld [vmem:[%s2379_s5 + $0x28] sm:$0xff] }
  0x20   : > { %602 = vperm.xlu1 %1790, %v481_v1   ;;  %626 = vperm.xlu0 %1795, %v480_v4   ;;  %v491_v21 = vld [vmem:[%s2378_s4] sm:$0xff]  ;;  %v508_v25 = vld [vmem:[%s2380_s6 + $0x8] sm:$0xff]  ;;  %v546_v27 = vld [vmem:[%s2382_s8 + $0x78] sm:$0xff] }
  0x21   : > { %1641 = vmatprep.mubr.msk.f32.mxu0 %vm701_vm0, %v491_v21  ;;  %v503_v26 = vld [vmem:[%s2379_s5 + $0x20] sm:$0xff]  ;;  %v502_v28 = vld [vmem:[%s2379_s5 + $0x18] sm:$0xff]  ;;  %v501_v30 = vld [vmem:[%s2379_s5 + $0x10] sm:$0xff] }
  0x22   : > { %v562_v29 = vld [vmem:[%s2383_s9 + $0x78] sm:$0xff]  ;;  %v561_v31 = vld [vmem:[%s2383_s9 + $0x70] sm:$0xff]  ;;  %v500_v32 = vld [vmem:[%s2379_s5 + $0x8] sm:$0xff] }
  0x23   : > { %v560_v33 = vld [vmem:[%s2383_s9 + $0x68] sm:$0xff]  ;;  %v499_v34 = vld [vmem:[%s2379_s5] sm:$0xff]  ;;  %v558_v37 = vld [vmem:[%s2383_s9 + $0x58] sm:$0xff] }
  0x24   : > { %1791 = vset.pattern.permute.xlu1 %v1880_v5  ;;  %1796 = vset.pattern.permute.xlu0 %v1879_v3  ;;  %v559_v35 = vld [vmem:[%s2383_s9 + $0x60] sm:$0xff]  ;;  %v545_v38 = vld [vmem:[%s2382_s8 + $0x70] sm:$0xff]  ;;  %v544_v40 = vld [vmem:[%s2382_s8 + $0x68] sm:$0xff] }
  0x25   : > { %634 = vperm.xlu1 %1791, %v482_v0   ;;  %582 = vperm.xlu0 %1796, %v482_v0   ;;  %v507_v36 = vld [vmem:[%s2380_s6] sm:$0xff]  ;;  %v557_v39 = vld [vmem:[%s2383_s9 + $0x50] sm:$0xff]  ;;  %v556_v41 = vld [vmem:[%s2383_s9 + $0x48] sm:$0xff] }
  0x26   : > { %v543_v42 = vld [vmem:[%s2382_s8 + $0x60] sm:$0xff]  ;;  %v542_v44 = vld [vmem:[%s2382_s8 + $0x58] sm:$0xff]  ;;  %v541_v46 = vld [vmem:[%s2382_s8 + $0x50] sm:$0xff] }
  0x27   : > { %v555_v43 = vld [vmem:[%s2383_s9 + $0x40] sm:$0xff]  ;;  %v554_v45 = vld [vmem:[%s2383_s9 + $0x38] sm:$0xff]  ;;  %v553_v47 = vld [vmem:[%s2383_s9 + $0x30] sm:$0xff] }
  0x28   : > { %v540_v48 = vld [vmem:[%s2382_s8 + $0x48] sm:$0xff]  ;;  %v539_v50 = vld [vmem:[%s2382_s8 + $0x40] sm:$0xff]  ;;  %v538_v52 = vld [vmem:[%s2382_s8 + $0x38] sm:$0xff] }
  0x29   : > { %1792 = vset.pattern.permute.xlu1 %v1878_v2  ;;  %572 = vperm.xlu0 %1796, %v480_v4   ;;  %v552_v49 = vld [vmem:[%s2383_s9 + $0x28] sm:$0xff]  ;;  %v551_v51 = vld [vmem:[%s2383_s9 + $0x20] sm:$0xff]  ;;  %v550_v53 = vld [vmem:[%s2383_s9 + $0x18] sm:$0xff] }
  0x2a   : > { %598 = vperm.xlu1 %1792, %v480_v4   ;;  %v537_v54 = vld [vmem:[%s2382_s8 + $0x30] sm:$0xff]  ;;  %v536_v56 = vld [vmem:[%s2382_s8 + $0x28] sm:$0xff]  ;;  %v535_v60 = vld [vmem:[%s2382_s8 + $0x20] sm:$0xff] }
  0x2b   : > { %v549_v55 = vld [vmem:[%s2383_s9 + $0x10] sm:$0xff]  ;;  %v548_v58 = vld [vmem:[%s2383_s9 + $0x8] sm:$0xff]  ;;  %v1337_v61 = vld [vmem:[%s2385_s11] sm:$0x7] }
  0x2c   : > { %v534_v63 = vld [vmem:[%s2382_s8 + $0x18] sm:$0xff] }
  0x2d   : > { %567 = vperm.xlu0 %1796, %v479_v6  }
  0x2e   : > { %1793 = vset.pattern.permute.xlu1 %v1880_v5 }
  0x2f   : > { %630 = vperm.xlu1 %1793, %v481_v1  }
  0x31   : > { %661 = vperm.xlu0 %1796, %v485_v7  }
  0x33   : > { %1794 = vset.pattern.permute.xlu1 %v1878_v2  ;;  %v533_v2 = vld [vmem:[%s2382_s8 + $0x10] sm:$0xff] }
  0x34   : > { %594 = vperm.xlu1 %1794, %v479_v6  }
  0x35   : > { %685 = vperm.xlu0 %1796, %v489_v8   ;;  %v531_v8 = vld [vmem:[%s2382_s8] sm:$0xff] }
  0x38   : > { %1797 = vset.pattern.permute.xlu1 %v1879_v3 }
  0x39   : > { %680 = vperm.xlu0 %1796, %v488_v9   ;;  %666 = vperm.xlu1 %1797, %v486_v10  }
  0x3d   : > { %868 = vperm.xlu0 %1796, %v506_v11   ;;  %1798 = vset.pattern.permute.xlu1 %v1880_v5  ;;  %v532_v5 = vld [vmem:[%s2382_s8 + $0x8] sm:$0xff] }
  0x3e   : > { %622 = vperm.xlu1 %1798, %v479_v6  }
  0x41   : > { %916 = vperm.xlu0 %1796, %v514_v12  }
  0x42   : > { %1799 = vset.pattern.permute.xlu1 %v1879_v3  ;;  %v585_v3 = vlaneseq }
  0x43   : > { %690 = vperm.xlu1 %1799, %v490_v13   ;;  %v564_v13 = vld [vmem:[%s471_s1] sm:$0x7]  ;;  %s464_s1 = scalar_lea.vmem [#allocation2], %s463_s23 }
  0x44   : > { %v586_v7 = vshrl.u32 %v585_v3, 7  ;;  %v497_v3 = vld [vmem:[%s2378_s4 + $0x30] sm:$0xff]  ;;  %s1448_s29 = sshll.u32 %s464_s1, 4  ;;  %s1449_s29 = int_to_ptr.vmem [resolvable:$true] %s1448_s29 }
  0x45   : > { %911 = vperm.xlu0 %1796, %v513_v14   ;;  %v547_v14 = vld [vmem:[%s2383_s9] sm:$0xff]  ;;  %s1800_s17 = scalar_lea.vmem %s1449_s29, 16 }
  0x46   : > { %v611_v9 = vsub.s32 1, %v586_v7  ;;  %v587_v12 = vsub.s32 0, %v586_v7  ;;  %p1801_p12 = scmp.ne.s32.totalorder %s1449_s29, %s1800_s17 }
  0x47   : > { %656 = vperm.xlu1 %1799, %v484_v15  }
  0x48   : > { %v612_v15 = vrot.slane %v564_v13, %v611_v9  ;;  %p1802_p13 = pnand %p1801_p12, %p1994_p4 }
  0x49   : > { %906 = vperm.xlu0 %1796, %v512_v16   ;;  %v639_v16 = vsub.s32 2, %v586_v7 }
  0x4a   : > { %p1803_p0 = pneg %p1802_p13 }
  0x4b   : > { %651 = vperm.xlu1 %1799, %v483_v17   ;;  %v588_v17 = vrot.slane %v564_v13, %v587_v12  ;;  %v640_v21 = vrot.slane %v564_v13, %v639_v16 }
  0x4d   : > { %901 = vperm.xlu0 %1796, %v511_v18  }
  0x4f   : > { %675 = vperm.xlu1 %1799, %v487_v19  }
  0x51   : > { %896 = vperm.xlu0 %1796, %v510_v20  }
  0x53   : > { %863 = vperm.xlu1 %1799, %v505_v22  }
  0x55   : > { %891 = vperm.xlu0 %1796, %v509_v23  }
  0x57   : > { %858 = vperm.xlu1 %1799, %v504_v24  }
  0x59   : > { %886 = vperm.xlu0 %1796, %v508_v25  }
  0x5b   : > { %853 = vperm.xlu1 %1799, %v503_v26  }
  0x5d   : > { %1206 = vperm.xlu0 %1796, %v546_v27  }
  0x5f   : > { %848 = vperm.xlu1 %1799, %v502_v28  }
  0x61   : > { %1302 = vperm.xlu0 %1796, %v562_v29  }
  0x63   : > { %843 = vperm.xlu1 %1799, %v501_v30  }
  0x65   : > { %1297 = vperm.xlu0 %1796, %v561_v31  }
  0x67   : > { %838 = vperm.xlu1 %1799, %v500_v32  }
  0x69   : > { %1292 = vperm.xlu0 %1796, %v560_v33  }
  0x6b   : > { %833 = vperm.xlu1 %1799, %v499_v34  }
  0x6d   : > { %1287 = vperm.xlu0 %1796, %v559_v35  }
  0x6f   : > { %881 = vperm.xlu1 %1799, %v507_v36  }
  0x71   : > { %1282 = vperm.xlu0 %1796, %v558_v37  }
  0x73   : > { %1201 = vperm.xlu1 %1799, %v545_v38  }
  0x75   : > { %1277 = vperm.xlu0 %1796, %v557_v39  }
  0x77   : > { %1196 = vperm.xlu1 %1799, %v544_v40  }
  0x79   : > { %1272 = vperm.xlu0 %1796, %v556_v41  }
  0x7b   : > { %1191 = vperm.xlu1 %1799, %v543_v42  }
  0x7d   : > { %1267 = vperm.xlu0 %1796, %v555_v43  }
  0x7f   : > { %1186 = vperm.xlu1 %1799, %v542_v44  }
  0x81   : > { %1262 = vperm.xlu0 %1796, %v554_v45  }
  0x83   : > { %1181 = vperm.xlu1 %1799, %v541_v46  }
  0x85   : > { %1257 = vperm.xlu0 %1796, %v553_v47  }
  0x87   : > { %1176 = vperm.xlu1 %1799, %v540_v48  }
  0x89   : > { %1252 = vperm.xlu0 %1796, %v552_v49  }
  0x8b   : > { %1171 = vperm.xlu1 %1799, %v539_v50  }
  0x8d   : > { %1247 = vperm.xlu0 %1796, %v551_v51  }
  0x8f   : > { %1166 = vperm.xlu1 %1799, %v538_v52  }
  0x91   : > { %1242 = vperm.xlu0 %1796, %v550_v53  }
  0x93   : > { %1161 = vperm.xlu1 %1799, %v537_v54  }
  0x95   : > { %1237 = vperm.xlu0 %1796, %v549_v55  }
  0x96   : > { %v578_v57 = vpop.permute.xlu1 %577  ;;  %v607_v59 = vpop.permute.xlu0 %606 }
  0x97   : > { %1156 = vperm.xlu1 %1799, %v536_v56   ;;  %v591_v22 = vmul.f32 %v588_v17, %v578_v57  ;;  %v616_v23 = vmul.f32 %v612_v15, %v607_v59 }
  0x99   : > { %1232 = vperm.xlu0 %1796, %v548_v58  }
  0x9b   : > { %v603_v62 = vpop.permute.xlu1 %602  ;;  %1151 = vperm.xlu1 %1799, %v535_v60   ;;  %v627_v0 = vpop.permute.xlu0 %626 }
  0x9c   : > { %v615_v20 = vmul.f32 %v612_v15, %v603_v62  ;;  %v642_v38 = vmul.f32 %v640_v21, %v627_v0  ;;  %v492_v62 = vld [vmem:[%s2378_s4 + $0x8] sm:$0xff]  ;;  %v494_v0 = vld [vmem:[%s2378_s4 + $0x18] sm:$0xff] }
  0x9d   : > { %1340 = vperm.xlu0 %1796, %v1337_v61  }
  0x9e   : > { %v619_v27 = vadd.f32 %v615_v20, %v591_v22 }
  0x9f   : > { %1146 = vperm.xlu1 %1799, %v534_v63   ;;  %v493_v63 = vld [vmem:[%s2378_s4 + $0x10] sm:$0xff] }
  0xa0   : > { %v635_v1 = vpop.permute.xlu1 %634  ;;  %v583_v4 = vpop.permute.xlu0 %582 }
  0xa1   : > { %v592_v24 = vmul.f32 %v588_v17, %v583_v4  ;;  %v644_v31 = vmul.f32 %v640_v21, %v635_v1  ;;  %v495_v1 = vld [vmem:[%s2378_s4 + $0x20] sm:$0xff]  ;;  %v498_v4 = vld [vmem:[%s2378_s4 + $0x38] sm:$0xff] }
  0xa3   : > { %1141 = vperm.xlu1 %1799, %v533_v2   ;;  %v620_v29 = vadd.f32 %v616_v23, %v592_v24  ;;  %v496_v2 = vld [vmem:[%s2378_s4 + $0x28] sm:$0xff] }
  0xa4   : > { %v573_v10 = vpop.permute.xlu0 %572 }
  0xa5   : > { %v599_v6 = vpop.permute.xlu1 %598  ;;  %v590_v32 = vmul.f32 %v588_v17, %v573_v10  ;;  %v648_v36 = vadd.f32 %v644_v31, %v620_v29 }
  0xa6   : > { %v614_v33 = vmul.f32 %v612_v15, %v599_v6 }
  0xa7   : > { %1136 = vperm.xlu1 %1799, %v532_v5   ;;  %v515_v5 = vld [vmem:[%s2381_s7] sm:$0xff] }
  0xa8   : > { %v568_v19 = vpop.permute.xlu0 %567  ;;  %v618_v39 = vadd.f32 %v614_v33, %v590_v32  ;;  %1669 = vmatprep.mubr.msk.f32.mxu1 %vm935_vm1, %v515_v5  ;;  %v1881_v5 = vmov 0.0  }
  0xa9   : > { %v589_v44 = vmul.f32 %v588_v17, %v568_v19 }
  0xaa   : > { %v631_v11 = vpop.permute.xlu1 %630  ;;  %v646_v47 = vadd.f32 %v642_v38, %v618_v39 }
  0xab   : > { %1131 = vperm.xlu1 %1799, %v531_v8   ;;  %v643_v25 = vmul.f32 %v640_v21, %v631_v11 }
  0xac   : > { %v662_v28 = vpop.permute.xlu0 %661 }
  0xad   : > { %v647_v30 = vadd.f32 %v643_v25, %v619_v27 }
  0xaf   : > { %1227 = vperm.xlu1 %1799, %v547_v14   ;;  %v595_v18 = vpop.permute.xlu1 %594  ;;  %v671_v35 = vmul.f32 %v662_v28, %v647_v30 }
  0xb0   : > { %v686_v37 = vpop.permute.xlu0 %685  ;;  %v613_v45 = vmul.f32 %v612_v15, %v595_v18 }
  0xb1   : > { %v695_v42 = vadd.f32 %v686_v37, %v671_v35 }
  0xb2   : > { %v617_v53 = vadd.f32 %v613_v45, %v589_v44 }
  0xb3   : > { %v699_v49 = vmax.f32 %v695_v42, 0.0 }
  0xb4   : > { %v667_v26 = vpop.permute.xlu1 %666  ;;  %v681_v52 = vpop.permute.xlu0 %680 }
  0xb5   : > { %v672_v40 = vmul.f32 %v667_v26, %v648_v36 }
  0xb8   : > { %v869_v6 = vpop.permute.xlu0 %868 }
  0xb9   : > { %v623_v34 = vpop.permute.xlu1 %622 }
  0xba   : > { %v641_v50 = vmul.f32 %v640_v21, %v623_v34 }
  0xbc   : > { %v645_v57 = vadd.f32 %v641_v50, %v617_v53  ;;  %v917_v8 = vpop.permute.xlu0 %916 }
  0xbe   : > { %v691_v41 = vpop.permute.xlu1 %690 }
  0xbf   : > { %v696_v43 = vadd.f32 %v691_v41, %v672_v40 }
  0xc0   : > { %v912_v10 = vpop.permute.xlu0 %911 }
  0xc1   : > { %v700_v46 = vmax.f32 %v696_v43, 0.0 }
  0xc2   : > { %v657_v48 = vpop.permute.xlu1 %656 }
  0xc3   : > { %v670_v51 = vmul.f32 %v657_v48, %v646_v47  ;;  %1633 = vmatprep.subr.mxu0 %v700_v46 }
  0xc4   : > { %1634 = vmatpush3.msra.mxu0 %v700_v46  ;;  %v907_v12 = vpop.permute.xlu0 %906 }
  0xc5   : > { %v694_v54 = vadd.f32 %v681_v52, %v670_v51  ;;  %1635 = vmatprep.subr.mxu0 %v699_v49 }
  0xc6   : > { %v652_v55 = vpop.permute.xlu1 %651  ;;  %1636 = vmatpush3.msra.mxu0 %v699_v49 }
  0xc7   : > { %v698_v56 = vmax.f32 %v694_v54, 0.0  ;;  %v669_v58 = vmul.f32 %v652_v55, %v645_v57  ;;  %v516_v54 = vld [vmem:[%s2381_s7 + $0x8] sm:$0xff]  ;;  %v517_v55 = vld [vmem:[%s2381_s7 + $0x10] sm:$0xff]  ;;  %v519_v57 = vld [vmem:[%s2381_s7 + $0x20] sm:$0xff] }
  0xc8   : > { %v902_v17 = vpop.permute.xlu0 %901 }
  0xc9   : > { %1637 = vmatprep.subr.mxu0 %v698_v56 }
  0xca   : > { %v676_v59 = vpop.permute.xlu1 %675  ;;  %1638 = vmatpush3.msra.mxu0 %v698_v56  ;;  %v518_v56 = vld [vmem:[%s2381_s7 + $0x18] sm:$0xff] }
  0xcb   : > { %v693_v60 = vadd.f32 %v676_v59, %v669_v58  ;;  %v520_v58 = vld [vmem:[%s2381_s7 + $0x28] sm:$0xff]  ;;  %v521_v59 = vld [vmem:[%s2381_s7 + $0x30] sm:$0xff] }
  0xcc   : > { %v897_v22 = vpop.permute.xlu0 %896 }
  0xcd   : > { %v697_v61 = vmax.f32 %v693_v60, 0.0  ;;  %v522_v60 = vld [vmem:[%s2381_s7 + $0x38] sm:$0xff] }
  0xce   : > { %v864_v7 = vpop.permute.xlu1 %863 }
  0xcf   : > { %1639 = vmatprep.subr.mxu0 %v697_v61 }
  0xd0   : > { %1640 = vmatpush3.msra.mxu0 %v697_v61  ;;  %v892_v35 = vpop.permute.xlu0 %891  ;;  %v523_v61 = vld [vmem:[%s2381_s7 + $0x40] sm:$0xff] }
  0xd1   : > { %1642 = vmatmul.mubr.msk.f32.vlgmr.msra.gmra.mxu0 %vm701_vm0, %v492_v62  ;;  %v524_v62 = vld [vmem:[%s2381_s7 + $0x48] sm:$0xff]  ;;  %1693 = vmatprep.subr.mxu0 %v1881_v5 }
  0xd2   : > { %1644 = vmatprep.mubr.msk.f32.mxu0 %vm701_vm0, %v493_v63  ;;  %v859_v9 = vpop.permute.xlu1 %858  ;;  %v525_v63 = vld [vmem:[%s2381_s7 + $0x50] sm:$0xff] }
  0xd4   : > { %v887_v46 = vpop.permute.xlu0 %886 }
  0xd5   : > { %1645 = vmatmul.mubr.msk.f32.gmra.mxu0 %vm701_vm0, %v494_v0  ;;  %v526_v0 = vld [vmem:[%s2381_s7 + $0x58] sm:$0xff] }
  0xd6   : > { %1647 = vmatprep.mubr.msk.f32.mxu0 %vm701_vm0, %v495_v1  ;;  %v854_v11 = vpop.permute.xlu1 %853  ;;  %v527_v1 = vld [vmem:[%s2381_s7 + $0x60] sm:$0xff] }
  0xd9   : > { %1648 = vmatmul.mubr.msk.f32.gmra.mxu0 %vm701_vm0, %v496_v2  ;;  %v528_v2 = vld [vmem:[%s2381_s7 + $0x68] sm:$0xff] }
  0xda   : > { %1650 = vmatprep.mubr.msk.f32.mxu0 %vm701_vm0, %v497_v3  ;;  %v849_v14 = vpop.permute.xlu1 %848  ;;  %v529_v3 = vld [vmem:[%s2381_s7 + $0x70] sm:$0xff] }
  0xdd   : > { %1651 = vmatmul.mubr.msk.f32.gmra.mxu0 %vm701_vm0, %v498_v4  ;;  %v530_v4 = vld [vmem:[%s2381_s7 + $0x78] sm:$0xff] }
  0xde   : > { %v844_v19 = vpop.permute.xlu1 %843  ;;  %1725 = vmatprep.mubr.msk.f32.mxu0 %vm1882_vm2, %v1881_v5 }
  0xe2   : > { %v839_v26 = vpop.permute.xlu1 %838 }
  0xe6   : > { %v834_v39 = vpop.permute.xlu1 %833 }
  0xea   : > { %v882_v49 = vpop.permute.xlu1 %881 }
 0x191   : > { %v1643_v13 = vpop.f32.mrf.mxu0 }
 0x192   : > { %v872_v40 = vmul.f32 %v1643_v13, %v839_v26 }
 0x193   : > { %v792_v15 = vpop.f32.mrf.mxu0 }
 0x194   : > { %v871_v43 = vmul.f32 %v834_v39, %v792_v15  ;;  %v920_v47 = vadd.f32 %v887_v46, %v872_v40 }
 0x195   : > { %v1646_v16 = vpop.f32.mrf.mxu0 }
 0x196   : > { %v874_v31 = vmul.f32 %v1646_v16, %v849_v14  ;;  %v919_v50 = vadd.f32 %v882_v49, %v871_v43  ;;  %v928_v52 = vmax.f32 %v920_v47, 0.0 }
 0x197   : > { %v802_v18 = vpop.f32.mrf.mxu0 }
 0x198   : > { %v873_v36 = vmul.f32 %v844_v19, %v802_v18  ;;  %v922_v41 = vadd.f32 %v897_v22, %v874_v31  ;;  %v927_v53 = vmax.f32 %v919_v50, 0.0 }
 0x199   : > { %v1649_v20 = vpop.f32.mrf.mxu0 }
 0x19a   : > { %v876_v24 = vmul.f32 %v1649_v20, %v859_v9  ;;  %v921_v44 = vadd.f32 %v892_v35, %v873_v36  ;;  %v930_v48 = vmax.f32 %v922_v41, 0.0 }
 0x19b   : > { %v812_v21 = vpop.f32.mrf.mxu0 }
 0x19c   : > { %v875_v28 = vmul.f32 %v854_v11, %v812_v21  ;;  %v924_v32 = vadd.f32 %v907_v12, %v876_v24  ;;  %v929_v51 = vmax.f32 %v921_v44, 0.0 }
 0x19d   : > { %v1652_v23 = vpop.f32.mrf.mxu0 }
 0x19e   : > { %v878_v25 = vmul.f32 %v1652_v23, %v869_v6  ;;  %v923_v37 = vadd.f32 %v902_v17, %v875_v28  ;;  %v932_v42 = vmax.f32 %v924_v32, 0.0  ;;  %v1207_v6 = vpop.permute.xlu0 %1206 }
 0x19f   : > { %v822_v27 = vpop.f32.mrf.mxu0 }
 0x1a0   : > { %v877_v29 = vmul.f32 %v864_v7, %v822_v27  ;;  %v926_v30 = vadd.f32 %v917_v8, %v878_v25  ;;  %v931_v45 = vmax.f32 %v923_v37, 0.0  ;;  %v1202_v7 = vpop.permute.xlu1 %1201 }
 0x1a2   : > { %v925_v33 = vadd.f32 %v912_v10, %v877_v29  ;;  %v934_v34 = vmax.f32 %v926_v30, 0.0  ;;  %v1303_v8 = vpop.permute.xlu0 %1302 }
 0x1a4   : > { %v933_v38 = vmax.f32 %v925_v33, 0.0  ;;  %1653 = vmatprep.subr.mxu1 %v934_v34  ;;  %v1197_v9 = vpop.permute.xlu1 %1196 }
 0x1a5   : > { %1654 = vmatpush3.msra.mxu1 %v934_v34 }
 0x1a6   : > { %1655 = vmatprep.subr.mxu1 %v933_v38  ;;  %v1298_v10 = vpop.permute.xlu0 %1297 }
 0x1a7   : > { %1656 = vmatpush3.msra.mxu1 %v933_v38 }
 0x1a8   : > { %1657 = vmatprep.subr.mxu1 %v932_v42  ;;  %v1192_v11 = vpop.permute.xlu1 %1191 }
 0x1a9   : > { %1658 = vmatpush3.msra.mxu1 %v932_v42 }
 0x1aa   : > { %1659 = vmatprep.subr.mxu1 %v931_v45  ;;  %v1293_v12 = vpop.permute.xlu0 %1292 }
 0x1ab   : > { %1660 = vmatpush3.msra.mxu1 %v931_v45 }
 0x1ac   : > { %1661 = vmatprep.subr.mxu1 %v930_v48  ;;  %v1187_v13 = vpop.permute.xlu1 %1186 }
 0x1ad   : > { %1662 = vmatpush3.msra.mxu1 %v930_v48 }
 0x1ae   : > { %1663 = vmatprep.subr.mxu1 %v929_v51  ;;  %v1288_v14 = vpop.permute.xlu0 %1287 }
 0x1af   : > { %1664 = vmatpush3.msra.mxu1 %v929_v51 }
 0x1b0   : > { %1665 = vmatprep.subr.mxu1 %v928_v52  ;;  %v1182_v15 = vpop.permute.xlu1 %1181 }
 0x1b1   : > { %1666 = vmatpush3.msra.mxu1 %v928_v52 }
 0x1b2   : > { %1667 = vmatprep.subr.mxu1 %v927_v53  ;;  %v1283_v16 = vpop.permute.xlu0 %1282 }
 0x1b3   : > { %1668 = vmatpush3.msra.mxu1 %v927_v53 }
 0x1b4   : > { %1670 = vmatmul.mubr.msk.f32.vlgmr.msra.gmra.mxu1 %vm935_vm1, %v516_v54  ;;  %v1177_v17 = vpop.permute.xlu1 %1176 }
 0x1b5   : > { %1672 = vmatprep.mubr.msk.f32.mxu1 %vm935_vm1, %v517_v55 }
 0x1b6   : > { %v1278_v19 = vpop.permute.xlu0 %1277 }
 0x1b8   : > { %1673 = vmatmul.mubr.msk.f32.gmra.mxu1 %vm935_vm1, %v518_v56  ;;  %v1172_v21 = vpop.permute.xlu1 %1171 }
 0x1b9   : > { %1675 = vmatprep.mubr.msk.f32.mxu1 %vm935_vm1, %v519_v57 }
 0x1ba   : > { %v1273_v24 = vpop.permute.xlu0 %1272 }
 0x1bc   : > { %1676 = vmatmul.mubr.msk.f32.gmra.mxu1 %vm935_vm1, %v520_v58  ;;  %v1167_v26 = vpop.permute.xlu1 %1166 }
 0x1bd   : > { %1678 = vmatprep.mubr.msk.f32.mxu1 %vm935_vm1, %v521_v59 }
 0x1be   : > { %v1268_v29 = vpop.permute.xlu0 %1267 }
 0x1c0   : > { %1679 = vmatmul.mubr.msk.f32.gmra.mxu1 %vm935_vm1, %v522_v60  ;;  %v1162_v31 = vpop.permute.xlu1 %1161 }
 0x1c1   : > { %1681 = vmatprep.mubr.msk.f32.mxu1 %vm935_vm1, %v523_v61 }
 0x1c2   : > { %v1263_v34 = vpop.permute.xlu0 %1262 }
 0x1c4   : > { %1682 = vmatmul.mubr.msk.f32.gmra.mxu1 %vm935_vm1, %v524_v62  ;;  %v1157_v36 = vpop.permute.xlu1 %1156 }
 0x1c5   : > { %1684 = vmatprep.mubr.msk.f32.mxu1 %vm935_vm1, %v525_v63 }
 0x1c6   : > { %v1258_v39 = vpop.permute.xlu0 %1257 }
 0x1c8   : > { %1685 = vmatmul.mubr.msk.f32.gmra.mxu1 %vm935_vm1, %v526_v0  ;;  %v1152_v41 = vpop.permute.xlu1 %1151 }
 0x1c9   : > { %1687 = vmatprep.mubr.msk.f32.mxu1 %vm935_vm1, %v527_v1 }
 0x1ca   : > { %v1253_v49 = vpop.permute.xlu0 %1252 }
 0x1cc   : > { %1688 = vmatmul.mubr.msk.f32.gmra.mxu1 %vm935_vm1, %v528_v2  ;;  %v1147_v54 = vpop.permute.xlu1 %1146 }
 0x1cd   : > { %1690 = vmatprep.mubr.msk.f32.mxu1 %vm935_vm1, %v529_v3 }
 0x1ce   : > { %v1248_v61 = vpop.permute.xlu0 %1247 }
 0x1d0   : > { %1691 = vmatmul.mubr.msk.f32.gmra.mxu1 %vm935_vm1, %v530_v4  ;;  %v1142_v1 = vpop.permute.xlu1 %1141 }
 0x274   : > { %v2300_v18 = vpop.f32.mrf.mxu1 }
 0x276   : > { %v2302_v20 = vpop.f32.mrf.mxu1 }
 0x278   : > { %v2304_v22 = vpop.f32.mrf.mxu1 }
 0x27a   : > { %v2306_v23 = vpop.f32.mrf.mxu1 }
 0x27c   : > { %v1677_v25 = vpop.f32.mrf.mxu1 }
 0x27e   : > { %v1070_v27 = vpop.f32.mrf.mxu1 }
 0x280   : > { %v1680_v28 = vpop.f32.mrf.mxu1 }
 0x281   : > { %v1216_v2 = vmul.f32 %v1680_v28, %v1167_v26 }
 0x282   : > { %v1080_v30 = vpop.f32.mrf.mxu1 }
 0x284   : > { %v1683_v32 = vpop.f32.mrf.mxu1 }
 0x285   : > { %v1218_v58 = vmul.f32 %v1683_v32, %v1177_v17  ;;  %v1212_v17 = vmul.f32 %v2304_v22, %v1147_v54 }
 0x286   : > { %v1090_v33 = vpop.f32.mrf.mxu1 }
 0x287   : > { %v1217_v62 = vmul.f32 %v1172_v21, %v1090_v33  ;;  %v1314_v3 = vadd.f32 %v1273_v24, %v1218_v58 }
 0x288   : > { %v1686_v35 = vpop.f32.mrf.mxu1 }
 0x289   : > { %v1220_v50 = vmul.f32 %v1686_v35, %v1187_v13  ;;  %v1137_v13 = vpop.permute.xlu1 %1136 }
 0x28a   : > { %v1100_v37 = vpop.f32.mrf.mxu1 }
 0x28b   : > { %v1219_v55 = vmul.f32 %v1182_v15, %v1100_v37  ;;  %v1316_v59 = vadd.f32 %v1283_v16, %v1220_v50 }
 0x28c   : > { %v1689_v38 = vpop.f32.mrf.mxu1 }
 0x28d   : > { %v1222_v43 = vmul.f32 %v1689_v38, %v1197_v9  ;;  %v1315_v63 = vadd.f32 %v1278_v19, %v1219_v55  ;;  %v1332_v4 = vmax.f32 %v1316_v59, 0.0  ;;  %v1243_v9 = vpop.permute.xlu0 %1242 }
 0x28e   : > { %v1110_v40 = vpop.f32.mrf.mxu1 }
 0x28f   : > { %v1221_v46 = vmul.f32 %v1192_v11, %v1110_v40  ;;  %v1318_v51 = vadd.f32 %v1293_v12, %v1222_v43  ;;  %v1312_v11 = vadd.f32 %v1263_v34, %v1216_v2  ;;  %v1330_v12 = vmax.f32 %v1314_v3, 0.0 }
 0x290   : > { %v1692_v42 = vpop.f32.mrf.mxu1 }
 0x291   : > { %v1224_v44 = vmul.f32 %v1692_v42, %v1207_v6  ;;  %v1317_v56 = vadd.f32 %v1288_v14, %v1221_v46  ;;  %v1334_v60 = vmax.f32 %v1318_v51, 0.0  ;;  %v1215_v6 = vmul.f32 %v1162_v31, %v1080_v30  ;;  %v1238_v24 = vpop.permute.xlu0 %1237 }
 0x292   : > { %v1120_v45 = vpop.f32.mrf.mxu1  ;;  %v1213_v14 = vmul.f32 %v1152_v41, %v1070_v27  ;;  %v1328_v21 = vmax.f32 %v1312_v11, 0.0  ;;  %v1210_v27 = vmul.f32 %v2300_v18, %v1137_v13  ;;  %v1308_v30 = vadd.f32 %v1243_v9, %v1212_v17 }
 0x293   : > { %v1320_v47 = vadd.f32 %v1303_v8, %v1224_v44  ;;  %v1223_v48 = vmul.f32 %v1202_v7, %v1120_v45  ;;  %v1333_v0 = vmax.f32 %v1317_v56, 0.0  ;;  %v1313_v7 = vadd.f32 %v1268_v29, %v1217_v62  ;;  %v1132_v29 = vpop.permute.xlu1 %1131 }
 0x294   : > { %v1331_v8 = vmax.f32 %v1315_v63, 0.0  ;;  %v1311_v15 = vadd.f32 %v1258_v39, %v1215_v6  ;;  %v1309_v26 = vadd.f32 %v1248_v61, %v1213_v14  ;;  %v1209_v22 = vmul.f32 %v1132_v29, %v2302_v20  ;;  %v563_v39 = vld [vmem:[%s2384_s10] sm:$0x7] }
 0x295   : > { %v1336_v52 = vmax.f32 %v1320_v47, 0.0  ;;  %v1319_v53 = vadd.f32 %v1298_v10, %v1223_v48  ;;  %v1214_v10 = vmul.f32 %v1677_v25, %v1157_v36  ;;  %v1329_v16 = vmax.f32 %v1313_v7, 0.0  ;;  %v1233_v34 = vpop.permute.xlu0 %1232 }
 0x296   : > { %v1211_v25 = vmul.f32 %v1142_v1, %v2306_v23  ;;  %v1327_v28 = vmax.f32 %v1311_v15, 0.0  ;;  %v1325_v33 = vmax.f32 %v1309_v26, 0.0  ;;  %v1306_v23 = vadd.f32 %v1233_v34, %v1210_v27 }
 0x297   : > { %v1335_v57 = vmax.f32 %v1319_v53, 0.0  ;;  %1694 = vmatpush3.msra.mxu0 %v1336_v52  ;;  %v1310_v19 = vadd.f32 %v1253_v49, %v1214_v10  ;;  %v1324_v35 = vmax.f32 %v1308_v30, 0.0  ;;  %v1228_v36 = vpop.permute.xlu1 %1227 }
 0x298   : > { %1695 = vmatprep.subr.mxu0 %v1881_v5  ;;  %v1307_v32 = vadd.f32 %v1238_v24, %v1211_v25  ;;  %v1305_v18 = vadd.f32 %v1228_v36, %v1209_v22  ;;  %v1322_v38 = vmax.f32 %v1306_v23, 0.0 }
 0x299   : > { %1696 = vmatpush3.msra.mxu0 %v1335_v57  ;;  %v1326_v31 = vmax.f32 %v1310_v19, 0.0  ;;  %v1341_v40 = vpop.permute.xlu0 %1340 }
 0x29a   : > { %1697 = vmatprep.subr.mxu0 %v1881_v5  ;;  %v1323_v37 = vmax.f32 %v1307_v32, 0.0  ;;  %v1321_v20 = vmax.f32 %v1305_v18, 0.0 }
 0x29b   : > { %1698 = vmatpush3.msra.mxu0 %v1334_v60 }
 0x29c   : > { %1699 = vmatprep.subr.mxu0 %v1881_v5 }
 0x29d   : > { %1700 = vmatpush3.msra.mxu0 %v1333_v0 }
 0x29e   : > { %1701 = vmatprep.subr.mxu0 %v1881_v5 }
 0x29f   : > { %1702 = vmatpush3.msra.mxu0 %v1332_v4 }
 0x2a0   : > { %1703 = vmatprep.subr.mxu0 %v1881_v5 }
 0x2a1   : > { %1704 = vmatpush3.msra.mxu0 %v1331_v8 }
 0x2a2   : > { %1705 = vmatprep.subr.mxu0 %v1881_v5 }
 0x2a3   : > { %1706 = vmatpush3.msra.mxu0 %v1330_v12 }
 0x2a4   : > { %1707 = vmatprep.subr.mxu0 %v1881_v5 }
 0x2a5   : > { %1708 = vmatpush3.msra.mxu0 %v1329_v16 }
 0x2a6   : > { %1709 = vmatprep.subr.mxu0 %v1881_v5 }
 0x2a7   : > { %1710 = vmatpush3.msra.mxu0 %v1328_v21 }
 0x2a8   : > { %1711 = vmatprep.subr.mxu0 %v1881_v5 }
 0x2a9   : > { %1712 = vmatpush3.msra.mxu0 %v1327_v28 }
 0x2aa   : > { %1713 = vmatprep.subr.mxu0 %v1881_v5 }
 0x2ab   : > { %1714 = vmatpush3.msra.mxu0 %v1326_v31 }
 0x2ac   : > { %1715 = vmatprep.subr.mxu0 %v1881_v5 }
 0x2ad   : > { %1716 = vmatpush3.msra.mxu0 %v1325_v33 }
 0x2ae   : > { %1717 = vmatprep.subr.mxu0 %v1881_v5 }
 0x2af   : > { %1718 = vmatpush3.msra.mxu0 %v1324_v35 }
 0x2b0   : > { %1719 = vmatprep.subr.mxu0 %v1881_v5 }
 0x2b1   : > { %1720 = vmatpush3.msra.mxu0 %v1323_v37 }
 0x2b2   : > { %1721 = vmatprep.subr.mxu0 %v1881_v5 }
 0x2b3   : > { %1722 = vmatpush3.msra.mxu0 %v1322_v38 }
 0x2b4   : > { %1723 = vmatprep.subr.mxu0 %v1881_v5 }
 0x2b5   : > { %1724 = vmatpush3.msra.mxu0 %v1321_v20 }
 0x2b6   : > { %1726 = vmatmul.mubr.f32.vlgmr.msra.gmra.mxu0 %v563_v39 }
 0x376   : > { %v1409_v41 = vpop.f32.mrf.mxu0 }
 0x377   : > { %v1410_v42 = vadd.f32 %v1409_v41, %v1341_v40 }
 0x378   : > { %v1727_v43 = vpop.f32.mrf.mxu0 }
 0x379   : > { %1414 = vst.msk [vmem:[%s478_s22] sm:$0x7] %vm1413_vm3, %v1410_v42  ;;  %v1415_v44 = vsel %vm1413_vm3, %v1410_v42, -inf  ;;  %s1883_s22 = smov [#allocation2]  }
 0x37a   : > { %v1416_v45 = vrot.slane %v1415_v44, 4  ;;  %s1804_s0 = sshll.u32 %s1883_s22, 4  ;;  %s1805_s0 = int_to_ptr.vmem [resolvable:$false] %s1804_s0 }
 0x37b   : > { %s1806_s28 = scalar_lea.vmem %s1805_s0, 32  ;;  %p1807_p1 = scmp.lt.s32.totalorder %s1449_s29, %s1805_s0 }
 0x37c   : > { %v1417_v46 = vmax.f32 %v1415_v44, %v1416_v45  ;;  %p1808_p2 = scmp.lt.s32.totalorder %s1806_s28, %s1800_s17 }
 0x37e   : > { %v1418_v5 = vrot.slane %v1417_v46, 2  ;;  %p1809_p3 = por %p1808_p2, %p1807_p1 }
 0x380   : > { %v1419_v47 = vmax.f32 %v1417_v46, %v1418_v5  ;;  %p1810_p5 = pnand %p1809_p3, %p1803_p0 }
 0x382   : > { %v1420_v48 = vrot.slane %v1419_v47, 1 }
 0x384   : > { %v1421_v49 = vmax.f32 %v1419_v47, %v1420_v48 }
 0x386   : > { %1423 = vst.msk [vmem:[%s464_s1] sm:$0x1] %vm1422_vm4, %v1421_v49 }
 0x387   : > { %1813 = shalt.err (!%p1810_p5)
}
 0x388   : > { %s1814_s2 = scalar_lea.hbm %s1446_s15, 16  ;;  %s1818_s1 = scalar_lea.hbm %s2387_s13, 32 }
 0x389   : > { %p1815_p6 = scmp.ne.s32.totalorder %s1446_s15, %s1814_s2  ;;  %p1819_p10 = scmp.lt.s32.totalorder %s1446_s15, %s2387_s13 }
 0x38a   : > { %p1820_p11 = scmp.lt.s32.totalorder %s1818_s1, %s1814_s2 }
 0x38b   : > { %p1816_p7 = pnand %p1815_p6, %p1994_p4 }
 0x38c   : > { %p1821_p12 = por %p1820_p11, %p1819_p10 }
 0x38d   : > { %p1817_p9 = pneg %p1816_p7 }
 0x38f   : > { %p1822_p13 = pnand %p1821_p12, %p1817_p9 }
 0x391   : > { %1825 = shalt.err (!%p1822_p13)
}
 0x392   : > { %1728 = dma.vmem_to_hbm [thread:$0]  (%p1994_p4), %s1449_s29, 16, %s1446_s15, %s1432_s16  }
 0x393 PF: > { %p1734_p0 = scmp.ge.s32.totalorder %s1876_s30, 2  ;;  %s1470_s0 = sand.u32 1, %s1856_s25  }
 0x394   : > { %s1471_s17 = scalar_lea.sflag [#allocation3], %s1470_s0 }
 0x395   : > { %p1731_p1 = pnand %p1734_p0, %p2001_p8 }
 0x397   : > { %p1732_p2 = pneg %p1731_p1 }
 0x399   : > { %1851 = dma.done.wait (%p1732_p2), %s1471_s17, 16  }
 0x39a   : > { %1853 = vsyncadd (%p1732_p2), %s1471_s17, 4294967280  ;;  %s27_s30 = sadd.s32 1, %s1876_s30   ;;  %s2400_s28 = sld [smem:[#allocation5_spill]] }
 0x39b   : > { %p24_p3 = scmp.ge.s32.totalorder %s27_s30, 4   ;;  %s2401_s29 = sld [smem:[#allocation6_spill]] }
 0x39c   : > { %s2402_s25 = smov %s1860_s26  ;;  %s2403_s26 = smov %s1864_s27 }
 0x39d   : > { %s2404_s27 = smov %s2007_s21  ;;  %26 = sbr.rel (!%p24_p3) target bundleno = 8 (0x8), region = 115 }
 0x3a2   :  { %1475 = vsyncpa [#allocation3], 1 }
 0x3a3   :  { %1477 = vsyncpa [#allocation3 + $0x1], 1 }

</bundles_post_ra>
